<compile_context>
chip_gen: v6e
topology: v6e:2x2x1
jax: 0.10.0
libtpu: 0.0.40
codegen_flags: <defaults>
</compile_context>

<pallas_src>
import functools

import jax
import jax.numpy as jnp
from jax.experimental import pallas as pl
from jax.experimental.pallas import tpu as pltpu

LRELU_SLOPE = 0.2  # TODO(synk): original repo uses LeakyReLU(0.2); nn.LeakyReLU default is 0.01.


# -----------------------------------------------------------------------------
# Generic whole-array pallas_call helper (all tensors are small 2-D blocks)
# -----------------------------------------------------------------------------


def _pc(kernel, args, outs):
    """Run `kernel` once with every input/output as a full-array VMEM block.

    outs: list of (shape, dtype).
    """
    out_shape = tuple(jax.ShapeDtypeStruct(s, d) for s, d in outs)
    out_specs = tuple(pl.BlockSpec(s, lambda i: (0, 0)) for s, _ in outs)
    if len(outs) == 1:
        out_shape, out_specs = out_shape[0], out_specs[0]
    in_specs = [pl.BlockSpec(tuple(a.shape), lambda i: (0, 0)) for a in args]
    return pl.pallas_call(
        kernel,
        out_shape=out_shape,
        grid=(1,),
        in_specs=in_specs,
        out_specs=out_specs,
        compiler_params=pltpu.CompilerParams(dimension_semantics=("arbitrary",)),
    )(*args)


def _lrelu(x):
    return jnp.where(x > 0, x, LRELU_SLOPE * x)


# -----------------------------------------------------------------------------
# Kernel 1: netDec (2-layer MLP) + MSE against target, fused.
#           Scalar result written lane-dense to a (1,128) block.
# -----------------------------------------------------------------------------


def _dec_mse_kernel(con_ref, att_ref, w1_ref, b1_ref, w2_ref, b2_ref, o_ref):
    h = jnp.dot(con_ref[...].astype(jnp.bfloat16), w1_ref[...],
                preferred_element_type=jnp.float32) + b1_ref[...]
    h = _lrelu(h)
    recons = jnp.dot(h.astype(jnp.bfloat16), w2_ref[...],
                     preferred_element_type=jnp.float32) + b2_ref[...]
    d = recons - att_ref[...]
    o_ref[...] = jnp.zeros((1, 128), jnp.float32) + jnp.mean(d * d)


def dec_mse(con, att, p):
    out = _pc(_dec_mse_kernel,
              [con, att, p["dec_w1"], p["dec_b1"], p["dec_w2"], p["dec_b2"]],
              [((1, 128), jnp.float32)])
    return out[0, 0]


# -----------------------------------------------------------------------------
# Kernel 2: netG_con (segmented first layer, 2-layer MLP) + posterior sample,
#           fused.  Outputs con_0_fake and con_t_fake.
# -----------------------------------------------------------------------------


def _gen_post_kernel(z_ref, att_ref, ct_ref, te_ref, ctp1_ref, n_ref,
                     c1_ref, c2_ref, lv_ref, m_ref,
                     w1z_ref, w1a_ref, w1c_ref, w1t_ref, b1_ref,
                     w2_ref, b2_ref,
                     x0_out_ref, xt_out_ref):
    h = (jnp.dot(z_ref[...].astype(jnp.bfloat16), w1z_ref[...],
                 preferred_element_type=jnp.float32)
         + jnp.dot(att_ref[...].astype(jnp.bfloat16), w1a_ref[...],
                   preferred_element_type=jnp.float32)
         + jnp.dot(ct_ref[...].astype(jnp.bfloat16), w1c_ref[...],
                   preferred_element_type=jnp.float32)
         + jnp.dot(te_ref[...].astype(jnp.bfloat16), w1t_ref[...],
                   preferred_element_type=jnp.float32)
         + b1_ref[...])
    h = _lrelu(h)
    x0 = jnp.dot(h.astype(jnp.bfloat16), w2_ref[...],
                 preferred_element_type=jnp.float32) + b2_ref[...]
    x0 = jnp.maximum(x0, 0.0)                     # ReLU output (feature space)
    x0_out_ref[...] = x0
    # sample_posterior(x0, x_t=con_tp1, t) fused in:
    mean = c1_ref[...] * x0 + c2_ref[...] * ctp1_ref[...]
    xt_out_ref[...] = mean + m_ref[...] * jnp.exp(0.5 * lv_ref[...]) * n_ref[...]


def generator_posterior(z, att, con_t, te, con_tp1, noise, c1, c2, logvar, mask, p):
    B = z.shape[0]
    conS = con_t.shape[1]
    return _pc(_gen_post_kernel,
               [z, att, con_t, te, con_tp1, noise, c1, c2, logvar, mask,
                p["g_w1z"], p["g_w1a"], p["g_w1c"], p["g_w1t"], p["g_b1"],
                p["g_w2"], p["g_b2"]],
               [((B, conS), jnp.float32), ((B, conS), jnp.float32)])


# -----------------------------------------------------------------------------
# Kernel 3: q_sample + q_sample_pairs elementwise chain (x_t and x_{t+1}).
# -----------------------------------------------------------------------------


def _qpairs_kernel(x0_ref, n1_ref, n2_ref, c1_ref, c2_ref, c3_ref, c4_ref,
                   xt_ref, xtp1_ref):
    xt = c1_ref[...] * x0_ref[...] + c2_ref[...] * n1_ref[...]
    xt_ref[...] = xt
    xtp1_ref[...] = c3_ref[...] * xt + c4_ref[...] * n2_ref[...]


def q_sample_pairs_kernel(x0, n1, n2, c1, c2, c3, c4):
    B, D = x0.shape
    return _pc(_qpairs_kernel, [x0, n1, n2, c1, c2, c3, c4],
               [((B, D), jnp.float32), ((B, D), jnp.float32)])


# -----------------------------------------------------------------------------
# Kernels 4/5: critics.  Segmented first layer, lrelu, hid->1 head as
# lane mul+reduce, per-split batch mean computed in-kernel, lane-dense output.
# Row layout of the stacked input: rows [k*rows, (k+1)*rows) belong to split k.
# -----------------------------------------------------------------------------


def _split_means(s, n_split, rows):
    """s: [n_split*rows, 1] scores -> (n_split, 128) lane-dense means."""
    row = jax.lax.broadcasted_iota(jnp.int32, s.shape, 0)
    orow = jax.lax.broadcasted_iota(jnp.int32, (n_split, 128), 0)
    out = jnp.zeros((n_split, 128), jnp.float32)
    for k in range(n_split):
        sel = (row >= k * rows) & (row < (k + 1) * rows)
        mk = jnp.sum(jnp.where(sel, s, 0.0)) / rows
        out = jnp.where(orow == k, mk, out)
    return out


def _critic_d0_kernel(con_ref, att_ref, w1c_ref, w1a_ref, b1_ref, w2t_ref,
                      b2_ref, o_ref, *, n_split, rows):
    h = (jnp.dot(con_ref[...].astype(jnp.bfloat16), w1c_ref[...],
                 preferred_element_type=jnp.float32)
         + jnp.dot(att_ref[...].astype(jnp.bfloat16), w1a_ref[...],
                   preferred_element_type=jnp.float32)
         + b1_ref[...])
    h = _lrelu(h)
    s = jnp.sum(h * w2t_ref[...], axis=1, keepdims=True) + b2_ref[...]  # [R,1]
    o_ref[...] = _split_means(s, n_split, rows)


def critic_d0(con, att, p, *, n_split, rows):
    out = _pc(functools.partial(_critic_d0_kernel, n_split=n_split, rows=rows),
              [con, att, p["d0_w1c"], p["d0_w1a"], p["d0_b1"],
               p["d0_w2t"], p["d0_b2"]],
              [((n_split, 128), jnp.float32)])
    return out[:, 0]


def _critic_dt_kernel(ct_ref, ctp1_ref, att_ref, te_ref,
                      w1ct_ref, w1c1_ref, w1a_ref, w1t_ref, b1_ref,
                      w2t_ref, b2_ref, o_ref, *, n_split, rows):
    h = (jnp.dot(ct_ref[...].astype(jnp.bfloat16), w1ct_ref[...],
                 preferred_element_type=jnp.float32)
         + jnp.dot(ctp1_ref[...].astype(jnp.bfloat16), w1c1_ref[...],
                   preferred_element_type=jnp.float32)
         + jnp.dot(att_ref[...].astype(jnp.bfloat16), w1a_ref[...],
                   preferred_element_type=jnp.float32)
         + jnp.dot(te_ref[...].astype(jnp.bfloat16), w1t_ref[...],
                   preferred_element_type=jnp.float32)
         + b1_ref[...])
    h = _lrelu(h)
    s = jnp.sum(h * w2t_ref[...], axis=1, keepdims=True) + b2_ref[...]  # [R,1]
    o_ref[...] = _split_means(s, n_split, rows)


def critic_dt(con_t, con_tp1, att, te, p, *, n_split, rows):
    out = _pc(functools.partial(_critic_dt_kernel, n_split=n_split, rows=rows),
              [con_t, con_tp1, att, te,
               p["dt_w1ct"], p["dt_w1c1"], p["dt_w1a"], p["dt_w1t"],
               p["dt_b1"], p["dt_w2t"], p["dt_b2"]],
              [((n_split, 128), jnp.float32)])
    return out[:, 0]


# -----------------------------------------------------------------------------
# Diffusion (ddpm-gan style) coefficient schedules — plain JAX glue
# -----------------------------------------------------------------------------


def _get_sigma_schedule(beta_min, beta_max, n_T):
    t = jnp.arange(0, n_T + 1, dtype=jnp.float32) / float(n_T)
    var = 1.0 - jnp.exp(-beta_min * t - 0.5 * (beta_max - beta_min) * t * t)
    alpha_bars = 1.0 - var
    betas = 1.0 - alpha_bars[1:] / alpha_bars[:-1]
    betas = jnp.concatenate([jnp.array([1e-8], jnp.float32), betas])  # len n_T+1
    sigmas = jnp.sqrt(betas)
    a_s = jnp.sqrt(1.0 - betas)
    return sigmas, a_s, betas


def make_prior_coefficients(beta_min, beta_max, n_T):
    sigmas, a_s, _ = _get_sigma_schedule(beta_min, beta_max, n_T)
    a_s_cum = jnp.cumprod(a_s)
    sigmas_cum = jnp.sqrt(1.0 - a_s_cum ** 2)
    return dict(sqrt_alphas=a_s, sigmas=sigmas,
                sqrt_alphas_bar=a_s_cum, sigmas_bar=sigmas_cum)


def make_posterior_coefficients(beta_min, beta_max, n_T):
    _, _, betas = _get_sigma_schedule(beta_min, beta_max, n_T)
    betas = betas[1:]
    alphas = 1.0 - betas
    alphas_cumprod = jnp.cumprod(alphas)
    alphas_cumprod_prev = jnp.concatenate(
        [jnp.array([1.0], jnp.float32), alphas_cumprod[:-1]])
    posterior_variance = betas * (1.0 - alphas_cumprod_prev) / (1.0 - alphas_cumprod)
    return dict(
        posterior_mean_coef1=betas * jnp.sqrt(alphas_cumprod_prev)
        / (1.0 - alphas_cumprod),
        posterior_mean_coef2=(1.0 - alphas_cumprod_prev) * jnp.sqrt(alphas)
        / (1.0 - alphas_cumprod),
        posterior_log_variance_clipped=jnp.log(jnp.maximum(posterior_variance, 1e-20)),
    )


# -----------------------------------------------------------------------------
# ZERODIFF_DRG forward (forward-only semantics of update_D / update_G), jitted
# -----------------------------------------------------------------------------


def make_zerodiff_forward(opt):
    B = opt["batch_size"]
    conS, attS, noiseS = opt["conSize"], opt["attSize"], opt["noiseSize"]
    n_T = opt["n_T"]
    gx0, gxt = opt["gamma_x0"], opt["gamma_xt"]
    critic_iter = opt["critic_iter"]

    def diffusion_chain(params, prior, post, con0, att0, key):
        """q_sample_pairs -> generator(+posterior sample). Shared by D and G."""
        kz, kt, kq1, kq2, kpost = jax.random.split(key, 5)
        z = jax.random.normal(kz, (B, noiseS), jnp.float32)
        ts = jax.random.randint(kt, (B,), 0, n_T)
        te_g = params["t_emb_g"][ts]
        te_d = params["t_emb_d"][ts]
        n1 = jax.random.normal(kq1, (B, conS), jnp.float32)
        n2 = jax.random.normal(kq2, (B, conS), jnp.float32)
        c1 = prior["sqrt_alphas_bar"][ts][:, None]
        c2 = prior["sigmas_bar"][ts][:, None]
        c3 = prior["sqrt_alphas"][ts + 1][:, None]
        c4 = prior["sigmas"][ts + 1][:, None]
        con_t_real, con_tp1_real = q_sample_pairs_kernel(con0, n1, n2, c1, c2, c3, c4)
        pc1 = post["posterior_mean_coef1"][ts][:, None]
        pc2 = post["posterior_mean_coef2"][ts][:, None]
        plv = post["posterior_log_variance_clipped"][ts][:, None]
        pmask = (1.0 - (ts == 0).astype(jnp.float32))[:, None]
        npost = jax.random.normal(kpost, (B, conS), jnp.float32)
        con_0_fake, con_t_fake = generator_posterior(
            z, att0, con_t_real, te_g, con_tp1_real, npost,
            pc1, pc2, plv, pmask, params)
        return con_t_real, con_tp1_real, con_0_fake, con_t_fake, te_d

    @jax.jit
    def forward(params, prior, post, key):
        def d_step(_, carry):
            key, _, _, _, _ = carry
            key, kd1, kd2, kdiff = jax.random.split(key, 4)
            # sample(): synthetic seen batch (deterministic from key)
            con0 = jax.nn.relu(jax.random.normal(kd1, (B, conS), jnp.float32))
            att0 = jax.random.uniform(kd2, (B, attS), jnp.float32)

            # netDec recon loss: in the torch module it only feeds netDec's
            # backward/optimizer step, so it is unused here (may be DCE'd).
            _R_cost = dec_mse(con0, att0, params)  # noqa: F841

            con_t_real, con_tp1_real, con_0_fake, con_t_fake, te_d = \
                diffusion_chain(params, prior, post, con0, att0, kdiff)

            # real + fake critic evaluations stacked along batch (one call each)
            att2 = jnp.concatenate([att0, att0], axis=0)
            m_d0 = critic_d0(jnp.concatenate([con0, con_0_fake], axis=0),
                             att2, params, n_split=2, rows=B)            # [real, fake]
            m_dt = critic_dt(jnp.concatenate([con_t_real, con_t_fake], axis=0),
                             jnp.concatenate([con_tp1_real, con_tp1_real], axis=0),
                             att2, jnp.concatenate([te_d, te_d], axis=0),
                             params, n_split=2, rows=B)                  # [real, fake]

            criticD_real = gx0 * (-m_d0[0]) + gxt * (-m_dt[0])
            criticD_fake = gx0 * m_d0[1] + gxt * m_dt[1]
            W_D = criticD_real - criticD_fake
            # TODO(synk): gradient penalty needs autograd through the critics; treated as 0.
            D_cost = criticD_fake - criticD_real
            return (key, con0, att0, D_cost, W_D)

        carry0 = (key,
                  jnp.zeros((B, conS), jnp.float32),
                  jnp.zeros((B, attS), jnp.float32),
                  jnp.zeros((), jnp.float32),
                  jnp.zeros((), jnp.float32))
        key, con0, att0, D_cost, W_D = jax.lax.fori_loop(0, critic_iter, d_step, carry0)

        # update_G (forward compute only)
        key, kdiff = jax.random.split(key)
        con_t_real, con_tp1_real, con_0_fake, con_t_fake, te_d = \
            diffusion_chain(params, prior, post, con0, att0, kdiff)
        loss_att_mse = dec_mse(con_0_fake, att0, params)
        m_d0 = critic_d0(con_0_fake, att0, params, n_split=1, rows=B)
        m_dt = critic_dt(con_t_fake, con_tp1_real, att0, te_d, params,
                         n_split=1, rows=B)
        G_cost = gx0 * (-m_d0[0]) + gxt * (-m_dt[0])
        return D_cost, W_D, G_cost, loss_att_mse

    return forward


# -----------------------------------------------------------------------------
# Deterministic parameter init + main
# -----------------------------------------------------------------------------


def init_params(key, opt):
    con, att, noiseS = opt["conSize"], opt["attSize"], opt["noiseSize"]
    hid, temb, n_T = opt["hidden"], opt["t_emb"], opt["n_T"]
    keys = jax.random.split(key, 20)
    s = 0.02

    def w(k, shape, dtype=jnp.bfloat16):
        return (s * jax.random.normal(k, shape, jnp.float32)).astype(dtype)

    return dict(
        # netDec (V2S_mapping): con -> hid -> att
        dec_w1=w(keys[0], (con, hid)), dec_b1=jnp.zeros((1, hid), jnp.float32),
        dec_w2=w(keys[1], (hid, att)), dec_b2=jnp.zeros((1, att), jnp.float32),
        # netG_con (DRG_Generator): first layer split per segment [z|att|con_t|t_emb]
        g_w1z=w(keys[2], (noiseS, hid)), g_w1a=w(keys[3], (att, hid)),
        g_w1c=w(keys[4], (con, hid)), g_w1t=w(keys[5], (temb, hid)),
        g_b1=jnp.zeros((1, hid), jnp.float32),
        g_w2=w(keys[6], (hid, con)), g_b2=jnp.zeros((1, con), jnp.float32),
        t_emb_g=s * jax.random.normal(keys[7], (n_T + 1, temb), jnp.float32),
        # netD_c0 (DFG_Discriminator_x0): [con|att] -> hid -> 1
        d0_w1c=w(keys[8], (con, hid)), d0_w1a=w(keys[9], (att, hid)),
        d0_b1=jnp.zeros((1, hid), jnp.float32),
        d0_w2t=s * jax.random.normal(keys[10], (1, hid), jnp.float32),
        d0_b2=jnp.zeros((1, 1), jnp.float32),
        # netD_ct (DRG_Discriminator_ct): [con_t|con_tp1|att|t_emb] -> hid -> 1
        dt_w1ct=w(keys[11], (con, hid)), dt_w1c1=w(keys[12], (con, hid)),
        dt_w1a=w(keys[13], (att, hid)), dt_w1t=w(keys[14], (temb, hid)),
        dt_b1=jnp.zeros((1, hid), jnp.float32),
        dt_w2t=s * jax.random.normal(keys[15], (1, hid), jnp.float32),
        dt_b2=jnp.zeros((1, 1), jnp.float32),
        t_emb_d=s * jax.random.normal(keys[16], (n_T + 1, temb), jnp.float32),
    )


if __name__ == "__main__":
    opt = dict(
        batch_size=8,
        conSize=256,       # stand-in for the 2048-dim "con" features (small shape)
        attSize=32,
        noiseSize=16,
        hidden=128,
        t_emb=16,
        n_T=4,
        critic_iter=2,
        gamma_x0=1.0,
        gamma_xt=1.0,
    )

    key = jax.random.PRNGKey(0)
    kparams, kfwd = jax.random.split(key)

    params = init_params(kparams, opt)
    prior = make_prior_coefficients(0.1, 20.0, opt["n_T"])
    post = make_posterior_coefficients(0.1, 20.0, opt["n_T"])

    forward = make_zerodiff_forward(opt)
    D_cost, W_D, G_cost, loss_att_mse = forward(params, prior, post, kfwd)
    jax.block_until_ready((D_cost, W_D, G_cost, loss_att_mse))
    print("KERNEL_OK")
</pallas_src>

<mosaic_0001>
module attributes {stable_mosaic.version = 11 : i64} {
  func.func @_qpairs_kernel(%arg0: i32, %arg1: memref<8x256xf32, #tpu.memory_space<vmem>>, %arg2: memref<8x256xf32, #tpu.memory_space<vmem>>, %arg3: memref<8x256xf32, #tpu.memory_space<vmem>>, %arg4: memref<8x1xf32, #tpu.memory_space<vmem>>, %arg5: memref<8x1xf32, #tpu.memory_space<vmem>>, %arg6: memref<8x1xf32, #tpu.memory_space<vmem>>, %arg7: memref<8x1xf32, #tpu.memory_space<vmem>>, %arg8: memref<8x256xf32, #tpu.memory_space<vmem>>, %arg9: memref<8x256xf32, #tpu.memory_space<vmem>>) attributes {dimension_semantics = [#tpu.dimension_semantics<arbitrary>], iteration_bounds = array<i64: 1>, scalar_prefetch = 0 : i64, scratch_operands = 0 : i64, tpu.core_type = #tpu.core_type<tc>, window_params = [{pipeline_mode = #tpu.pipeline_mode<synchronous>, transform_indices = @transform_0, window_bounds = array<i64: 8, 256>}, {pipeline_mode = #tpu.pipeline_mode<synchronous>, transform_indices = @transform_1, window_bounds = array<i64: 8, 256>}, {pipeline_mode = #tpu.pipeline_mode<synchronous>, transform_indices = @transform_2, window_bounds = array<i64: 8, 256>}, {pipeline_mode = #tpu.pipeline_mode<synchronous>, transform_indices = @transform_3, window_bounds = array<i64: 8, 1>}, {pipeline_mode = #tpu.pipeline_mode<synchronous>, transform_indices = @transform_4, window_bounds = array<i64: 8, 1>}, {pipeline_mode = #tpu.pipeline_mode<synchronous>, transform_indices = @transform_5, window_bounds = array<i64: 8, 1>}, {pipeline_mode = #tpu.pipeline_mode<synchronous>, transform_indices = @transform_6, window_bounds = array<i64: 8, 1>}, {pipeline_mode = #tpu.pipeline_mode<synchronous>, transform_indices = @transform_7, window_bounds = array<i64: 8, 256>}, {pipeline_mode = #tpu.pipeline_mode<synchronous>, transform_indices = @transform_8, window_bounds = array<i64: 8, 256>}]} {
    %c0 = arith.constant 0 : index
    %c0_0 = arith.constant 0 : index
    %0 = vector.load %arg4[%c0, %c0_0] : memref<8x1xf32, #tpu.memory_space<vmem>>, vector<8x1xf32>
    %c0_1 = arith.constant 0 : index
    %c0_2 = arith.constant 0 : index
    %1 = vector.load %arg1[%c0_1, %c0_2] : memref<8x256xf32, #tpu.memory_space<vmem>>, vector<8x256xf32>
    %2 = vector.broadcast %0 : vector<8x1xf32> to vector<8x256xf32>
    %3 = arith.mulf %2, %1 : vector<8x256xf32>
    %c0_3 = arith.constant 0 : index
    %c0_4 = arith.constant 0 : index
    %4 = vector.load %arg5[%c0_3, %c0_4] : memref<8x1xf32, #tpu.memory_space<vmem>>, vector<8x1xf32>
    %c0_5 = arith.constant 0 : index
    %c0_6 = arith.constant 0 : index
    %5 = vector.load %arg2[%c0_5, %c0_6] : memref<8x256xf32, #tpu.memory_space<vmem>>, vector<8x256xf32>
    %6 = vector.broadcast %4 : vector<8x1xf32> to vector<8x256xf32>
    %7 = arith.mulf %6, %5 : vector<8x256xf32>
    %8 = arith.addf %3, %7 : vector<8x256xf32>
    %c0_7 = arith.constant 0 : index
    %c0_8 = arith.constant 0 : index
    %9 = vector.load %arg8[%c0_7, %c0_8] : memref<8x256xf32, #tpu.memory_space<vmem>>, vector<8x256xf32>
    tpu.vector_store %arg8[%c0_7, %c0_8], %8 {strides = array<i32>} : memref<8x256xf32, #tpu.memory_space<vmem>>, vector<8x256xf32>,
    %c0_9 = arith.constant 0 : index
    %c0_10 = arith.constant 0 : index
    %10 = vector.load %arg6[%c0_9, %c0_10] : memref<8x1xf32, #tpu.memory_space<vmem>>, vector<8x1xf32>
    %11 = vector.broadcast %10 : vector<8x1xf32> to vector<8x256xf32>
    %12 = arith.mulf %11, %8 : vector<8x256xf32>
    %c0_11 = arith.constant 0 : index
    %c0_12 = arith.constant 0 : index
    %13 = vector.load %arg7[%c0_11, %c0_12] : memref<8x1xf32, #tpu.memory_space<vmem>>, vector<8x1xf32>
    %c0_13 = arith.constant 0 : index
    %c0_14 = arith.constant 0 : index
    %14 = vector.load %arg3[%c0_13, %c0_14] : memref<8x256xf32, #tpu.memory_space<vmem>>, vector<8x256xf32>
    %15 = vector.broadcast %13 : vector<8x1xf32> to vector<8x256xf32>
    %16 = arith.mulf %15, %14 : vector<8x256xf32>
    %17 = arith.addf %12, %16 : vector<8x256xf32>
    %c0_15 = arith.constant 0 : index
    %c0_16 = arith.constant 0 : index
    %18 = vector.load %arg9[%c0_15, %c0_16] : memref<8x256xf32, #tpu.memory_space<vmem>>, vector<8x256xf32>
    tpu.vector_store %arg9[%c0_15, %c0_16], %17 {strides = array<i32>} : memref<8x256xf32, #tpu.memory_space<vmem>>, vector<8x256xf32>,
    return
  }
  func.func @transform_0(%arg0: i32) -> (i32, i32) {
    %c0_i32 = arith.constant 0 : i32
    %c0_i32_0 = arith.constant 0 : i32
    %c0_i32_1 = arith.constant 0 : i32
    return %c0_i32, %c0_i32_0 : i32, i32
  }
  func.func @transform_1(%arg0: i32) -> (i32, i32) {
    %c0_i32 = arith.constant 0 : i32
    %c0_i32_0 = arith.constant 0 : i32
    %c0_i32_1 = arith.constant 0 : i32
    return %c0_i32, %c0_i32_0 : i32, i32
  }
  func.func @transform_2(%arg0: i32) -> (i32, i32) {
    %c0_i32 = arith.constant 0 : i32
    %c0_i32_0 = arith.constant 0 : i32
    %c0_i32_1 = arith.constant 0 : i32
    return %c0_i32, %c0_i32_0 : i32, i32
  }
  func.func @transform_3(%arg0: i32) -> (i32, i32) {
    %c0_i32 = arith.constant 0 : i32
    %c0_i32_0 = arith.constant 0 : i32
    %c0_i32_1 = arith.constant 0 : i32
    return %c0_i32, %c0_i32_0 : i32, i32
  }
  func.func @transform_4(%arg0: i32) -> (i32, i32) {
    %c0_i32 = arith.constant 0 : i32
    %c0_i32_0 = arith.constant 0 : i32
    %c0_i32_1 = arith.constant 0 : i32
    return %c0_i32, %c0_i32_0 : i32, i32
  }
  func.func @transform_5(%arg0: i32) -> (i32, i32) {
    %c0_i32 = arith.constant 0 : i32
    %c0_i32_0 = arith.constant 0 : i32
    %c0_i32_1 = arith.constant 0 : i32
    return %c0_i32, %c0_i32_0 : i32, i32
  }
  func.func @transform_6(%arg0: i32) -> (i32, i32) {
    %c0_i32 = arith.constant 0 : i32
    %c0_i32_0 = arith.constant 0 : i32
    %c0_i32_1 = arith.constant 0 : i32
    return %c0_i32, %c0_i32_0 : i32, i32
  }
  func.func @transform_7(%arg0: i32) -> (i32, i32) {
    %c0_i32 = arith.constant 0 : i32
    %c0_i32_0 = arith.constant 0 : i32
    %c0_i32_1 = arith.constant 0 : i32
    return %c0_i32, %c0_i32_0 : i32, i32
  }
  func.func @transform_8(%arg0: i32) -> (i32, i32) {
    %c0_i32 = arith.constant 0 : i32
    %c0_i32_0 = arith.constant 0 : i32
    %c0_i32_1 = arith.constant 0 : i32
    return %c0_i32, %c0_i32_0 : i32, i32
  }
}

module attributes {stable_mosaic.version = 11 : i64} {
  func.func @_gen_post_kernel(%arg0: i32, %arg1: memref<8x16xf32, #tpu.memory_space<vmem>>, %arg2: memref<8x32xf32, #tpu.memory_space<vmem>>, %arg3: memref<8x256xf32, #tpu.memory_space<vmem>>, %arg4: memref<8x16xf32, #tpu.memory_space<vmem>>, %arg5: memref<8x256xf32, #tpu.memory_space<vmem>>, %arg6: memref<8x256xf32, #tpu.memory_space<vmem>>, %arg7: memref<8x1xf32, #tpu.memory_space<vmem>>, %arg8: memref<8x1xf32, #tpu.memory_space<vmem>>, %arg9: memref<8x1xf32, #tpu.memory_space<vmem>>, %arg10: memref<8x1xf32, #tpu.memory_space<vmem>>, %arg11: memref<16x128xbf16, #tpu.memory_space<vmem>>, %arg12: memref<32x128xbf16, #tpu.memory_space<vmem>>, %arg13: memref<256x128xbf16, #tpu.memory_space<vmem>>, %arg14: memref<16x128xbf16, #tpu.memory_space<vmem>>, %arg15: memref<1x128xf32, #tpu.memory_space<vmem>>, %arg16: memref<128x256xbf16, #tpu.memory_space<vmem>>, %arg17: memref<1x256xf32, #tpu.memory_space<vmem>>, %arg18: memref<8x256xf32, #tpu.memory_space<vmem>>, %arg19: memref<8x256xf32, #tpu.memory_space<vmem>>) attributes {dimension_semantics = [#tpu.dimension_semantics<arbitrary>], iteration_bounds = array<i64: 1>, scalar_prefetch = 0 : i64, scratch_operands = 0 : i64, tpu.core_type = #tpu.core_type<tc>, window_params = [{pipeline_mode = #tpu.pipeline_mode<synchronous>, transform_indices = @transform_0, window_bounds = array<i64: 8, 16>}, {pipeline_mode = #tpu.pipeline_mode<synchronous>, transform_indices = @transform_1, window_bounds = array<i64: 8, 32>}, {pipeline_mode = #tpu.pipeline_mode<synchronous>, transform_indices = @transform_2, window_bounds = array<i64: 8, 256>}, {pipeline_mode = #tpu.pipeline_mode<synchronous>, transform_indices = @transform_3, window_bounds = array<i64: 8, 16>}, {pipeline_mode = #tpu.pipeline_mode<synchronous>, transform_indices = @transform_4, window_bounds = array<i64: 8, 256>}, {pipeline_mode = #tpu.pipeline_mode<synchronous>, transform_indices = @transform_5, window_bounds = array<i64: 8, 256>}, {pipeline_mode = #tpu.pipeline_mode<synchronous>, transform_indices = @transform_6, window_bounds = array<i64: 8, 1>}, {pipeline_mode = #tpu.pipeline_mode<synchronous>, transform_indices = @transform_7, window_bounds = array<i64: 8, 1>}, {pipeline_mode = #tpu.pipeline_mode<synchronous>, transform_indices = @transform_8, window_bounds = array<i64: 8, 1>}, {pipeline_mode = #tpu.pipeline_mode<synchronous>, transform_indices = @transform_9, window_bounds = array<i64: 8, 1>}, {pipeline_mode = #tpu.pipeline_mode<synchronous>, transform_indices = @transform_10, window_bounds = array<i64: 16, 128>}, {pipeline_mode = #tpu.pipeline_mode<synchronous>, transform_indices = @transform_11, window_bounds = array<i64: 32, 128>}, {pipeline_mode = #tpu.pipeline_mode<synchronous>, transform_indices = @transform_12, window_bounds = array<i64: 256, 128>}, {pipeline_mode = #tpu.pipeline_mode<synchronous>, transform_indices = @transform_13, window_bounds = array<i64: 16, 128>}, {pipeline_mode = #tpu.pipeline_mode<synchronous>, transform_indices = @transform_14, window_bounds = array<i64: 1, 128>}, {pipeline_mode = #tpu.pipeline_mode<synchronous>, transform_indices = @transform_15, window_bounds = array<i64: 128, 256>}, {pipeline_mode = #tpu.pipeline_mode<synchronous>, transform_indices = @transform_16, window_bounds = array<i64: 1, 256>}, {pipeline_mode = #tpu.pipeline_mode<synchronous>, transform_indices = @transform_17, window_bounds = array<i64: 8, 256>}, {pipeline_mode = #tpu.pipeline_mode<synchronous>, transform_indices = @transform_18, window_bounds = array<i64: 8, 256>}]} {
    %c0 = arith.constant 0 : index
    %c0_0 = arith.constant 0 : index
    %0 = vector.load %arg1[%c0, %c0_0] : memref<8x16xf32, #tpu.memory_space<vmem>>, vector<8x16xf32>
    %1 = arith.truncf %0 : vector<8x16xf32> to vector<8x16xbf16>
    %c0_1 = arith.constant 0 : index
    %c0_2 = arith.constant 0 : index
    %2 = vector.load %arg11[%c0_1, %c0_2] : memref<16x128xbf16, #tpu.memory_space<vmem>>, vector<16x128xbf16>
    %cst = arith.constant dense<0.000000e+00> : vector<8x128xf32>
    %3 = tpu.matmul %1, %2, %cst {dimension_numbers = #tpu.dot_dimension_numbers<[1], [0], [0], [1], [0, 0, 1, 1], [], []>} : vector<8x16xbf16>, vector<16x128xbf16>, vector<8x128xf32> -> vector<8x128xf32>
    %c0_3 = arith.constant 0 : index
    %c0_4 = arith.constant 0 : index
    %4 = vector.load %arg2[%c0_3, %c0_4] : memref<8x32xf32, #tpu.memory_space<vmem>>, vector<8x32xf32>
    %5 = arith.truncf %4 : vector<8x32xf32> to vector<8x32xbf16>
    %c0_5 = arith.constant 0 : index
    %c0_6 = arith.constant 0 : index
    %6 = vector.load %arg12[%c0_5, %c0_6] : memref<32x128xbf16, #tpu.memory_space<vmem>>, vector<32x128xbf16>
    %cst_7 = arith.constant dense<0.000000e+00> : vector<8x128xf32>
    %7 = tpu.matmul %5, %6, %cst_7 {dimension_numbers = #tpu.dot_dimension_numbers<[1], [0], [0], [1], [0, 0, 1, 1], [], []>} : vector<8x32xbf16>, vector<32x128xbf16>, vector<8x128xf32> -> vector<8x128xf32>
    %8 = arith.addf %3, %7 : vector<8x128xf32>
    %c0_8 = arith.constant 0 : index
    %c0_9 = arith.constant 0 : index
    %9 = vector.load %arg3[%c0_8, %c0_9] : memref<8x256xf32, #tpu.memory_space<vmem>>, vector<8x256xf32>
    %10 = arith.truncf %9 : vector<8x256xf32> to vector<8x256xbf16>
    %c0_10 = arith.constant 0 : index
    %c0_11 = arith.constant 0 : index
    %11 = vector.load %arg13[%c0_10, %c0_11] : memref<256x128xbf16, #tpu.memory_space<vmem>>, vector<256x128xbf16>
    %cst_12 = arith.constant dense<0.000000e+00> : vector<8x128xf32>
    %12 = tpu.matmul %10, %11, %cst_12 {dimension_numbers = #tpu.dot_dimension_numbers<[1], [0], [0], [1], [0, 0, 1, 1], [], []>} : vector<8x256xbf16>, vector<256x128xbf16>, vector<8x128xf32> -> vector<8x128xf32>
    %13 = arith.addf %8, %12 : vector<8x128xf32>
    %c0_13 = arith.constant 0 : index
    %c0_14 = arith.constant 0 : index
    %14 = vector.load %arg4[%c0_13, %c0_14] : memref<8x16xf32, #tpu.memory_space<vmem>>, vector<8x16xf32>
    %15 = arith.truncf %14 : vector<8x16xf32> to vector<8x16xbf16>
    %c0_15 = arith.constant 0 : index
    %c0_16 = arith.constant 0 : index
    %16 = vector.load %arg14[%c0_15, %c0_16] : memref<16x128xbf16, #tpu.memory_space<vmem>>, vector<16x128xbf16>
    %cst_17 = arith.constant dense<0.000000e+00> : vector<8x128xf32>
    %17 = tpu.matmul %15, %16, %cst_17 {dimension_numbers = #tpu.dot_dimension_numbers<[1], [0], [0], [1], [0, 0, 1, 1], [], []>} : vector<8x16xbf16>, vector<16x128xbf16>, vector<8x128xf32> -> vector<8x128xf32>
    %18 = arith.addf %13, %17 : vector<8x128xf32>
    %c0_18 = arith.constant 0 : index
    %c0_19 = arith.constant 0 : index
    %19 = vector.load %arg15[%c0_18, %c0_19] : memref<1x128xf32, #tpu.memory_space<vmem>>, vector<1x128xf32>
    %20 = vector.broadcast %19 : vector<1x128xf32> to vector<8x128xf32>
    %21 = arith.addf %18, %20 : vector<8x128xf32>
    %cst_20 = arith.constant 0.000000e+00 : f32
    %22 = vector.broadcast %cst_20 : f32 to vector<8x128xf32>
    %23 = arith.cmpf ogt, %21, %22 : vector<8x128xf32>
    %cst_21 = arith.constant 2.000000e-01 : f32
    %24 = vector.broadcast %cst_21 : f32 to vector<8x128xf32>
    %25 = arith.mulf %24, %21 : vector<8x128xf32>
    %26 = arith.select %23, %21, %25 : vector<8x128xi1>, vector<8x128xf32>
    %27 = arith.truncf %26 : vector<8x128xf32> to vector<8x128xbf16>
    %c0_22 = arith.constant 0 : index
    %c0_23 = arith.constant 0 : index
    %28 = vector.load %arg16[%c0_22, %c0_23] : memref<128x256xbf16, #tpu.memory_space<vmem>>, vector<128x256xbf16>
    %cst_24 = arith.constant dense<0.000000e+00> : vector<8x256xf32>
    %29 = tpu.matmul %27, %28, %cst_24 {dimension_numbers = #tpu.dot_dimension_numbers<[1], [0], [0], [1], [0, 0, 1, 1], [], []>} : vector<8x128xbf16>, vector<128x256xbf16>, vector<8x256xf32> -> vector<8x256xf32>
    %c0_25 = arith.constant 0 : index
    %c0_26 = arith.constant 0 : index
    %30 = vector.load %arg17[%c0_25, %c0_26] : memref<1x256xf32, #tpu.memory_space<vmem>>, vector<1x256xf32>
    %31 = vector.broadcast %30 : vector<1x256xf32> to vector<8x256xf32>
    %32 = arith.addf %29, %31 : vector<8x256xf32>
    %cst_27 = arith.constant 0.000000e+00 : f32
    %33 = vector.broadcast %cst_27 : f32 to vector<8x256xf32>
    %34 = arith.maximumf %32, %33 : vector<8x256xf32>
    %c0_28 = arith.constant 0 : index
    %c0_29 = arith.constant 0 : index
    %35 = vector.load %arg18[%c0_28, %c0_29] : memref<8x256xf32, #tpu.memory_space<vmem>>, vector<8x256xf32>
    tpu.vector_store %arg18[%c0_28, %c0_29], %34 {strides = array<i32>} : memref<8x256xf32, #tpu.memory_space<vmem>>, vector<8x256xf32>,
    %c0_30 = arith.constant 0 : index
    %c0_31 = arith.constant 0 : index
    %36 = vector.load %arg7[%c0_30, %c0_31] : memref<8x1xf32, #tpu.memory_space<vmem>>, vector<8x1xf32>
    %37 = vector.broadcast %36 : vector<8x1xf32> to vector<8x256xf32>
    %38 = arith.mulf %37, %34 : vector<8x256xf32>
    %c0_32 = arith.constant 0 : index
    %c0_33 = arith.constant 0 : index
    %39 = vector.load %arg8[%c0_32, %c0_33] : memref<8x1xf32, #tpu.memory_space<vmem>>, vector<8x1xf32>
    %c0_34 = arith.constant 0 : index
    %c0_35 = arith.constant 0 : index
    %40 = vector.load %arg5[%c0_34, %c0_35] : memref<8x256xf32, #tpu.memory_space<vmem>>, vector<8x256xf32>
    %41 = vector.broadcast %39 : vector<8x1xf32> to vector<8x256xf32>
    %42 = arith.mulf %41, %40 : vector<8x256xf32>
    %43 = arith.addf %38, %42 : vector<8x256xf32>
    %c0_36 = arith.constant 0 : index
    %c0_37 = arith.constant 0 : index
    %44 = vector.load %arg10[%c0_36, %c0_37] : memref<8x1xf32, #tpu.memory_space<vmem>>, vector<8x1xf32>
    %c0_38 = arith.constant 0 : index
    %c0_39 = arith.constant 0 : index
    %45 = vector.load %arg9[%c0_38, %c0_39] : memref<8x1xf32, #tpu.memory_space<vmem>>, vector<8x1xf32>
    %cst_40 = arith.constant 5.000000e-01 : f32
    %46 = vector.broadcast %cst_40 : f32 to vector<8x1xf32>
    %47 = arith.mulf %46, %45 : vector<8x1xf32>
    %48 = math.exp %47 : vector<8x1xf32>
    %49 = arith.mulf %44, %48 : vector<8x1xf32>
    %c0_41 = arith.constant 0 : index
    %c0_42 = arith.constant 0 : index
    %50 = vector.load %arg6[%c0_41, %c0_42] : memref<8x256xf32, #tpu.memory_space<vmem>>, vector<8x256xf32>
    %51 = vector.broadcast %49 : vector<8x1xf32> to vector<8x256xf32>
    %52 = arith.mulf %51, %50 : vector<8x256xf32>
    %53 = arith.addf %43, %52 : vector<8x256xf32>
    %c0_43 = arith.constant 0 : index
    %c0_44 = arith.constant 0 : index
    %54 = vector.load %arg19[%c0_43, %c0_44] : memref<8x256xf32, #tpu.memory_space<vmem>>, vector<8x256xf32>
    tpu.vector_store %arg19[%c0_43, %c0_44], %53 {strides = array<i32>} : memref<8x256xf32, #tpu.memory_space<vmem>>, vector<8x256xf32>,
    return
  }
  func.func @transform_0(%arg0: i32) -> (i32, i32) {
    %c0_i32 = arith.constant 0 : i32
    %c0_i32_0 = arith.constant 0 : i32
    %c0_i32_1 = arith.constant 0 : i32
    return %c0_i32, %c0_i32_0 : i32, i32
  }
  func.func @transform_1(%arg0: i32) -> (i32, i32) {
    %c0_i32 = arith.constant 0 : i32
    %c0_i32_0 = arith.constant 0 : i32
    %c0_i32_1 = arith.constant 0 : i32
    return %c0_i32, %c0_i32_0 : i32, i32
  }
  func.func @transform_2(%arg0: i32) -> (i32, i32) {
    %c0_i32 = arith.constant 0 : i32
    %c0_i32_0 = arith.constant 0 : i32
    %c0_i32_1 = arith.constant 0 : i32
    return %c0_i32, %c0_i32_0 : i32, i32
  }
  func.func @transform_3(%arg0: i32) -> (i32, i32) {
    %c0_i32 = arith.constant 0 : i32
    %c0_i32_0 = arith.constant 0 : i32
    %c0_i32_1 = arith.constant 0 : i32
    return %c0_i32, %c0_i32_0 : i32, i32
  }
  func.func @transform_4(%arg0: i32) -> (i32, i32) {
    %c0_i32 = arith.constant 0 : i32
    %c0_i32_0 = arith.constant 0 : i32
    %c0_i32_1 = arith.constant 0 : i32
    return %c0_i32, %c0_i32_0 : i32, i32
  }
  func.func @transform_5(%arg0: i32) -> (i32, i32) {
    %c0_i32 = arith.constant 0 : i32
    %c0_i32_0 = arith.constant 0 : i32
    %c0_i32_1 = arith.constant 0 : i32
    return %c0_i32, %c0_i32_0 : i32, i32
  }
  func.func @transform_6(%arg0: i32) -> (i32, i32) {
    %c0_i32 = arith.constant 0 : i32
    %c0_i32_0 = arith.constant 0 : i32
    %c0_i32_1 = arith.constant 0 : i32
    return %c0_i32, %c0_i32_0 : i32, i32
  }
  func.func @transform_7(%arg0: i32) -> (i32, i32) {
    %c0_i32 = arith.constant 0 : i32
    %c0_i32_0 = arith.constant 0 : i32
    %c0_i32_1 = arith.constant 0 : i32
    return %c0_i32, %c0_i32_0 : i32, i32
  }
  func.func @transform_8(%arg0: i32) -> (i32, i32) {
    %c0_i32 = arith.constant 0 : i32
    %c0_i32_0 = arith.constant 0 : i32
    %c0_i32_1 = arith.constant 0 : i32
    return %c0_i32, %c0_i32_0 : i32, i32
  }
  func.func @transform_9(%arg0: i32) -> (i32, i32) {
    %c0_i32 = arith.constant 0 : i32
    %c0_i32_0 = arith.constant 0 : i32
    %c0_i32_1 = arith.constant 0 : i32
    return %c0_i32, %c0_i32_0 : i32, i32
  }
  func.func @transform_10(%arg0: i32) -> (i32, i32) {
    %c0_i32 = arith.constant 0 : i32
    %c0_i32_0 = arith.constant 0 : i32
    %c0_i32_1 = arith.constant 0 : i32
    return %c0_i32, %c0_i32_0 : i32, i32
  }
  func.func @transform_11(%arg0: i32) -> (i32, i32) {
    %c0_i32 = arith.constant 0 : i32
    %c0_i32_0 = arith.constant 0 : i32
    %c0_i32_1 = arith.constant 0 : i32
    return %c0_i32, %c0_i32_0 : i32, i32
  }
  func.func @transform_12(%arg0: i32) -> (i32, i32) {
    %c0_i32 = arith.constant 0 : i32
    %c0_i32_0 = arith.constant 0 : i32
    %c0_i32_1 = arith.constant 0 : i32
    return %c0_i32, %c0_i32_0 : i32, i32
  }
  func.func @transform_13(%arg0: i32) -> (i32, i32) {
    %c0_i32 = arith.constant 0 : i32
    %c0_i32_0 = arith.constant 0 : i32
    %c0_i32_1 = arith.constant 0 : i32
    return %c0_i32, %c0_i32_0 : i32, i32
  }
  func.func @transform_14(%arg0: i32) -> (i32, i32) {
    %c0_i32 = arith.constant 0 : i32
    %c0_i32_0 = arith.constant 0 : i32
    %c0_i32_1 = arith.constant 0 : i32
    return %c0_i32, %c0_i32_0 : i32, i32
  }
  func.func @transform_15(%arg0: i32) -> (i32, i32) {
    %c0_i32 = arith.constant 0 : i32
    %c0_i32_0 = arith.constant 0 : i32
    %c0_i32_1 = arith.constant 0 : i32
    return %c0_i32, %c0_i32_0 : i32, i32
  }
  func.func @transform_16(%arg0: i32) -> (i32, i32) {
    %c0_i32 = arith.constant 0 : i32
    %c0_i32_0 = arith.constant 0 : i32
    %c0_i32_1 = arith.constant 0 : i32
    return %c0_i32, %c0_i32_0 : i32, i32
  }
  func.func @transform_17(%arg0: i32) -> (i32, i32) {
    %c0_i32 = arith.constant 0 : i32
    %c0_i32_0 = arith.constant 0 : i32
    %c0_i32_1 = arith.constant 0 : i32
    return %c0_i32, %c0_i32_0 : i32, i32
  }
  func.func @transform_18(%arg0: i32) -> (i32, i32) {
    %c0_i32 = arith.constant 0 : i32
    %c0_i32_0 = arith.constant 0 : i32
    %c0_i32_1 = arith.constant 0 : i32
    return %c0_i32, %c0_i32_0 : i32, i32
  }
}

module attributes {stable_mosaic.version = 11 : i64} {
  func.func @_critic_d0_kernel(%arg0: i32, %arg1: memref<16x256xf32, #tpu.memory_space<vmem>>, %arg2: memref<16x32xf32, #tpu.memory_space<vmem>>, %arg3: memref<256x128xbf16, #tpu.memory_space<vmem>>, %arg4: memref<32x128xbf16, #tpu.memory_space<vmem>>, %arg5: memref<1x128xf32, #tpu.memory_space<vmem>>, %arg6: memref<1x128xf32, #tpu.memory_space<vmem>>, %arg7: memref<1x1xf32, #tpu.memory_space<vmem>>, %arg8: memref<2x128xf32, #tpu.memory_space<vmem>>) attributes {dimension_semantics = [#tpu.dimension_semantics<arbitrary>], iteration_bounds = array<i64: 1>, scalar_prefetch = 0 : i64, scratch_operands = 0 : i64, tpu.core_type = #tpu.core_type<tc>, window_params = [{pipeline_mode = #tpu.pipeline_mode<synchronous>, transform_indices = @transform_0, window_bounds = array<i64: 16, 256>}, {pipeline_mode = #tpu.pipeline_mode<synchronous>, transform_indices = @transform_1, window_bounds = array<i64: 16, 32>}, {pipeline_mode = #tpu.pipeline_mode<synchronous>, transform_indices = @transform_2, window_bounds = array<i64: 256, 128>}, {pipeline_mode = #tpu.pipeline_mode<synchronous>, transform_indices = @transform_3, window_bounds = array<i64: 32, 128>}, {pipeline_mode = #tpu.pipeline_mode<synchronous>, transform_indices = @transform_4, window_bounds = array<i64: 1, 128>}, {pipeline_mode = #tpu.pipeline_mode<synchronous>, transform_indices = @transform_5, window_bounds = array<i64: 1, 128>}, {pipeline_mode = #tpu.pipeline_mode<synchronous>, transform_indices = @transform_6, window_bounds = array<i64: 1, 1>}, {pipeline_mode = #tpu.pipeline_mode<synchronous>, transform_indices = @transform_7, window_bounds = array<i64: 2, 128>}]} {
    %c0 = arith.constant 0 : index
    %c0_0 = arith.constant 0 : index
    %0 = vector.load %arg1[%c0, %c0_0] : memref<16x256xf32, #tpu.memory_space<vmem>>, vector<16x256xf32>
    %1 = arith.truncf %0 : vector<16x256xf32> to vector<16x256xbf16>
    %c0_1 = arith.constant 0 : index
    %c0_2 = arith.constant 0 : index
    %2 = vector.load %arg3[%c0_1, %c0_2] : memref<256x128xbf16, #tpu.memory_space<vmem>>, vector<256x128xbf16>
    %cst = arith.constant dense<0.000000e+00> : vector<16x128xf32>
    %3 = tpu.matmul %1, %2, %cst {dimension_numbers = #tpu.dot_dimension_numbers<[1], [0], [0], [1], [0, 0, 1, 1], [], []>} : vector<16x256xbf16>, vector<256x128xbf16>, vector<16x128xf32> -> vector<16x128xf32>
    %c0_3 = arith.constant 0 : index
    %c0_4 = arith.constant 0 : index
    %4 = vector.load %arg2[%c0_3, %c0_4] : memref<16x32xf32, #tpu.memory_space<vmem>>, vector<16x32xf32>
    %5 = arith.truncf %4 : vector<16x32xf32> to vector<16x32xbf16>
    %c0_5 = arith.constant 0 : index
    %c0_6 = arith.constant 0 : index
    %6 = vector.load %arg4[%c0_5, %c0_6] : memref<32x128xbf16, #tpu.memory_space<vmem>>, vector<32x128xbf16>
    %cst_7 = arith.constant dense<0.000000e+00> : vector<16x128xf32>
    %7 = tpu.matmul %5, %6, %cst_7 {dimension_numbers = #tpu.dot_dimension_numbers<[1], [0], [0], [1], [0, 0, 1, 1], [], []>} : vector<16x32xbf16>, vector<32x128xbf16>, vector<16x128xf32> -> vector<16x128xf32>
    %8 = arith.addf %3, %7 : vector<16x128xf32>
    %c0_8 = arith.constant 0 : index
    %c0_9 = arith.constant 0 : index
    %9 = vector.load %arg5[%c0_8, %c0_9] : memref<1x128xf32, #tpu.memory_space<vmem>>, vector<1x128xf32>
    %10 = vector.broadcast %9 : vector<1x128xf32> to vector<16x128xf32>
    %11 = arith.addf %8, %10 : vector<16x128xf32>
    %cst_10 = arith.constant 0.000000e+00 : f32
    %12 = vector.broadcast %cst_10 : f32 to vector<16x128xf32>
    %13 = arith.cmpf ogt, %11, %12 : vector<16x128xf32>
    %cst_11 = arith.constant 2.000000e-01 : f32
    %14 = vector.broadcast %cst_11 : f32 to vector<16x128xf32>
    %15 = arith.mulf %14, %11 : vector<16x128xf32>
    %16 = arith.select %13, %11, %15 : vector<16x128xi1>, vector<16x128xf32>
    %c0_12 = arith.constant 0 : index
    %c0_13 = arith.constant 0 : index
    %17 = vector.load %arg6[%c0_12, %c0_13] : memref<1x128xf32, #tpu.memory_space<vmem>>, vector<1x128xf32>
    %18 = vector.broadcast %17 : vector<1x128xf32> to vector<16x128xf32>
    %19 = arith.mulf %16, %18 : vector<16x128xf32>
    %cst_14 = arith.constant dense<0.000000e+00> : vector<16xf32>
    %20 = vector.multi_reduction <add>, %19, %cst_14 [1] : vector<16x128xf32> to vector<16xf32>
    %21 = vector.shape_cast %20 : vector<16xf32> to vector<16x1xf32>
    %c0_15 = arith.constant 0 : index
    %c0_16 = arith.constant 0 : index
    %22 = vector.load %arg7[%c0_15, %c0_16] : memref<1x1xf32, #tpu.memory_space<vmem>>, vector<1x1xf32>
    %23 = vector.broadcast %22 : vector<1x1xf32> to vector<16x1xf32>
    %24 = arith.addf %21, %23 : vector<16x1xf32>
    %25 = tpu.iota {dimensions = array<i32: 0>} : vector<16x1xi32>
    %26 = tpu.iota {dimensions = array<i32: 0>} : vector<2x128xi32>
    %cst_17 = arith.constant 0.000000e+00 : f32
    %27 = vector.broadcast %cst_17 : f32 to vector<2x128xf32>
    %c0_i32 = arith.constant 0 : i32
    %28 = vector.broadcast %c0_i32 : i32 to vector<16x1xi32>
    %29 = arith.cmpi sge, %25, %28 : vector<16x1xi32>
    %c8_i32 = arith.constant 8 : i32
    %30 = vector.broadcast %c8_i32 : i32 to vector<16x1xi32>
    %31 = arith.cmpi slt, %25, %30 : vector<16x1xi32>
    %32 = arith.andi %29, %31 : vector<16x1xi1>
    %cst_18 = arith.constant 0.000000e+00 : f32
    %33 = vector.broadcast %cst_18 : f32 to vector<16x1xf32>
    %34 = arith.select %32, %24, %33 : vector<16x1xi1>, vector<16x1xf32>
    %35 = vector.shape_cast %34 : vector<16x1xf32> to vector<1x16x1xf32>
    %cst_19 = arith.constant dense<0.000000e+00> : vector<1xf32>
    %36 = vector.multi_reduction <add>, %35, %cst_19 [1, 2] : vector<1x16x1xf32> to vector<1xf32>
    %37 = vector.shape_cast %36 : vector<1xf32> to vector<1x1x1xf32>
    %38 = vector.extract %37[0, 0, 0] : f32 from vector<1x1x1xf32>
    %cst_20 = arith.constant 8.000000e+00 : f32
    %39 = arith.divf %38, %cst_20 : f32
    %c0_i32_21 = arith.constant 0 : i32
    %40 = vector.broadcast %c0_i32_21 : i32 to vector<2x128xi32>
    %41 = arith.cmpi eq, %26, %40 : vector<2x128xi32>
    %42 = vector.broadcast %39 : f32 to vector<2x128xf32>
    %43 = arith.select %41, %42, %27 : vector<2x128xi1>, vector<2x128xf32>
    %c8_i32_22 = arith.constant 8 : i32
    %44 = vector.broadcast %c8_i32_22 : i32 to vector<16x1xi32>
    %45 = arith.cmpi sge, %25, %44 : vector<16x1xi32>
    %c16_i32 = arith.constant 16 : i32
    %46 = vector.broadcast %c16_i32 : i32 to vector<16x1xi32>
    %47 = arith.cmpi slt, %25, %46 : vector<16x1xi32>
    %48 = arith.andi %45, %47 : vector<16x1xi1>
    %cst_23 = arith.constant 0.000000e+00 : f32
    %49 = vector.broadcast %cst_23 : f32 to vector<16x1xf32>
    %50 = arith.select %48, %24, %49 : vector<16x1xi1>, vector<16x1xf32>
    %51 = vector.shape_cast %50 : vector<16x1xf32> to vector<1x16x1xf32>
    %cst_24 = arith.constant dense<0.000000e+00> : vector<1xf32>
    %52 = vector.multi_reduction <add>, %51, %cst_24 [1, 2] : vector<1x16x1xf32> to vector<1xf32>
    %53 = vector.shape_cast %52 : vector<1xf32> to vector<1x1x1xf32>
    %54 = vector.extract %53[0, 0, 0] : f32 from vector<1x1x1xf32>
    %cst_25 = arith.constant 8.000000e+00 : f32
    %55 = arith.divf %54, %cst_25 : f32
    %c1_i32 = arith.constant 1 : i32
    %56 = vector.broadcast %c1_i32 : i32 to vector<2x128xi32>
    %57 = arith.cmpi eq, %26, %56 : vector<2x128xi32>
    %58 = vector.broadcast %55 : f32 to vector<2x128xf32>
    %59 = arith.select %57, %58, %43 : vector<2x128xi1>, vector<2x128xf32>
    %c0_26 = arith.constant 0 : index
    %c0_27 = arith.constant 0 : index
    %60 = vector.load %arg8[%c0_26, %c0_27] : memref<2x128xf32, #tpu.memory_space<vmem>>, vector<2x128xf32>
    tpu.vector_store %arg8[%c0_26, %c0_27], %59 {strides = array<i32>} : memref<2x128xf32, #tpu.memory_space<vmem>>, vector<2x128xf32>,
    return
  }
  func.func @transform_0(%arg0: i32) -> (i32, i32) {
    %c0_i32 = arith.constant 0 : i32
    %c0_i32_0 = arith.constant 0 : i32
    %c0_i32_1 = arith.constant 0 : i32
    return %c0_i32, %c0_i32_0 : i32, i32
  }
  func.func @transform_1(%arg0: i32) -> (i32, i32) {
    %c0_i32 = arith.constant 0 : i32
    %c0_i32_0 = arith.constant 0 : i32
    %c0_i32_1 = arith.constant 0 : i32
    return %c0_i32, %c0_i32_0 : i32, i32
  }
  func.func @transform_2(%arg0: i32) -> (i32, i32) {
    %c0_i32 = arith.constant 0 : i32
    %c0_i32_0 = arith.constant 0 : i32
    %c0_i32_1 = arith.constant 0 : i32
    return %c0_i32, %c0_i32_0 : i32, i32
  }
  func.func @transform_3(%arg0: i32) -> (i32, i32) {
    %c0_i32 = arith.constant 0 : i32
    %c0_i32_0 = arith.constant 0 : i32
    %c0_i32_1 = arith.constant 0 : i32
    return %c0_i32, %c0_i32_0 : i32, i32
  }
  func.func @transform_4(%arg0: i32) -> (i32, i32) {
    %c0_i32 = arith.constant 0 : i32
    %c0_i32_0 = arith.constant 0 : i32
    %c0_i32_1 = arith.constant 0 : i32
    return %c0_i32, %c0_i32_0 : i32, i32
  }
  func.func @transform_5(%arg0: i32) -> (i32, i32) {
    %c0_i32 = arith.constant 0 : i32
    %c0_i32_0 = arith.constant 0 : i32
    %c0_i32_1 = arith.constant 0 : i32
    return %c0_i32, %c0_i32_0 : i32, i32
  }
  func.func @transform_6(%arg0: i32) -> (i32, i32) {
    %c0_i32 = arith.constant 0 : i32
    %c0_i32_0 = arith.constant 0 : i32
    %c0_i32_1 = arith.constant 0 : i32
    return %c0_i32, %c0_i32_0 : i32, i32
  }
  func.func @transform_7(%arg0: i32) -> (i32, i32) {
    %c0_i32 = arith.constant 0 : i32
    %c0_i32_0 = arith.constant 0 : i32
    %c0_i32_1 = arith.constant 0 : i32
    return %c0_i32, %c0_i32_0 : i32, i32
  }
}

module attributes {stable_mosaic.version = 11 : i64} {
  func.func @_critic_dt_kernel(%arg0: i32, %arg1: memref<16x256xf32, #tpu.memory_space<vmem>>, %arg2: memref<16x256xf32, #tpu.memory_space<vmem>>, %arg3: memref<16x32xf32, #tpu.memory_space<vmem>>, %arg4: memref<16x16xf32, #tpu.memory_space<vmem>>, %arg5: memref<256x128xbf16, #tpu.memory_space<vmem>>, %arg6: memref<256x128xbf16, #tpu.memory_space<vmem>>, %arg7: memref<32x128xbf16, #tpu.memory_space<vmem>>, %arg8: memref<16x128xbf16, #tpu.memory_space<vmem>>, %arg9: memref<1x128xf32, #tpu.memory_space<vmem>>, %arg10: memref<1x128xf32, #tpu.memory_space<vmem>>, %arg11: memref<1x1xf32, #tpu.memory_space<vmem>>, %arg12: memref<2x128xf32, #tpu.memory_space<vmem>>) attributes {dimension_semantics = [#tpu.dimension_semantics<arbitrary>], iteration_bounds = array<i64: 1>, scalar_prefetch = 0 : i64, scratch_operands = 0 : i64, tpu.core_type = #tpu.core_type<tc>, window_params = [{pipeline_mode = #tpu.pipeline_mode<synchronous>, transform_indices = @transform_0, window_bounds = array<i64: 16, 256>}, {pipeline_mode = #tpu.pipeline_mode<synchronous>, transform_indices = @transform_1, window_bounds = array<i64: 16, 256>}, {pipeline_mode = #tpu.pipeline_mode<synchronous>, transform_indices = @transform_2, window_bounds = array<i64: 16, 32>}, {pipeline_mode = #tpu.pipeline_mode<synchronous>, transform_indices = @transform_3, window_bounds = array<i64: 16, 16>}, {pipeline_mode = #tpu.pipeline_mode<synchronous>, transform_indices = @transform_4, window_bounds = array<i64: 256, 128>}, {pipeline_mode = #tpu.pipeline_mode<synchronous>, transform_indices = @transform_5, window_bounds = array<i64: 256, 128>}, {pipeline_mode = #tpu.pipeline_mode<synchronous>, transform_indices = @transform_6, window_bounds = array<i64: 32, 128>}, {pipeline_mode = #tpu.pipeline_mode<synchronous>, transform_indices = @transform_7, window_bounds = array<i64: 16, 128>}, {pipeline_mode = #tpu.pipeline_mode<synchronous>, transform_indices = @transform_8, window_bounds = array<i64: 1, 128>}, {pipeline_mode = #tpu.pipeline_mode<synchronous>, transform_indices = @transform_9, window_bounds = array<i64: 1, 128>}, {pipeline_mode = #tpu.pipeline_mode<synchronous>, transform_indices = @transform_10, window_bounds = array<i64: 1, 1>}, {pipeline_mode = #tpu.pipeline_mode<synchronous>, transform_indices = @transform_11, window_bounds = array<i64: 2, 128>}]} {
    %c0 = arith.constant 0 : index
    %c0_0 = arith.constant 0 : index
    %0 = vector.load %arg1[%c0, %c0_0] : memref<16x256xf32, #tpu.memory_space<vmem>>, vector<16x256xf32>
    %1 = arith.truncf %0 : vector<16x256xf32> to vector<16x256xbf16>
    %c0_1 = arith.constant 0 : index
    %c0_2 = arith.constant 0 : index
    %2 = vector.load %arg5[%c0_1, %c0_2] : memref<256x128xbf16, #tpu.memory_space<vmem>>, vector<256x128xbf16>
    %cst = arith.constant dense<0.000000e+00> : vector<16x128xf32>
    %3 = tpu.matmul %1, %2, %cst {dimension_numbers = #tpu.dot_dimension_numbers<[1], [0], [0], [1], [0, 0, 1, 1], [], []>} : vector<16x256xbf16>, vector<256x128xbf16>, vector<16x128xf32> -> vector<16x128xf32>
    %c0_3 = arith.constant 0 : index
    %c0_4 = arith.constant 0 : index
    %4 = vector.load %arg2[%c0_3, %c0_4] : memref<16x256xf32, #tpu.memory_space<vmem>>, vector<16x256xf32>
    %5 = arith.truncf %4 : vector<16x256xf32> to vector<16x256xbf16>
    %c0_5 = arith.constant 0 : index
    %c0_6 = arith.constant 0 : index
    %6 = vector.load %arg6[%c0_5, %c0_6] : memref<256x128xbf16, #tpu.memory_space<vmem>>, vector<256x128xbf16>
    %cst_7 = arith.constant dense<0.000000e+00> : vector<16x128xf32>
    %7 = tpu.matmul %5, %6, %cst_7 {dimension_numbers = #tpu.dot_dimension_numbers<[1], [0], [0], [1], [0, 0, 1, 1], [], []>} : vector<16x256xbf16>, vector<256x128xbf16>, vector<16x128xf32> -> vector<16x128xf32>
    %8 = arith.addf %3, %7 : vector<16x128xf32>
    %c0_8 = arith.constant 0 : index
    %c0_9 = arith.constant 0 : index
    %9 = vector.load %arg3[%c0_8, %c0_9] : memref<16x32xf32, #tpu.memory_space<vmem>>, vector<16x32xf32>
    %10 = arith.truncf %9 : vector<16x32xf32> to vector<16x32xbf16>
    %c0_10 = arith.constant 0 : index
    %c0_11 = arith.constant 0 : index
    %11 = vector.load %arg7[%c0_10, %c0_11] : memref<32x128xbf16, #tpu.memory_space<vmem>>, vector<32x128xbf16>
    %cst_12 = arith.constant dense<0.000000e+00> : vector<16x128xf32>
    %12 = tpu.matmul %10, %11, %cst_12 {dimension_numbers = #tpu.dot_dimension_numbers<[1], [0], [0], [1], [0, 0, 1, 1], [], []>} : vector<16x32xbf16>, vector<32x128xbf16>, vector<16x128xf32> -> vector<16x128xf32>
    %13 = arith.addf %8, %12 : vector<16x128xf32>
    %c0_13 = arith.constant 0 : index
    %c0_14 = arith.constant 0 : index
    %14 = vector.load %arg4[%c0_13, %c0_14] : memref<16x16xf32, #tpu.memory_space<vmem>>, vector<16x16xf32>
    %15 = arith.truncf %14 : vector<16x16xf32> to vector<16x16xbf16>
    %c0_15 = arith.constant 0 : index
    %c0_16 = arith.constant 0 : index
    %16 = vector.load %arg8[%c0_15, %c0_16] : memref<16x128xbf16, #tpu.memory_space<vmem>>, vector<16x128xbf16>
    %cst_17 = arith.constant dense<0.000000e+00> : vector<16x128xf32>
    %17 = tpu.matmul %15, %16, %cst_17 {dimension_numbers = #tpu.dot_dimension_numbers<[1], [0], [0], [1], [0, 0, 1, 1], [], []>} : vector<16x16xbf16>, vector<16x128xbf16>, vector<16x128xf32> -> vector<16x128xf32>
    %18 = arith.addf %13, %17 : vector<16x128xf32>
    %c0_18 = arith.constant 0 : index
    %c0_19 = arith.constant 0 : index
    %19 = vector.load %arg9[%c0_18, %c0_19] : memref<1x128xf32, #tpu.memory_space<vmem>>, vector<1x128xf32>
    %20 = vector.broadcast %19 : vector<1x128xf32> to vector<16x128xf32>
    %21 = arith.addf %18, %20 : vector<16x128xf32>
    %cst_20 = arith.constant 0.000000e+00 : f32
    %22 = vector.broadcast %cst_20 : f32 to vector<16x128xf32>
    %23 = arith.cmpf ogt, %21, %22 : vector<16x128xf32>
    %cst_21 = arith.constant 2.000000e-01 : f32
    %24 = vector.broadcast %cst_21 : f32 to vector<16x128xf32>
    %25 = arith.mulf %24, %21 : vector<16x128xf32>
    %26 = arith.select %23, %21, %25 : vector<16x128xi1>, vector<16x128xf32>
    %c0_22 = arith.constant 0 : index
    %c0_23 = arith.constant 0 : index
    %27 = vector.load %arg10[%c0_22, %c0_23] : memref<1x128xf32, #tpu.memory_space<vmem>>, vector<1x128xf32>
    %28 = vector.broadcast %27 : vector<1x128xf32> to vector<16x128xf32>
    %29 = arith.mulf %26, %28 : vector<16x128xf32>
    %cst_24 = arith.constant dense<0.000000e+00> : vector<16xf32>
    %30 = vector.multi_reduction <add>, %29, %cst_24 [1] : vector<16x128xf32> to vector<16xf32>
    %31 = vector.shape_cast %30 : vector<16xf32> to vector<16x1xf32>
    %c0_25 = arith.constant 0 : index
    %c0_26 = arith.constant 0 : index
    %32 = vector.load %arg11[%c0_25, %c0_26] : memref<1x1xf32, #tpu.memory_space<vmem>>, vector<1x1xf32>
    %33 = vector.broadcast %32 : vector<1x1xf32> to vector<16x1xf32>
    %34 = arith.addf %31, %33 : vector<16x1xf32>
    %35 = tpu.iota {dimensions = array<i32: 0>} : vector<16x1xi32>
    %36 = tpu.iota {dimensions = array<i32: 0>} : vector<2x128xi32>
    %cst_27 = arith.constant 0.000000e+00 : f32
    %37 = vector.broadcast %cst_27 : f32 to vector<2x128xf32>
    %c0_i32 = arith.constant 0 : i32
    %38 = vector.broadcast %c0_i32 : i32 to vector<16x1xi32>
    %39 = arith.cmpi sge, %35, %38 : vector<16x1xi32>
    %c8_i32 = arith.constant 8 : i32
    %40 = vector.broadcast %c8_i32 : i32 to vector<16x1xi32>
    %41 = arith.cmpi slt, %35, %40 : vector<16x1xi32>
    %42 = arith.andi %39, %41 : vector<16x1xi1>
    %cst_28 = arith.constant 0.000000e+00 : f32
    %43 = vector.broadcast %cst_28 : f32 to vector<16x1xf32>
    %44 = arith.select %42, %34, %43 : vector<16x1xi1>, vector<16x1xf32>
    %45 = vector.shape_cast %44 : vector<16x1xf32> to vector<1x16x1xf32>
    %cst_29 = arith.constant dense<0.000000e+00> : vector<1xf32>
    %46 = vector.multi_reduction <add>, %45, %cst_29 [1, 2] : vector<1x16x1xf32> to vector<1xf32>
    %47 = vector.shape_cast %46 : vector<1xf32> to vector<1x1x1xf32>
    %48 = vector.extract %47[0, 0, 0] : f32 from vector<1x1x1xf32>
    %cst_30 = arith.constant 8.000000e+00 : f32
    %49 = arith.divf %48, %cst_30 : f32
    %c0_i32_31 = arith.constant 0 : i32
    %50 = vector.broadcast %c0_i32_31 : i32 to vector<2x128xi32>
    %51 = arith.cmpi eq, %36, %50 : vector<2x128xi32>
    %52 = vector.broadcast %49 : f32 to vector<2x128xf32>
    %53 = arith.select %51, %52, %37 : vector<2x128xi1>, vector<2x128xf32>
    %c8_i32_32 = arith.constant 8 : i32
    %54 = vector.broadcast %c8_i32_32 : i32 to vector<16x1xi32>
    %55 = arith.cmpi sge, %35, %54 : vector<16x1xi32>
    %c16_i32 = arith.constant 16 : i32
    %56 = vector.broadcast %c16_i32 : i32 to vector<16x1xi32>
    %57 = arith.cmpi slt, %35, %56 : vector<16x1xi32>
    %58 = arith.andi %55, %57 : vector<16x1xi1>
    %cst_33 = arith.constant 0.000000e+00 : f32
    %59 = vector.broadcast %cst_33 : f32 to vector<16x1xf32>
    %60 = arith.select %58, %34, %59 : vector<16x1xi1>, vector<16x1xf32>
    %61 = vector.shape_cast %60 : vector<16x1xf32> to vector<1x16x1xf32>
    %cst_34 = arith.constant dense<0.000000e+00> : vector<1xf32>
    %62 = vector.multi_reduction <add>, %61, %cst_34 [1, 2] : vector<1x16x1xf32> to vector<1xf32>
    %63 = vector.shape_cast %62 : vector<1xf32> to vector<1x1x1xf32>
    %64 = vector.extract %63[0, 0, 0] : f32 from vector<1x1x1xf32>
    %cst_35 = arith.constant 8.000000e+00 : f32
    %65 = arith.divf %64, %cst_35 : f32
    %c1_i32 = arith.constant 1 : i32
    %66 = vector.broadcast %c1_i32 : i32 to vector<2x128xi32>
    %67 = arith.cmpi eq, %36, %66 : vector<2x128xi32>
    %68 = vector.broadcast %65 : f32 to vector<2x128xf32>
    %69 = arith.select %67, %68, %53 : vector<2x128xi1>, vector<2x128xf32>
    %c0_36 = arith.constant 0 : index
    %c0_37 = arith.constant 0 : index
    %70 = vector.load %arg12[%c0_36, %c0_37] : memref<2x128xf32, #tpu.memory_space<vmem>>, vector<2x128xf32>
    tpu.vector_store %arg12[%c0_36, %c0_37], %69 {strides = array<i32>} : memref<2x128xf32, #tpu.memory_space<vmem>>, vector<2x128xf32>,
    return
  }
  func.func @transform_0(%arg0: i32) -> (i32, i32) {
    %c0_i32 = arith.constant 0 : i32
    %c0_i32_0 = arith.constant 0 : i32
    %c0_i32_1 = arith.constant 0 : i32
    return %c0_i32, %c0_i32_0 : i32, i32
  }
  func.func @transform_1(%arg0: i32) -> (i32, i32) {
    %c0_i32 = arith.constant 0 : i32
    %c0_i32_0 = arith.constant 0 : i32
    %c0_i32_1 = arith.constant 0 : i32
    return %c0_i32, %c0_i32_0 : i32, i32
  }
  func.func @transform_2(%arg0: i32) -> (i32, i32) {
    %c0_i32 = arith.constant 0 : i32
    %c0_i32_0 = arith.constant 0 : i32
    %c0_i32_1 = arith.constant 0 : i32
    return %c0_i32, %c0_i32_0 : i32, i32
  }
  func.func @transform_3(%arg0: i32) -> (i32, i32) {
    %c0_i32 = arith.constant 0 : i32
    %c0_i32_0 = arith.constant 0 : i32
    %c0_i32_1 = arith.constant 0 : i32
    return %c0_i32, %c0_i32_0 : i32, i32
  }
  func.func @transform_4(%arg0: i32) -> (i32, i32) {
    %c0_i32 = arith.constant 0 : i32
    %c0_i32_0 = arith.constant 0 : i32
    %c0_i32_1 = arith.constant 0 : i32
    return %c0_i32, %c0_i32_0 : i32, i32
  }
  func.func @transform_5(%arg0: i32) -> (i32, i32) {
    %c0_i32 = arith.constant 0 : i32
    %c0_i32_0 = arith.constant 0 : i32
    %c0_i32_1 = arith.constant 0 : i32
    return %c0_i32, %c0_i32_0 : i32, i32
  }
  func.func @transform_6(%arg0: i32) -> (i32, i32) {
    %c0_i32 = arith.constant 0 : i32
    %c0_i32_0 = arith.constant 0 : i32
    %c0_i32_1 = arith.constant 0 : i32
    return %c0_i32, %c0_i32_0 : i32, i32
  }
  func.func @transform_7(%arg0: i32) -> (i32, i32) {
    %c0_i32 = arith.constant 0 : i32
    %c0_i32_0 = arith.constant 0 : i32
    %c0_i32_1 = arith.constant 0 : i32
    return %c0_i32, %c0_i32_0 : i32, i32
  }
  func.func @transform_8(%arg0: i32) -> (i32, i32) {
    %c0_i32 = arith.constant 0 : i32
    %c0_i32_0 = arith.constant 0 : i32
    %c0_i32_1 = arith.constant 0 : i32
    return %c0_i32, %c0_i32_0 : i32, i32
  }
  func.func @transform_9(%arg0: i32) -> (i32, i32) {
    %c0_i32 = arith.constant 0 : i32
    %c0_i32_0 = arith.constant 0 : i32
    %c0_i32_1 = arith.constant 0 : i32
    return %c0_i32, %c0_i32_0 : i32, i32
  }
  func.func @transform_10(%arg0: i32) -> (i32, i32) {
    %c0_i32 = arith.constant 0 : i32
    %c0_i32_0 = arith.constant 0 : i32
    %c0_i32_1 = arith.constant 0 : i32
    return %c0_i32, %c0_i32_0 : i32, i32
  }
  func.func @transform_11(%arg0: i32) -> (i32, i32) {
    %c0_i32 = arith.constant 0 : i32
    %c0_i32_0 = arith.constant 0 : i32
    %c0_i32_1 = arith.constant 0 : i32
    return %c0_i32, %c0_i32_0 : i32, i32
  }
}

module attributes {stable_mosaic.version = 11 : i64} {
  func.func @_critic_d0_kernel(%arg0: i32, %arg1: memref<8x256xf32, #tpu.memory_space<vmem>>, %arg2: memref<8x32xf32, #tpu.memory_space<vmem>>, %arg3: memref<256x128xbf16, #tpu.memory_space<vmem>>, %arg4: memref<32x128xbf16, #tpu.memory_space<vmem>>, %arg5: memref<1x128xf32, #tpu.memory_space<vmem>>, %arg6: memref<1x128xf32, #tpu.memory_space<vmem>>, %arg7: memref<1x1xf32, #tpu.memory_space<vmem>>, %arg8: memref<1x128xf32, #tpu.memory_space<vmem>>) attributes {dimension_semantics = [#tpu.dimension_semantics<arbitrary>], iteration_bounds = array<i64: 1>, scalar_prefetch = 0 : i64, scratch_operands = 0 : i64, tpu.core_type = #tpu.core_type<tc>, window_params = [{pipeline_mode = #tpu.pipeline_mode<synchronous>, transform_indices = @transform_0, window_bounds = array<i64: 8, 256>}, {pipeline_mode = #tpu.pipeline_mode<synchronous>, transform_indices = @transform_1, window_bounds = array<i64: 8, 32>}, {pipeline_mode = #tpu.pipeline_mode<synchronous>, transform_indices = @transform_2, window_bounds = array<i64: 256, 128>}, {pipeline_mode = #tpu.pipeline_mode<synchronous>, transform_indices = @transform_3, window_bounds = array<i64: 32, 128>}, {pipeline_mode = #tpu.pipeline_mode<synchronous>, transform_indices = @transform_4, window_bounds = array<i64: 1, 128>}, {pipeline_mode = #tpu.pipeline_mode<synchronous>, transform_indices = @transform_5, window_bounds = array<i64: 1, 128>}, {pipeline_mode = #tpu.pipeline_mode<synchronous>, transform_indices = @transform_6, window_bounds = array<i64: 1, 1>}, {pipeline_mode = #tpu.pipeline_mode<synchronous>, transform_indices = @transform_7, window_bounds = array<i64: 1, 128>}]} {
    %c0 = arith.constant 0 : index
    %c0_0 = arith.constant 0 : index
    %0 = vector.load %arg1[%c0, %c0_0] : memref<8x256xf32, #tpu.memory_space<vmem>>, vector<8x256xf32>
    %1 = arith.truncf %0 : vector<8x256xf32> to vector<8x256xbf16>
    %c0_1 = arith.constant 0 : index
    %c0_2 = arith.constant 0 : index
    %2 = vector.load %arg3[%c0_1, %c0_2] : memref<256x128xbf16, #tpu.memory_space<vmem>>, vector<256x128xbf16>
    %cst = arith.constant dense<0.000000e+00> : vector<8x128xf32>
    %3 = tpu.matmul %1, %2, %cst {dimension_numbers = #tpu.dot_dimension_numbers<[1], [0], [0], [1], [0, 0, 1, 1], [], []>} : vector<8x256xbf16>, vector<256x128xbf16>, vector<8x128xf32> -> vector<8x128xf32>
    %c0_3 = arith.constant 0 : index
    %c0_4 = arith.constant 0 : index
    %4 = vector.load %arg2[%c0_3, %c0_4] : memref<8x32xf32, #tpu.memory_space<vmem>>, vector<8x32xf32>
    %5 = arith.truncf %4 : vector<8x32xf32> to vector<8x32xbf16>
    %c0_5 = arith.constant 0 : index
    %c0_6 = arith.constant 0 : index
    %6 = vector.load %arg4[%c0_5, %c0_6] : memref<32x128xbf16, #tpu.memory_space<vmem>>, vector<32x128xbf16>
    %cst_7 = arith.constant dense<0.000000e+00> : vector<8x128xf32>
    %7 = tpu.matmul %5, %6, %cst_7 {dimension_numbers = #tpu.dot_dimension_numbers<[1], [0], [0], [1], [0, 0, 1, 1], [], []>} : vector<8x32xbf16>, vector<32x128xbf16>, vector<8x128xf32> -> vector<8x128xf32>
    %8 = arith.addf %3, %7 : vector<8x128xf32>
    %c0_8 = arith.constant 0 : index
    %c0_9 = arith.constant 0 : index
    %9 = vector.load %arg5[%c0_8, %c0_9] : memref<1x128xf32, #tpu.memory_space<vmem>>, vector<1x128xf32>
    %10 = vector.broadcast %9 : vector<1x128xf32> to vector<8x128xf32>
    %11 = arith.addf %8, %10 : vector<8x128xf32>
    %cst_10 = arith.constant 0.000000e+00 : f32
    %12 = vector.broadcast %cst_10 : f32 to vector<8x128xf32>
    %13 = arith.cmpf ogt, %11, %12 : vector<8x128xf32>
    %cst_11 = arith.constant 2.000000e-01 : f32
    %14 = vector.broadcast %cst_11 : f32 to vector<8x128xf32>
    %15 = arith.mulf %14, %11 : vector<8x128xf32>
    %16 = arith.select %13, %11, %15 : vector<8x128xi1>, vector<8x128xf32>
    %c0_12 = arith.constant 0 : index
    %c0_13 = arith.constant 0 : index
    %17 = vector.load %arg6[%c0_12, %c0_13] : memref<1x128xf32, #tpu.memory_space<vmem>>, vector<1x128xf32>
    %18 = vector.broadcast %17 : vector<1x128xf32> to vector<8x128xf32>
    %19 = arith.mulf %16, %18 : vector<8x128xf32>
    %cst_14 = arith.constant dense<0.000000e+00> : vector<8xf32>
    %20 = vector.multi_reduction <add>, %19, %cst_14 [1] : vector<8x128xf32> to vector<8xf32>
    %21 = vector.shape_cast %20 : vector<8xf32> to vector<8x1xf32>
    %c0_15 = arith.constant 0 : index
    %c0_16 = arith.constant 0 : index
    %22 = vector.load %arg7[%c0_15, %c0_16] : memref<1x1xf32, #tpu.memory_space<vmem>>, vector<1x1xf32>
    %23 = vector.broadcast %22 : vector<1x1xf32> to vector<8x1xf32>
    %24 = arith.addf %21, %23 : vector<8x1xf32>
    %25 = tpu.iota {dimensions = array<i32: 0>} : vector<8x1xi32>
    %26 = tpu.iota {dimensions = array<i32: 0>} : vector<1x128xi32>
    %cst_17 = arith.constant 0.000000e+00 : f32
    %27 = vector.broadcast %cst_17 : f32 to vector<1x128xf32>
    %c0_i32 = arith.constant 0 : i32
    %28 = vector.broadcast %c0_i32 : i32 to vector<8x1xi32>
    %29 = arith.cmpi sge, %25, %28 : vector<8x1xi32>
    %c8_i32 = arith.constant 8 : i32
    %30 = vector.broadcast %c8_i32 : i32 to vector<8x1xi32>
    %31 = arith.cmpi slt, %25, %30 : vector<8x1xi32>
    %32 = arith.andi %29, %31 : vector<8x1xi1>
    %cst_18 = arith.constant 0.000000e+00 : f32
    %33 = vector.broadcast %cst_18 : f32 to vector<8x1xf32>
    %34 = arith.select %32, %24, %33 : vector<8x1xi1>, vector<8x1xf32>
    %35 = vector.shape_cast %34 : vector<8x1xf32> to vector<1x8x1xf32>
    %cst_19 = arith.constant dense<0.000000e+00> : vector<1xf32>
    %36 = vector.multi_reduction <add>, %35, %cst_19 [1, 2] : vector<1x8x1xf32> to vector<1xf32>
    %37 = vector.shape_cast %36 : vector<1xf32> to vector<1x1x1xf32>
    %38 = vector.extract %37[0, 0, 0] : f32 from vector<1x1x1xf32>
    %cst_20 = arith.constant 8.000000e+00 : f32
    %39 = arith.divf %38, %cst_20 : f32
    %c0_i32_21 = arith.constant 0 : i32
    %40 = vector.broadcast %c0_i32_21 : i32 to vector<1x128xi32>
    %41 = arith.cmpi eq, %26, %40 : vector<1x128xi32>
    %42 = vector.broadcast %39 : f32 to vector<1x128xf32>
    %43 = arith.select %41, %42, %27 : vector<1x128xi1>, vector<1x128xf32>
    %c0_22 = arith.constant 0 : index
    %c0_23 = arith.constant 0 : index
    %44 = vector.load %arg8[%c0_22, %c0_23] : memref<1x128xf32, #tpu.memory_space<vmem>>, vector<1x128xf32>
    tpu.vector_store %arg8[%c0_22, %c0_23], %43 {strides = array<i32>} : memref<1x128xf32, #tpu.memory_space<vmem>>, vector<1x128xf32>,
    return
  }
  func.func @transform_0(%arg0: i32) -> (i32, i32) {
    %c0_i32 = arith.constant 0 : i32
    %c0_i32_0 = arith.constant 0 : i32
    %c0_i32_1 = arith.constant 0 : i32
    return %c0_i32, %c0_i32_0 : i32, i32
  }
  func.func @transform_1(%arg0: i32) -> (i32, i32) {
    %c0_i32 = arith.constant 0 : i32
    %c0_i32_0 = arith.constant 0 : i32
    %c0_i32_1 = arith.constant 0 : i32
    return %c0_i32, %c0_i32_0 : i32, i32
  }
  func.func @transform_2(%arg0: i32) -> (i32, i32) {
    %c0_i32 = arith.constant 0 : i32
    %c0_i32_0 = arith.constant 0 : i32
    %c0_i32_1 = arith.constant 0 : i32
    return %c0_i32, %c0_i32_0 : i32, i32
  }
  func.func @transform_3(%arg0: i32) -> (i32, i32) {
    %c0_i32 = arith.constant 0 : i32
    %c0_i32_0 = arith.constant 0 : i32
    %c0_i32_1 = arith.constant 0 : i32
    return %c0_i32, %c0_i32_0 : i32, i32
  }
  func.func @transform_4(%arg0: i32) -> (i32, i32) {
    %c0_i32 = arith.constant 0 : i32
    %c0_i32_0 = arith.constant 0 : i32
    %c0_i32_1 = arith.constant 0 : i32
    return %c0_i32, %c0_i32_0 : i32, i32
  }
  func.func @transform_5(%arg0: i32) -> (i32, i32) {
    %c0_i32 = arith.constant 0 : i32
    %c0_i32_0 = arith.constant 0 : i32
    %c0_i32_1 = arith.constant 0 : i32
    return %c0_i32, %c0_i32_0 : i32, i32
  }
  func.func @transform_6(%arg0: i32) -> (i32, i32) {
    %c0_i32 = arith.constant 0 : i32
    %c0_i32_0 = arith.constant 0 : i32
    %c0_i32_1 = arith.constant 0 : i32
    return %c0_i32, %c0_i32_0 : i32, i32
  }
  func.func @transform_7(%arg0: i32) -> (i32, i32) {
    %c0_i32 = arith.constant 0 : i32
    %c0_i32_0 = arith.constant 0 : i32
    %c0_i32_1 = arith.constant 0 : i32
    return %c0_i32, %c0_i32_0 : i32, i32
  }
}

module attributes {stable_mosaic.version = 11 : i64} {
  func.func @_dec_mse_kernel(%arg0: i32, %arg1: memref<8x256xf32, #tpu.memory_space<vmem>>, %arg2: memref<8x32xf32, #tpu.memory_space<vmem>>, %arg3: memref<256x128xbf16, #tpu.memory_space<vmem>>, %arg4: memref<1x128xf32, #tpu.memory_space<vmem>>, %arg5: memref<128x32xbf16, #tpu.memory_space<vmem>>, %arg6: memref<1x32xf32, #tpu.memory_space<vmem>>, %arg7: memref<1x128xf32, #tpu.memory_space<vmem>>) attributes {dimension_semantics = [#tpu.dimension_semantics<arbitrary>], iteration_bounds = array<i64: 1>, scalar_prefetch = 0 : i64, scratch_operands = 0 : i64, tpu.core_type = #tpu.core_type<tc>, window_params = [{pipeline_mode = #tpu.pipeline_mode<synchronous>, transform_indices = @transform_0, window_bounds = array<i64: 8, 256>}, {pipeline_mode = #tpu.pipeline_mode<synchronous>, transform_indices = @transform_1, window_bounds = array<i64: 8, 32>}, {pipeline_mode = #tpu.pipeline_mode<synchronous>, transform_indices = @transform_2, window_bounds = array<i64: 256, 128>}, {pipeline_mode = #tpu.pipeline_mode<synchronous>, transform_indices = @transform_3, window_bounds = array<i64: 1, 128>}, {pipeline_mode = #tpu.pipeline_mode<synchronous>, transform_indices = @transform_4, window_bounds = array<i64: 128, 32>}, {pipeline_mode = #tpu.pipeline_mode<synchronous>, transform_indices = @transform_5, window_bounds = array<i64: 1, 32>}, {pipeline_mode = #tpu.pipeline_mode<synchronous>, transform_indices = @transform_6, window_bounds = array<i64: 1, 128>}]} {
    %c0 = arith.constant 0 : index
    %c0_0 = arith.constant 0 : index
    %0 = vector.load %arg1[%c0, %c0_0] : memref<8x256xf32, #tpu.memory_space<vmem>>, vector<8x256xf32>
    %1 = arith.truncf %0 : vector<8x256xf32> to vector<8x256xbf16>
    %c0_1 = arith.constant 0 : index
    %c0_2 = arith.constant 0 : index
    %2 = vector.load %arg3[%c0_1, %c0_2] : memref<256x128xbf16, #tpu.memory_space<vmem>>, vector<256x128xbf16>
    %cst = arith.constant dense<0.000000e+00> : vector<8x128xf32>
    %3 = tpu.matmul %1, %2, %cst {dimension_numbers = #tpu.dot_dimension_numbers<[1], [0], [0], [1], [0, 0, 1, 1], [], []>} : vector<8x256xbf16>, vector<256x128xbf16>, vector<8x128xf32> -> vector<8x128xf32>
    %c0_3 = arith.constant 0 : index
    %c0_4 = arith.constant 0 : index
    %4 = vector.load %arg4[%c0_3, %c0_4] : memref<1x128xf32, #tpu.memory_space<vmem>>, vector<1x128xf32>
    %5 = vector.broadcast %4 : vector<1x128xf32> to vector<8x128xf32>
    %6 = arith.addf %3, %5 : vector<8x128xf32>
    %cst_5 = arith.constant 0.000000e+00 : f32
    %7 = vector.broadcast %cst_5 : f32 to vector<8x128xf32>
    %8 = arith.cmpf ogt, %6, %7 : vector<8x128xf32>
    %cst_6 = arith.constant 2.000000e-01 : f32
    %9 = vector.broadcast %cst_6 : f32 to vector<8x128xf32>
    %10 = arith.mulf %9, %6 : vector<8x128xf32>
    %11 = arith.select %8, %6, %10 : vector<8x128xi1>, vector<8x128xf32>
    %12 = arith.truncf %11 : vector<8x128xf32> to vector<8x128xbf16>
    %c0_7 = arith.constant 0 : index
    %c0_8 = arith.constant 0 : index
    %13 = vector.load %arg5[%c0_7, %c0_8] : memref<128x32xbf16, #tpu.memory_space<vmem>>, vector<128x32xbf16>
    %cst_9 = arith.constant dense<0.000000e+00> : vector<8x32xf32>
    %14 = tpu.matmul %12, %13, %cst_9 {dimension_numbers = #tpu.dot_dimension_numbers<[1], [0], [0], [1], [0, 0, 1, 1], [], []>} : vector<8x128xbf16>, vector<128x32xbf16>, vector<8x32xf32> -> vector<8x32xf32>
    %c0_10 = arith.constant 0 : index
    %c0_11 = arith.constant 0 : index
    %15 = vector.load %arg6[%c0_10, %c0_11] : memref<1x32xf32, #tpu.memory_space<vmem>>, vector<1x32xf32>
    %16 = vector.broadcast %15 : vector<1x32xf32> to vector<8x32xf32>
    %17 = arith.addf %14, %16 : vector<8x32xf32>
    %c0_12 = arith.constant 0 : index
    %c0_13 = arith.constant 0 : index
    %18 = vector.load %arg2[%c0_12, %c0_13] : memref<8x32xf32, #tpu.memory_space<vmem>>, vector<8x32xf32>
    %19 = arith.subf %17, %18 : vector<8x32xf32>
    %cst_14 = arith.constant 0.000000e+00 : f32
    %20 = vector.broadcast %cst_14 : f32 to vector<1x128xf32>
    %21 = arith.mulf %19, %19 : vector<8x32xf32>
    %22 = vector.shape_cast %21 : vector<8x32xf32> to vector<1x8x32xf32>
    %cst_15 = arith.constant dense<0.000000e+00> : vector<1xf32>
    %23 = vector.multi_reduction <add>, %22, %cst_15 [1, 2] : vector<1x8x32xf32> to vector<1xf32>
    %24 = vector.shape_cast %23 : vector<1xf32> to vector<1x1x1xf32>
    %25 = vector.extract %24[0, 0, 0] : f32 from vector<1x1x1xf32>
    %cst_16 = arith.constant 2.560000e+02 : f32
    %26 = arith.divf %25, %cst_16 : f32
    %27 = vector.broadcast %26 : f32 to vector<1x128xf32>
    %28 = arith.addf %20, %27 : vector<1x128xf32>
    %c0_17 = arith.constant 0 : index
    %c0_18 = arith.constant 0 : index
    %29 = vector.load %arg7[%c0_17, %c0_18] : memref<1x128xf32, #tpu.memory_space<vmem>>, vector<1x128xf32>
    tpu.vector_store %arg7[%c0_17, %c0_18], %28 {strides = array<i32>} : memref<1x128xf32, #tpu.memory_space<vmem>>, vector<1x128xf32>,
    return
  }
  func.func @transform_0(%arg0: i32) -> (i32, i32) {
    %c0_i32 = arith.constant 0 : i32
    %c0_i32_0 = arith.constant 0 : i32
    %c0_i32_1 = arith.constant 0 : i32
    return %c0_i32, %c0_i32_0 : i32, i32
  }
  func.func @transform_1(%arg0: i32) -> (i32, i32) {
    %c0_i32 = arith.constant 0 : i32
    %c0_i32_0 = arith.constant 0 : i32
    %c0_i32_1 = arith.constant 0 : i32
    return %c0_i32, %c0_i32_0 : i32, i32
  }
  func.func @transform_2(%arg0: i32) -> (i32, i32) {
    %c0_i32 = arith.constant 0 : i32
    %c0_i32_0 = arith.constant 0 : i32
    %c0_i32_1 = arith.constant 0 : i32
    return %c0_i32, %c0_i32_0 : i32, i32
  }
  func.func @transform_3(%arg0: i32) -> (i32, i32) {
    %c0_i32 = arith.constant 0 : i32
    %c0_i32_0 = arith.constant 0 : i32
    %c0_i32_1 = arith.constant 0 : i32
    return %c0_i32, %c0_i32_0 : i32, i32
  }
  func.func @transform_4(%arg0: i32) -> (i32, i32) {
    %c0_i32 = arith.constant 0 : i32
    %c0_i32_0 = arith.constant 0 : i32
    %c0_i32_1 = arith.constant 0 : i32
    return %c0_i32, %c0_i32_0 : i32, i32
  }
  func.func @transform_5(%arg0: i32) -> (i32, i32) {
    %c0_i32 = arith.constant 0 : i32
    %c0_i32_0 = arith.constant 0 : i32
    %c0_i32_1 = arith.constant 0 : i32
    return %c0_i32, %c0_i32_0 : i32, i32
  }
  func.func @transform_6(%arg0: i32) -> (i32, i32) {
    %c0_i32 = arith.constant 0 : i32
    %c0_i32_0 = arith.constant 0 : i32
    %c0_i32_1 = arith.constant 0 : i32
    return %c0_i32, %c0_i32_0 : i32, i32
  }
}

module attributes {stable_mosaic.version = 11 : i64} {
  func.func @_critic_dt_kernel(%arg0: i32, %arg1: memref<8x256xf32, #tpu.memory_space<vmem>>, %arg2: memref<8x256xf32, #tpu.memory_space<vmem>>, %arg3: memref<8x32xf32, #tpu.memory_space<vmem>>, %arg4: memref<8x16xf32, #tpu.memory_space<vmem>>, %arg5: memref<256x128xbf16, #tpu.memory_space<vmem>>, %arg6: memref<256x128xbf16, #tpu.memory_space<vmem>>, %arg7: memref<32x128xbf16, #tpu.memory_space<vmem>>, %arg8: memref<16x128xbf16, #tpu.memory_space<vmem>>, %arg9: memref<1x128xf32, #tpu.memory_space<vmem>>, %arg10: memref<1x128xf32, #tpu.memory_space<vmem>>, %arg11: memref<1x1xf32, #tpu.memory_space<vmem>>, %arg12: memref<1x128xf32, #tpu.memory_space<vmem>>) attributes {dimension_semantics = [#tpu.dimension_semantics<arbitrary>], iteration_bounds = array<i64: 1>, scalar_prefetch = 0 : i64, scratch_operands = 0 : i64, tpu.core_type = #tpu.core_type<tc>, window_params = [{pipeline_mode = #tpu.pipeline_mode<synchronous>, transform_indices = @transform_0, window_bounds = array<i64: 8, 256>}, {pipeline_mode = #tpu.pipeline_mode<synchronous>, transform_indices = @transform_1, window_bounds = array<i64: 8, 256>}, {pipeline_mode = #tpu.pipeline_mode<synchronous>, transform_indices = @transform_2, window_bounds = array<i64: 8, 32>}, {pipeline_mode = #tpu.pipeline_mode<synchronous>, transform_indices = @transform_3, window_bounds = array<i64: 8, 16>}, {pipeline_mode = #tpu.pipeline_mode<synchronous>, transform_indices = @transform_4, window_bounds = array<i64: 256, 128>}, {pipeline_mode = #tpu.pipeline_mode<synchronous>, transform_indices = @transform_5, window_bounds = array<i64: 256, 128>}, {pipeline_mode = #tpu.pipeline_mode<synchronous>, transform_indices = @transform_6, window_bounds = array<i64: 32, 128>}, {pipeline_mode = #tpu.pipeline_mode<synchronous>, transform_indices = @transform_7, window_bounds = array<i64: 16, 128>}, {pipeline_mode = #tpu.pipeline_mode<synchronous>, transform_indices = @transform_8, window_bounds = array<i64: 1, 128>}, {pipeline_mode = #tpu.pipeline_mode<synchronous>, transform_indices = @transform_9, window_bounds = array<i64: 1, 128>}, {pipeline_mode = #tpu.pipeline_mode<synchronous>, transform_indices = @transform_10, window_bounds = array<i64: 1, 1>}, {pipeline_mode = #tpu.pipeline_mode<synchronous>, transform_indices = @transform_11, window_bounds = array<i64: 1, 128>}]} {
    %c0 = arith.constant 0 : index
    %c0_0 = arith.constant 0 : index
    %0 = vector.load %arg1[%c0, %c0_0] : memref<8x256xf32, #tpu.memory_space<vmem>>, vector<8x256xf32>
    %1 = arith.truncf %0 : vector<8x256xf32> to vector<8x256xbf16>
    %c0_1 = arith.constant 0 : index
    %c0_2 = arith.constant 0 : index
    %2 = vector.load %arg5[%c0_1, %c0_2] : memref<256x128xbf16, #tpu.memory_space<vmem>>, vector<256x128xbf16>
    %cst = arith.constant dense<0.000000e+00> : vector<8x128xf32>
    %3 = tpu.matmul %1, %2, %cst {dimension_numbers = #tpu.dot_dimension_numbers<[1], [0], [0], [1], [0, 0, 1, 1], [], []>} : vector<8x256xbf16>, vector<256x128xbf16>, vector<8x128xf32> -> vector<8x128xf32>
    %c0_3 = arith.constant 0 : index
    %c0_4 = arith.constant 0 : index
    %4 = vector.load %arg2[%c0_3, %c0_4] : memref<8x256xf32, #tpu.memory_space<vmem>>, vector<8x256xf32>
    %5 = arith.truncf %4 : vector<8x256xf32> to vector<8x256xbf16>
    %c0_5 = arith.constant 0 : index
    %c0_6 = arith.constant 0 : index
    %6 = vector.load %arg6[%c0_5, %c0_6] : memref<256x128xbf16, #tpu.memory_space<vmem>>, vector<256x128xbf16>
    %cst_7 = arith.constant dense<0.000000e+00> : vector<8x128xf32>
    %7 = tpu.matmul %5, %6, %cst_7 {dimension_numbers = #tpu.dot_dimension_numbers<[1], [0], [0], [1], [0, 0, 1, 1], [], []>} : vector<8x256xbf16>, vector<256x128xbf16>, vector<8x128xf32> -> vector<8x128xf32>
    %8 = arith.addf %3, %7 : vector<8x128xf32>
    %c0_8 = arith.constant 0 : index
    %c0_9 = arith.constant 0 : index
    %9 = vector.load %arg3[%c0_8, %c0_9] : memref<8x32xf32, #tpu.memory_space<vmem>>, vector<8x32xf32>
    %10 = arith.truncf %9 : vector<8x32xf32> to vector<8x32xbf16>
    %c0_10 = arith.constant 0 : index
    %c0_11 = arith.constant 0 : index
    %11 = vector.load %arg7[%c0_10, %c0_11] : memref<32x128xbf16, #tpu.memory_space<vmem>>, vector<32x128xbf16>
    %cst_12 = arith.constant dense<0.000000e+00> : vector<8x128xf32>
    %12 = tpu.matmul %10, %11, %cst_12 {dimension_numbers = #tpu.dot_dimension_numbers<[1], [0], [0], [1], [0, 0, 1, 1], [], []>} : vector<8x32xbf16>, vector<32x128xbf16>, vector<8x128xf32> -> vector<8x128xf32>
    %13 = arith.addf %8, %12 : vector<8x128xf32>
    %c0_13 = arith.constant 0 : index
    %c0_14 = arith.constant 0 : index
    %14 = vector.load %arg4[%c0_13, %c0_14] : memref<8x16xf32, #tpu.memory_space<vmem>>, vector<8x16xf32>
    %15 = arith.truncf %14 : vector<8x16xf32> to vector<8x16xbf16>
    %c0_15 = arith.constant 0 : index
    %c0_16 = arith.constant 0 : index
    %16 = vector.load %arg8[%c0_15, %c0_16] : memref<16x128xbf16, #tpu.memory_space<vmem>>, vector<16x128xbf16>
    %cst_17 = arith.constant dense<0.000000e+00> : vector<8x128xf32>
    %17 = tpu.matmul %15, %16, %cst_17 {dimension_numbers = #tpu.dot_dimension_numbers<[1], [0], [0], [1], [0, 0, 1, 1], [], []>} : vector<8x16xbf16>, vector<16x128xbf16>, vector<8x128xf32> -> vector<8x128xf32>
    %18 = arith.addf %13, %17 : vector<8x128xf32>
    %c0_18 = arith.constant 0 : index
    %c0_19 = arith.constant 0 : index
    %19 = vector.load %arg9[%c0_18, %c0_19] : memref<1x128xf32, #tpu.memory_space<vmem>>, vector<1x128xf32>
    %20 = vector.broadcast %19 : vector<1x128xf32> to vector<8x128xf32>
    %21 = arith.addf %18, %20 : vector<8x128xf32>
    %cst_20 = arith.constant 0.000000e+00 : f32
    %22 = vector.broadcast %cst_20 : f32 to vector<8x128xf32>
    %23 = arith.cmpf ogt, %21, %22 : vector<8x128xf32>
    %cst_21 = arith.constant 2.000000e-01 : f32
    %24 = vector.broadcast %cst_21 : f32 to vector<8x128xf32>
    %25 = arith.mulf %24, %21 : vector<8x128xf32>
    %26 = arith.select %23, %21, %25 : vector<8x128xi1>, vector<8x128xf32>
    %c0_22 = arith.constant 0 : index
    %c0_23 = arith.constant 0 : index
    %27 = vector.load %arg10[%c0_22, %c0_23] : memref<1x128xf32, #tpu.memory_space<vmem>>, vector<1x128xf32>
    %28 = vector.broadcast %27 : vector<1x128xf32> to vector<8x128xf32>
    %29 = arith.mulf %26, %28 : vector<8x128xf32>
    %cst_24 = arith.constant dense<0.000000e+00> : vector<8xf32>
    %30 = vector.multi_reduction <add>, %29, %cst_24 [1] : vector<8x128xf32> to vector<8xf32>
    %31 = vector.shape_cast %30 : vector<8xf32> to vector<8x1xf32>
    %c0_25 = arith.constant 0 : index
    %c0_26 = arith.constant 0 : index
    %32 = vector.load %arg11[%c0_25, %c0_26] : memref<1x1xf32, #tpu.memory_space<vmem>>, vector<1x1xf32>
    %33 = vector.broadcast %32 : vector<1x1xf32> to vector<8x1xf32>
    %34 = arith.addf %31, %33 : vector<8x1xf32>
    %35 = tpu.iota {dimensions = array<i32: 0>} : vector<8x1xi32>
    %36 = tpu.iota {dimensions = array<i32: 0>} : vector<1x128xi32>
    %cst_27 = arith.constant 0.000000e+00 : f32
    %37 = vector.broadcast %cst_27 : f32 to vector<1x128xf32>
    %c0_i32 = arith.constant 0 : i32
    %38 = vector.broadcast %c0_i32 : i32 to vector<8x1xi32>
    %39 = arith.cmpi sge, %35, %38 : vector<8x1xi32>
    %c8_i32 = arith.constant 8 : i32
    %40 = vector.broadcast %c8_i32 : i32 to vector<8x1xi32>
    %41 = arith.cmpi slt, %35, %40 : vector<8x1xi32>
    %42 = arith.andi %39, %41 : vector<8x1xi1>
    %cst_28 = arith.constant 0.000000e+00 : f32
    %43 = vector.broadcast %cst_28 : f32 to vector<8x1xf32>
    %44 = arith.select %42, %34, %43 : vector<8x1xi1>, vector<8x1xf32>
    %45 = vector.shape_cast %44 : vector<8x1xf32> to vector<1x8x1xf32>
    %cst_29 = arith.constant dense<0.000000e+00> : vector<1xf32>
    %46 = vector.multi_reduction <add>, %45, %cst_29 [1, 2] : vector<1x8x1xf32> to vector<1xf32>
    %47 = vector.shape_cast %46 : vector<1xf32> to vector<1x1x1xf32>
    %48 = vector.extract %47[0, 0, 0] : f32 from vector<1x1x1xf32>
    %cst_30 = arith.constant 8.000000e+00 : f32
    %49 = arith.divf %48, %cst_30 : f32
    %c0_i32_31 = arith.constant 0 : i32
    %50 = vector.broadcast %c0_i32_31 : i32 to vector<1x128xi32>
    %51 = arith.cmpi eq, %36, %50 : vector<1x128xi32>
    %52 = vector.broadcast %49 : f32 to vector<1x128xf32>
    %53 = arith.select %51, %52, %37 : vector<1x128xi1>, vector<1x128xf32>
    %c0_32 = arith.constant 0 : index
    %c0_33 = arith.constant 0 : index
    %54 = vector.load %arg12[%c0_32, %c0_33] : memref<1x128xf32, #tpu.memory_space<vmem>>, vector<1x128xf32>
    tpu.vector_store %arg12[%c0_32, %c0_33], %53 {strides = array<i32>} : memref<1x128xf32, #tpu.memory_space<vmem>>, vector<1x128xf32>,
    return
  }
  func.func @transform_0(%arg0: i32) -> (i32, i32) {
    %c0_i32 = arith.constant 0 : i32
    %c0_i32_0 = arith.constant 0 : i32
    %c0_i32_1 = arith.constant 0 : i32
    return %c0_i32, %c0_i32_0 : i32, i32
  }
  func.func @transform_1(%arg0: i32) -> (i32, i32) {
    %c0_i32 = arith.constant 0 : i32
    %c0_i32_0 = arith.constant 0 : i32
    %c0_i32_1 = arith.constant 0 : i32
    return %c0_i32, %c0_i32_0 : i32, i32
  }
  func.func @transform_2(%arg0: i32) -> (i32, i32) {
    %c0_i32 = arith.constant 0 : i32
    %c0_i32_0 = arith.constant 0 : i32
    %c0_i32_1 = arith.constant 0 : i32
    return %c0_i32, %c0_i32_0 : i32, i32
  }
  func.func @transform_3(%arg0: i32) -> (i32, i32) {
    %c0_i32 = arith.constant 0 : i32
    %c0_i32_0 = arith.constant 0 : i32
    %c0_i32_1 = arith.constant 0 : i32
    return %c0_i32, %c0_i32_0 : i32, i32
  }
  func.func @transform_4(%arg0: i32) -> (i32, i32) {
    %c0_i32 = arith.constant 0 : i32
    %c0_i32_0 = arith.constant 0 : i32
    %c0_i32_1 = arith.constant 0 : i32
    return %c0_i32, %c0_i32_0 : i32, i32
  }
  func.func @transform_5(%arg0: i32) -> (i32, i32) {
    %c0_i32 = arith.constant 0 : i32
    %c0_i32_0 = arith.constant 0 : i32
    %c0_i32_1 = arith.constant 0 : i32
    return %c0_i32, %c0_i32_0 : i32, i32
  }
  func.func @transform_6(%arg0: i32) -> (i32, i32) {
    %c0_i32 = arith.constant 0 : i32
    %c0_i32_0 = arith.constant 0 : i32
    %c0_i32_1 = arith.constant 0 : i32
    return %c0_i32, %c0_i32_0 : i32, i32
  }
  func.func @transform_7(%arg0: i32) -> (i32, i32) {
    %c0_i32 = arith.constant 0 : i32
    %c0_i32_0 = arith.constant 0 : i32
    %c0_i32_1 = arith.constant 0 : i32
    return %c0_i32, %c0_i32_0 : i32, i32
  }
  func.func @transform_8(%arg0: i32) -> (i32, i32) {
    %c0_i32 = arith.constant 0 : i32
    %c0_i32_0 = arith.constant 0 : i32
    %c0_i32_1 = arith.constant 0 : i32
    return %c0_i32, %c0_i32_0 : i32, i32
  }
  func.func @transform_9(%arg0: i32) -> (i32, i32) {
    %c0_i32 = arith.constant 0 : i32
    %c0_i32_0 = arith.constant 0 : i32
    %c0_i32_1 = arith.constant 0 : i32
    return %c0_i32, %c0_i32_0 : i32, i32
  }
  func.func @transform_10(%arg0: i32) -> (i32, i32) {
    %c0_i32 = arith.constant 0 : i32
    %c0_i32_0 = arith.constant 0 : i32
    %c0_i32_1 = arith.constant 0 : i32
    return %c0_i32, %c0_i32_0 : i32, i32
  }
  func.func @transform_11(%arg0: i32) -> (i32, i32) {
    %c0_i32 = arith.constant 0 : i32
    %c0_i32_0 = arith.constant 0 : i32
    %c0_i32_1 = arith.constant 0 : i32
    return %c0_i32, %c0_i32_0 : i32, i32
  }
}

</mosaic_0001>

<bundles_post_ra>
// kernel: custom-call.36
= control target key start
LH: loop header
LB: loop body
LE: loop exit
PB: predicated region body
PF: predicated region fallthrough
CT: control target
= control target key end

     0   :  { %s6_s0 = inlined_call_operand.hbm [shape: f32[8,256], index: 0, kind: output, shape index: {}]  }

// kernel: custom-call.37
= control target key start
LH: loop header
LB: loop body
LE: loop exit
PB: predicated region body
PF: predicated region fallthrough
CT: control target
= control target key end

     0   :  { %s6_s0 = inlined_call_operand.hbm [shape: f32[8,32], index: 0, kind: output, shape index: {}]  }

// kernel: closed_call.33
= control target key start
LH: loop header
LB: loop body
LE: loop exit
PB: predicated region body
PF: predicated region fallthrough
CT: control target
= control target key end

     0   :  { %v85_v0 = vmov 0   ;;  %s173_s5 = inlined_call_operand.vmem [shape: f32[8,1], index: 5, kind: input, shape index: {}]   ;;  %s174_s3 = inlined_call_operand.vmem [shape: f32[8,1], index: 3, kind: input, shape index: {}]   ;;  %s175_s6 = inlined_call_operand.vmem [shape: f32[8,1], index: 6, kind: input, shape index: {}]   ;;  %s176_s4 = inlined_call_operand.vmem [shape: f32[8,1], index: 4, kind: input, shape index: {}]   ;;  %s177_s0 = inlined_call_operand.vmem [shape: f32[8,256], index: 0, kind: input, shape index: {}]   ;;  %s178_s1 = inlined_call_operand.vmem [shape: f32[8,256], index: 1, kind: input, shape index: {}]   ;;  %s179_s2 = inlined_call_operand.vmem [shape: f32[8,256], index: 2, kind: input, shape index: {}]   ;;  %s180_s7 = inlined_call_operand.vmem [shape: f32[8,256], index: 7, kind: output, shape index: {0}]   ;;  %s181_s8 = inlined_call_operand.vmem [shape: f32[8,256], index: 8, kind: output, shape index: {1}]  }
   0x1   :  { %84 = vset.pattern.permute.xlu1 %v85_v0  ;;  %83 = vset.pattern.permute.xlu0 %v85_v0  ;;  %v52_v1 = vld [vmem:[%s173_s5] sm:$0xff]  ;;  %v30_v8 = vld [vmem:[%s177_s0 + $0x8] sm:$0xff] }
   0x2   :  { %v28_v2 = vld [vmem:[%s174_s3] sm:$0xff]  ;;  %55 = vperm.xlu1 %84, %v52_v1   ;;  %v40_v10 = vld [vmem:[%s178_s1 + $0x8] sm:$0xff] }
   0x3   :  { %33 = vperm.xlu0 %83, %v28_v2   ;;  %v60_v3 = vld [vmem:[%s175_s6] sm:$0xff]  ;;  %v62_v18 = vld [vmem:[%s179_s2 + $0x8] sm:$0xff] }
   0x4   :  { %v38_v4 = vld [vmem:[%s176_s4] sm:$0xff] }
   0x5   :  { %v29_v7 = vld [vmem:[%s177_s0] sm:$0xff] }
   0x6   :  { %65 = vperm.xlu1 %84, %v60_v3   ;;  %v39_v9 = vld [vmem:[%s178_s1] sm:$0xff] }
   0x7   :  { %43 = vperm.xlu0 %83, %v38_v4   ;;  %v61_v17 = vld [vmem:[%s179_s2] sm:$0xff] }
  0x7d   :  { %v56_v5 = vpop.permute.xlu1 %55 }
  0x7e   :  { %v34_v6 = vpop.permute.xlu0 %33 }
  0x7f   :  { %v36_v12 = vmul.f32 %v34_v6, %v29_v7  ;;  %v37_v13 = vmul.f32 %v34_v6, %v30_v8 }
  0x81   :  { %v66_v16 = vpop.permute.xlu1 %65 }
  0x82   :  { %v44_v11 = vpop.permute.xlu0 %43  ;;  %v68_v21 = vmul.f32 %v66_v16, %v61_v17  ;;  %v69_v22 = vmul.f32 %v66_v16, %v62_v18 }
  0x83   :  { %v46_v14 = vmul.f32 %v44_v11, %v39_v9  ;;  %v47_v15 = vmul.f32 %v44_v11, %v40_v10 }
  0x85   :  { %v48_v19 = vadd.f32 %v46_v14, %v36_v12  ;;  %v49_v20 = vadd.f32 %v47_v15, %v37_v13 }
  0x87   :  { %50 = vst [vmem:[%s180_s7] sm:$0xff] %v48_v19  ;;  %51 = vst [vmem:[%s180_s7 + $0x8] sm:$0xff] %v49_v20  ;;  %v58_v23 = vmul.f32 %v56_v5, %v48_v19  ;;  %v59_v24 = vmul.f32 %v56_v5, %v49_v20 }
  0x89   :  { %v70_v25 = vadd.f32 %v68_v21, %v58_v23  ;;  %v71_v26 = vadd.f32 %v69_v22, %v59_v24 }
  0x8b   :  { %72 = vst [vmem:[%s181_s8] sm:$0xff] %v70_v25  ;;  %73 = vst [vmem:[%s181_s8 + $0x8] sm:$0xff] %v71_v26 }

// kernel: closed_call.35
= control target key start
LH: loop header
LB: loop body
LE: loop exit
PB: predicated region body
PF: predicated region fallthrough
CT: control target
= control target key end

     0   :  { %v445_v1 = vmov 0.0   ;;  %vm446_vm0 = vmmov 0   ;;  %vm86_vm1 = vcmask 261120   ;;  %vm316_vm4 = vcmask 7168   ;;  %s571_s2 = inlined_call_operand.vmem [shape: bf16[256,128], index: 2, kind: input, shape index: {}]   ;;  %s572_s3 = inlined_call_operand.vmem [shape: bf16[32,128], index: 3, kind: input, shape index: {}]   ;;  %s573_s1 = inlined_call_operand.vmem [shape: f32[16,32], index: 1, kind: input, shape index: {}]   ;;  %s574_s0 = inlined_call_operand.vmem [shape: f32[16,256], index: 0, kind: input, shape index: {}]   ;;  %s575_s6 = inlined_call_operand.<no memory space> [shape: f32[1,1], index: 6, kind: input, shape index: {}]   ;;  %s576_s4 = inlined_call_operand.vmem [shape: f32[1,128], index: 4, kind: input, shape index: {}]   ;;  %s577_s5 = inlined_call_operand.vmem [shape: f32[1,128], index: 5, kind: input, shape index: {}]   ;;  %s578_s7 = inlined_call_operand.vmem [shape: f32[2,128], index: 7, kind: output, shape index: {}]  }
   0x1   :  { %v427_v0 = vld [vmem:[%s571_s2 + $0x78] sm:$0xff]   ;;  %413 = vmatprep.subr.bf16.mxu0 %v445_v1  ;;  %417 = vmatprep.mubr.msk.bf16.mxu0 %vm446_vm0, %v445_v1  ;;  %v429_v3 = vld [vmem:[%s571_s2 + $0x70] sm:$0xff]   ;;  %v431_v5 = vld [vmem:[%s571_s2 + $0x68] sm:$0xff]   ;;  %v12_v28 = vstv %s575_s6 }
   0x2   :  { %v428_v2 = vld [vmem:[%s571_s2 + $0x38] sm:$0xff]   ;;  %391 = vmatprep.subr.bf16.mxu1 %v427_v0  ;;  %v430_v4 = vld [vmem:[%s571_s2 + $0x30] sm:$0xff]   ;;  %v432_v6 = vld [vmem:[%s571_s2 + $0x28] sm:$0xff]   ;;  %13 = vst [vmem:[#allocation2] sm:$0x1] %v12_v28 }
   0x3   :  { %392 = vmatpush3.bf16.msra.mxu1 %v428_v2  ;;  %v433_v7 = vld [vmem:[%s571_s2 + $0x60] sm:$0xff]   ;;  %v435_v9 = vld [vmem:[%s571_s2 + $0x58] sm:$0xff]   ;;  %v439_v10 = vld [vmem:[%s572_s3 + $0x8] sm:$0xff]  }
   0x4   :  { %393 = vmatprep.subr.bf16.mxu1 %v429_v3  ;;  %v434_v8 = vld [vmem:[%s571_s2 + $0x20] sm:$0xff]   ;;  %v436_v11 = vld [vmem:[%s571_s2 + $0x18] sm:$0xff]   ;;  %414 = vmatpush3.bf16.msra.mxu0 %v439_v10  ;;  %v437_v13 = vld [vmem:[%s571_s2 + $0x50] sm:$0xff]  }
   0x5   :  { %415 = vmatprep.subr.bf16.mxu0 %v445_v1  ;;  %v442_v12 = vld [vmem:[%s572_s3] sm:$0xff]   ;;  %v68_v15 = vld [vmem:[%s573_s1 + $0x8] sm:$0xff]  ;;  %v438_v17 = vld [vmem:[%s571_s2 + $0x10] sm:$0xff]  }
   0x6   :  { %v67_v14 = vld [vmem:[%s573_s1] sm:$0xff]  ;;  %v30_v16 = vld [vmem:[%s574_s0 + $0x8] sm:$0xff]  ;;  %v32_v19 = vld [vmem:[%s574_s0 + $0x18] sm:$0xff] }
   0x7   :  { %394 = vmatpush3.bf16.msra.mxu1 %v430_v4  ;;  %v69_v18 = vpack.c.bf16 %v68_v15, %v67_v14  ;;  %v440_v20 = vld [vmem:[%s571_s2 + $0x48] sm:$0xff]   ;;  %v34_v21 = vpack.c.bf16 %v32_v19, %v30_v16  ;;  %v443_v23 = vld [vmem:[%s571_s2 + $0x40] sm:$0xff]   ;;  %v31_v26 = vld [vmem:[%s574_s0 + $0x10] sm:$0xff] }
   0x8   :  { %395 = vmatprep.subr.bf16.mxu1 %v431_v5  ;;  %416 = vmatpush3.bf16.msra.mxu0 %v442_v12  ;;  %v441_v22 = vld [vmem:[%s571_s2 + $0x8] sm:$0xff]   ;;  %v444_v24 = vld [vmem:[%s571_s2] sm:$0xff]  }
   0x9   :  { %259 = vmatprep.mubr.bf16.mxu1 %v34_v21  ;;  %v29_v25 = vld [vmem:[%s574_s0] sm:$0xff] }
   0xa   :  { %v33_v27 = vpack.c.bf16 %v31_v26, %v29_v25  ;;  %v385_v36 = vld [vmem:[%s576_s4] ss:$0 sm:$0xff] }
   0xb   :  { %396 = vmatpush3.bf16.msra.mxu1 %v432_v6  ;;  %418 = vmatmul.mubr.msk.bf16.vlgmr.msra.gmra.mxu0 %vm86_vm1, %v69_v18  ;;  %v386_v44 = vld [vmem:[%s577_s5] ss:$0 sm:$0xff] }
   0xc   :  { %397 = vmatprep.subr.bf16.mxu1 %v433_v7  ;;  %v387_v51 = vld [vmem:[#allocation2] ss:$0 sm:$0xff] }
   0xf   :  { %398 = vmatpush3.bf16.msra.mxu1 %v434_v8  ;;  %v305_v8 = vlaneseq }
  0x10   :  { %399 = vmatprep.subr.bf16.mxu1 %v435_v9 }
  0x11   :  { %v306_v9 = vshrl.u32 %v305_v8, 7 }
  0x13   :  { %400 = vmatpush3.bf16.msra.mxu1 %v436_v11  ;;  %vm332_vm5 = vcmp.eq.s32.totalorder %v306_v9, 0  ;;  %vm358_vm6 = vcmp.eq.s32.totalorder %v306_v9, 1 }
  0x14   :  { %401 = vmatprep.subr.bf16.mxu1 %v437_v13 }
  0x17   :  { %402 = vmatpush3.bf16.msra.mxu1 %v438_v17 }
  0x18   :  { %403 = vmatprep.subr.bf16.mxu1 %v440_v20 }
  0x1b   :  { %404 = vmatpush3.bf16.msra.mxu1 %v441_v22 }
  0x1c   :  { %405 = vmatprep.subr.bf16.mxu1 %v443_v23 }
  0x1f   :  { %406 = vmatpush3.bf16.msra.mxu1 %v444_v24 }
  0x22   :  { %260 = vmatmul.mubr.bf16.vlgmr.msra.gmra.mxu1 %v33_v27 }
  0xcb   :  { %v124_v29 = vpop.f32.mrf.mxu0 }
  0xcd   :  { %v419_v30 = vpop.f32.mrf.mxu0 }
  0xcf   :  { %v127_v31 = vpop.f32.mrf.mxu0 }
  0xd1   :  { %v420_v32 = vpop.f32.mrf.mxu0 }
  0xe2   :  { %v407_v33 = vpop.f32.mrf.mxu1 }
  0xe4   :  { %v408_v34 = vpop.f32.mrf.mxu1 }
  0xe5   :  { %v409_v35 = vadd.f32 %v408_v34, %v407_v33 }
  0xe6   :  { %v410_v37 = vpop.f32.mrf.mxu1 }
  0xe7   :  { %v262_v38 = vadd.f32 %v409_v35, %v124_v29 }
  0xe8   :  { %v411_v39 = vpop.f32.mrf.mxu1 }
  0xe9   :  { %v275_v40 = vadd.f32 %v385_v36, %v262_v38  ;;  %v412_v41 = vadd.f32 %v411_v39, %v410_v37 }
  0xeb   :  { %v265_v42 = vadd.f32 %v412_v41, %v127_v31  ;;  %vm277_vm2 = vcmp.gt.f32.partialorder %v275_v40, 0.0  ;;  %v279_v43 = vmul.f32 0.2, %v275_v40 }
  0xed   :  { %v276_v45 = vadd.f32 %v385_v36, %v265_v42  ;;  %v281_v46 = vsel %vm277_vm2, %v275_v40, %v279_v43 }
  0xee   :  { %v290_v47 = vmul.f32 %v386_v44, %v281_v46 }
  0xef   :  { %vm278_vm3 = vcmp.gt.f32.partialorder %v276_v45, 0.0  ;;  %v280_v48 = vmul.f32 0.2, %v276_v45 }
  0xf0   :  { %292 = vadd.xlane.f32.xlu0 %v290_v47 }
  0xf1   :  { %v282_v49 = vsel %vm278_vm3, %v276_v45, %v280_v48 }
  0xf2   :  { %v291_v50 = vmul.f32 %v386_v44, %v282_v49 }
  0xf4   :  { %294 = vadd.xlane.f32.xlu0 %v291_v50 }
 0x179   :  { %v293_v52 = vpop.xlane.xlu0 %292 }
 0x17a   :  { %v303_v53 = vadd.f32 %v387_v51, %v293_v52 }
 0x17c   :  { %v317_v54 = vsel %vm316_vm4, %v303_v53, 0.0 }
 0x17d   :  { %320 = vadd.xlane.f32.xlu1 %v317_v54  ;;  %v295_v55 = vpop.xlane.xlu0 %294 }
 0x17e   :  { %v304_v56 = vadd.f32 %v387_v51, %v295_v55 }
 0x180   :  { %v344_v57 = vsel %vm316_vm4, %v304_v56, 0.0 }
 0x181   :  { %346 = vadd.xlane.f32.xlu1 %v344_v57 }
 0x206   :  { %v321_v58 = vpop.xlane.xlu1 %320 }
 0x207   :  { %v322_v59 = vrot.slane %v321_v58, 4 }
 0x209   :  { %v323_v60 = vadd.f32 %v322_v59, %v321_v58 }
 0x20a   :  { %v347_v61 = vpop.xlane.xlu1 %346 }
 0x20b   :  { %v324_v62 = vrot.slane %v323_v60, 2  ;;  %v348_v63 = vrot.slane %v347_v61, 4 }
 0x20d   :  { %v349_v0 = vadd.f32 %v348_v63, %v347_v61  ;;  %v325_v1 = vadd.f32 %v324_v62, %v323_v60 }
 0x20f   :  { %v350_v2 = vrot.slane %v349_v0, 2  ;;  %v326_v3 = vrot.slane %v325_v1, 1 }
 0x211   :  { %v351_v4 = vadd.f32 %v350_v2, %v349_v0  ;;  %v327_v5 = vadd.f32 %v326_v3, %v325_v1 }
 0x213   :  { %421 = vpush %v327_v5  ;;  %v352_v6 = vrot.slane %v351_v4, 1 }
 0x215   :  { %v353_v7 = vadd.f32 %v352_v6, %v351_v4 }
 0x217   :  { %423 = vpush %v353_v7 }
 0x244   :  { %s422_s4 = spop %421 }
 0x245   :  { %s331_s5 = smul.f32 0.125, %s422_s4 }
 0x247   :  { %v333_v10 = vstv %s331_s5 }
 0x248   :  { %s424_s27 = spop %423  ;;  %v334_v11 = vsel %vm332_vm5, %v333_v10, 0.0 }
 0x249   :  { %s357_s28 = smul.f32 0.125, %s424_s27 }
 0x24b   :  { %v359_v12 = vstv %s357_s28 }
 0x24c   :  { %v360_v13 = vsel %vm358_vm6, %v359_v12, %v334_v11 }
 0x24d   :  { %361 = vst [vmem:[%s578_s7] sm:$0x3] %v360_v13 }

// kernel: closed_call.34
= control target key start
LH: loop header
LB: loop body
LE: loop exit
PB: predicated region body
PF: predicated region fallthrough
CT: control target
= control target key end

     0   :  { %v754_v0 = vmov 0.0   ;;  %vm755_vm0 = vmmov 0   ;;  %vm131_vm1 = vcmask 130048   ;;  %vm81_vm2 = vcmask 261120   ;;  %s1029_s11 = inlined_call_operand.vmem [shape: bf16[32,128], index: 11, kind: input, shape index: {}]   ;;  %s1030_s10 = inlined_call_operand.vmem [shape: bf16[16,128], index: 10, kind: input, shape index: {}]   ;;  %s1031_s0 = inlined_call_operand.vmem [shape: f32[8,16], index: 0, kind: input, shape index: {}]   ;;  %s1032_s12 = inlined_call_operand.vmem [shape: bf16[256,128], index: 12, kind: input, shape index: {}]   ;;  %s1033_s1 = inlined_call_operand.vmem [shape: f32[8,32], index: 1, kind: input, shape index: {}]   ;;  %s1034_s2 = inlined_call_operand.vmem [shape: f32[8,256], index: 2, kind: input, shape index: {}]   ;;  %s1035_s13 = inlined_call_operand.vmem [shape: bf16[16,128], index: 13, kind: input, shape index: {}]   ;;  %s1036_s3 = inlined_call_operand.vmem [shape: f32[8,16], index: 3, kind: input, shape index: {}]   ;;  %s1037_s15 = inlined_call_operand.vmem [shape: bf16[128,256], index: 15, kind: input, shape index: {}]   ;;  %s1038_s6 = inlined_call_operand.vmem [shape: f32[8,1], index: 6, kind: input, shape index: {}]   ;;  %s1039_s7 = inlined_call_operand.vmem [shape: f32[8,1], index: 7, kind: input, shape index: {}]   ;;  %s1040_s8 = inlined_call_operand.vmem [shape: f32[8,1], index: 8, kind: input, shape index: {}]   ;;  %s1041_s9 = inlined_call_operand.vmem [shape: f32[8,1], index: 9, kind: input, shape index: {}]   ;;  %s1042_s14 = inlined_call_operand.vmem [shape: f32[1,128], index: 14, kind: input, shape index: {}]   ;;  %s1043_s16 = inlined_call_operand.vmem [shape: f32[1,256], index: 16, kind: input, shape index: {}]   ;;  %s1044_s4 = inlined_call_operand.vmem [shape: f32[8,256], index: 4, kind: input, shape index: {}]   ;;  %s1045_s5 = inlined_call_operand.vmem [shape: f32[8,256], index: 5, kind: input, shape index: {}]   ;;  %s1046_s17 = inlined_call_operand.vmem [shape: f32[8,256], index: 17, kind: output, shape index: {0}]   ;;  %s1047_s18 = inlined_call_operand.vmem [shape: f32[8,256], index: 18, kind: output, shape index: {1}]  }
   0x1   :  { %1049 = sst [smem:[#allocation2_spill]] %s1029_s11  ;;  %683 = vmatprep.subr.bf16.mxu0 %v754_v0  ;;  %691 = vmatprep.subr.bf16.mxu1 %v754_v0  ;;  %v710_v5 = vld [vmem:[%s1032_s12 + $0x78] sm:$0xff]   ;;  %v63_v8 = vld [vmem:[%s1033_s1] sm:$0xff]  ;;  %v713_v10 = vld [vmem:[%s1032_s12 + $0x70] sm:$0xff]   ;;  %v756_v47 = vmov 0  }
   0x2   :  { %1050 = sst [smem:[#allocation3_spill]] %s1030_s10  ;;  %693 = vmatprep.mubr.msk.bf16.mxu1 %vm755_vm0, %v754_v0  ;;  %687 = vmatprep.mubr.msk.bf16.mxu0 %vm755_vm0, %v754_v0  ;;  %v712_v7 = vld [vmem:[%s1032_s12 + $0x38] sm:$0xff]   ;;  %v64_v9 = vpack.c.bf16 %v63_v8, %v63_v8  ;;  %v714_v11 = vld [vmem:[%s1032_s12 + $0x30] sm:$0xff]   ;;  %v715_v12 = vld [vmem:[%s1032_s12 + $0x68] sm:$0xff]  }
   0x3   :  { %1051 = sst [smem:[#allocation4_spill]] %s1031_s0  ;;  %v716_v13 = vld [vmem:[%s1032_s12 + $0x28] sm:$0xff]   ;;  %v717_v14 = vld [vmem:[%s1032_s12 + $0x60] sm:$0xff]   ;;  %v719_v16 = vld [vmem:[%s1032_s12 + $0x58] sm:$0xff]   ;;  %706 = vset.pattern.permute.xlu0 %v756_v47  ;;  %707 = vset.pattern.permute.xlu1 %v756_v47 }
   0x4   :  { %s1052_s29 = sld [smem:[#allocation2_spill]]  ;;  %v718_v15 = vld [vmem:[%s1032_s12 + $0x20] sm:$0xff]   ;;  %v720_v17 = vld [vmem:[%s1032_s12 + $0x18] sm:$0xff]   ;;  %v721_v18 = vld [vmem:[%s1032_s12 + $0x50] sm:$0xff]  }
   0x5   :  { %s1053_s19 = sld [smem:[#allocation3_spill]]  ;;  %v176_v19 = vld [vmem:[%s1034_s2 + $0x8] sm:$0xff]  ;;  %v722_v21 = vld [vmem:[%s1032_s12 + $0x10] sm:$0xff]   ;;  %v725_v24 = vld [vmem:[%s1032_s12 + $0x40] sm:$0xff]  }
   0x6   :  { %s1054_s21 = sld [smem:[#allocation4_spill]]  ;;  %v178_v20 = vpack.c.bf16 %v176_v19, %v176_v19  ;;  %v723_v22 = vld [vmem:[%s1032_s12 + $0x48] sm:$0xff]   ;;  %v726_v25 = vld [vmem:[%s1032_s12] sm:$0xff]   ;;  %v728_v31 = vld [vmem:[%s1037_s15 + $0x70] ss:$8 sps:$4 sm:$0xff]  }
   0x7   :  { %v724_v23 = vld [vmem:[%s1032_s12 + $0x8] sm:$0xff]   ;;  %v175_v26 = vld [vmem:[%s1034_s2] sm:$0xff]  ;;  %v730_v32 = vld [vmem:[%s1037_s15 + $0x74] ss:$8 sps:$4 sm:$0xff]  }
   0x8   :  { %v177_v27 = vpack.c.bf16 %v175_v26, %v175_v26  ;;  %v727_v28 = vld [vmem:[%s1035_s13] sm:$0xff]   ;;  %v736_v35 = vld [vmem:[%s1037_s15 + $0x54] ss:$8 sps:$4 sm:$0xff]   ;;  %v734_v36 = vld [vmem:[%s1037_s15 + $0x50] ss:$8 sps:$4 sm:$0xff]  }
   0x9   :  { %v348_v29 = vld [vmem:[%s1036_s3] sm:$0xff]  ;;  %v742_v39 = vld [vmem:[%s1037_s15 + $0x34] ss:$8 sps:$4 sm:$0xff]   ;;  %v740_v40 = vld [vmem:[%s1037_s15 + $0x30] ss:$8 sps:$4 sm:$0xff]  }
   0xa   :  { %v708_v1 = vld [vmem:[%s1052_s29 + $0x8] sm:$0xff]   ;;  %v711_v6 = vld [vmem:[%s1052_s29] sm:$0xff]   ;;  %v349_v30 = vpack.c.bf16 %v348_v29, %v348_v29  ;;  %v748_v43 = vld [vmem:[%s1037_s15 + $0x14] ss:$8 sps:$4 sm:$0xff]  }
   0xb   :  { %v709_v2 = vld [vmem:[%s1053_s19] sm:$0xff]   ;;  %684 = vmatpush3.bf16.msra.mxu0 %v708_v1  ;;  %v746_v44 = vld [vmem:[%s1037_s15 + $0x10] ss:$8 sps:$4 sm:$0xff]  }
   0xc   :  { %v59_v3 = vld [vmem:[%s1054_s21] sm:$0xff]  ;;  %692 = vmatpush3.bf16.msra.mxu1 %v709_v2  ;;  %685 = vmatprep.subr.bf16.mxu0 %v754_v0 }
   0xd   :  { %v60_v4 = vpack.c.bf16 %v59_v3, %v59_v3  ;;  %659 = vmatprep.subr.bf16.mxu1 %v710_v5  ;;  %v733_v33 = vld [vmem:[%s1037_s15 + $0x64] ss:$8 sps:$4 sm:$0xff]   ;;  %v731_v34 = vld [vmem:[%s1037_s15 + $0x60] ss:$8 sps:$4 sm:$0xff]  }
   0xe   :  { %v739_v37 = vld [vmem:[%s1037_s15 + $0x44] ss:$8 sps:$4 sm:$0xff]   ;;  %v737_v38 = vld [vmem:[%s1037_s15 + $0x40] ss:$8 sps:$4 sm:$0xff]  }
   0xf   :  { %694 = vmatmul.mubr.msk.bf16.vlgmr.msra.gmra.mxu1 %vm131_vm1, %v60_v4  ;;  %686 = vmatpush3.bf16.msra.mxu0 %v711_v6  ;;  %v745_v41 = vld [vmem:[%s1037_s15 + $0x24] ss:$8 sps:$4 sm:$0xff]   ;;  %v743_v42 = vld [vmem:[%s1037_s15 + $0x20] ss:$8 sps:$4 sm:$0xff]  }
  0x10   :  { %660 = vmatpush3.bf16.msra.mxu1 %v712_v7  ;;  %339 = vmatprep.mubr.bf16.mxu1 %v178_v20  ;;  %v751_v45 = vld [vmem:[%s1037_s15 + $0x4] ss:$8 sps:$4 sm:$0xff]   ;;  %v749_v46 = vld [vmem:[%s1037_s15] ss:$8 sps:$4 sm:$0xff]  }
  0x11   :  { %661 = vmatprep.subr.bf16.mxu1 %v713_v10  ;;  %522 = vmatprep.subr.bf16.mxu0 %v730_v32  ;;  %v567_v48 = vld [vmem:[%s1038_s6] sm:$0xff] }
  0x12   :  { %688 = vmatmul.mubr.msk.bf16.vlgmr.msra.gmra.mxu0 %vm81_vm2, %v64_v9  ;;  %570 = vperm.xlu0 %706, %v567_v48   ;;  %v588_v49 = vld [vmem:[%s1040_s8] sm:$0xff] }
  0x13   :  { %523 = vmatpush1.bf16.msra.mxu0 %v728_v31  ;;  %554 = vmatprep.mubr.bf16.mxu0 %v756_v47  ;;  %v575_v50 = vld [vmem:[%s1039_s7] sm:$0xff]  ;;  %v589_v51 = vmul.f32 0.5, %v588_v49 }
  0x14   :  { %662 = vmatpush3.bf16.msra.mxu1 %v714_v11  ;;  %524 = vmatprep.subr.bf16.mxu0 %v733_v33  ;;  %v587_v53 = vld [vmem:[%s1041_s9] sm:$0xff] }
  0x15   :  { %663 = vmatprep.subr.bf16.mxu1 %v715_v12  ;;  %v590_v52 = vmul.f32 1.442695, %v589_v51  ;;  %v637_v8 = vld [vmem:[%s1042_s14] ss:$0 sm:$0xff] }
  0x16   :  { %580 = vperm.xlu0 %706, %v575_v50   ;;  %v430_v20 = vld [vmem:[%s1043_s16] sm:$0x3] }
  0x17   :  { %525 = vmatpush1.bf16.msra.mxu0 %v731_v34  ;;  %752 = vpow2.f32 %v590_v52  ;;  %v576_v29 = vld [vmem:[%s1044_s4] sm:$0xff]  ;;  %v577_v34 = vld [vmem:[%s1044_s4 + $0x8] sm:$0xff] }
  0x18   :  { %664 = vmatpush3.bf16.msra.mxu1 %v716_v13  ;;  %526 = vmatprep.subr.bf16.mxu0 %v736_v35  ;;  %v593_v31 = vld [vmem:[%s1045_s5] sm:$0xff] }
  0x19   :  { %665 = vmatprep.subr.bf16.mxu1 %v717_v14 }
  0x1b   :  { %527 = vmatpush1.bf16.msra.mxu0 %v734_v36  ;;  %v594_v36 = vld [vmem:[%s1045_s5 + $0x8] sm:$0xff] }
  0x1c   :  { %666 = vmatpush3.bf16.msra.mxu1 %v718_v15  ;;  %528 = vmatprep.subr.bf16.mxu0 %v739_v37 }
  0x1d   :  { %667 = vmatprep.subr.bf16.mxu1 %v719_v16 }
  0x1f   :  { %529 = vmatpush1.bf16.msra.mxu0 %v737_v38 }
  0x20   :  { %668 = vmatpush3.bf16.msra.mxu1 %v720_v17  ;;  %530 = vmatprep.subr.bf16.mxu0 %v742_v39  ;;  %v432_v17 = vlaneseq }
  0x21   :  { %669 = vmatprep.subr.bf16.mxu1 %v721_v18 }
  0x22   :  { %v433_v18 = vshrl.u32 %v432_v17, 7 }
  0x23   :  { %531 = vmatpush1.bf16.msra.mxu0 %v740_v40 }
  0x24   :  { %670 = vmatpush3.bf16.msra.mxu1 %v722_v21  ;;  %532 = vmatprep.subr.bf16.mxu0 %v745_v41  ;;  %v753_v54 = vpop.eup %752  ;;  %v434_v19 = vsub.s32 0, %v433_v18 }
  0x25   :  { %671 = vmatprep.subr.bf16.mxu1 %v723_v22  ;;  %v592_v55 = vmul.f32 %v753_v54, %v587_v53  ;;  %v438_v22 = vsub.s32 1, %v433_v18 }
  0x27   :  { %533 = vmatpush1.bf16.msra.mxu0 %v743_v42  ;;  %597 = vperm.xlu1 %707, %v592_v55  }
  0x28   :  { %672 = vmatpush3.bf16.msra.mxu1 %v724_v23  ;;  %534 = vmatprep.subr.bf16.mxu0 %v748_v43  ;;  %v435_v23 = vrot.slane %v430_v20, %v434_v19 }
  0x29   :  { %673 = vmatprep.subr.bf16.mxu1 %v725_v24  ;;  %v439_v24 = vrot.slane %v430_v20, %v438_v22 }
  0x2b   :  { %535 = vmatpush1.bf16.msra.mxu0 %v746_v44 }
  0x2c   :  { %674 = vmatpush3.bf16.msra.mxu1 %v726_v25  ;;  %536 = vmatprep.subr.bf16.mxu0 %v751_v45 }
  0x2d   :  { %697 = vmatprep.subr.bf16.mxu1 %v754_v0 }
  0x2f   :  { %340 = vmatmul.mubr.bf16.vlgmr.msra.gmra.mxu1 %v177_v27  ;;  %537 = vmatpush1.bf16.msra.mxu0 %v749_v46 }
  0x30   :  { %698 = vmatpush3.bf16.msra.mxu1 %v727_v28  ;;  %699 = vmatprep.mubr.msk.bf16.mxu1 %vm755_vm0, %v754_v0 }
  0x37   :  { %700 = vmatmul.mubr.msk.bf16.vlgmr.msra.gmra.mxu1 %vm131_vm1, %v349_v30 }
  0x8d   :  { %v571_v21 = vpop.permute.xlu0 %570 }
  0x91   :  { %v581_v27 = vpop.permute.xlu0 %580 }
  0x92   :  { %v583_v39 = vmul.f32 %v581_v27, %v576_v29  ;;  %v584_v43 = vmul.f32 %v581_v27, %v577_v34 }
  0xa2   :  { %v598_v30 = vpop.permute.xlu1 %597 }
  0xa3   :  { %v600_v40 = vmul.f32 %v598_v30, %v593_v31  ;;  %v601_v45 = vmul.f32 %v598_v30, %v594_v36 }
  0xcf   :  { %v169_v56 = vpop.f32.mrf.mxu1 }
  0xd1   :  { %v695_v57 = vpop.f32.mrf.mxu1 }
  0xd2   :  { %v119_v58 = vpop.f32.mrf.mxu0 }
  0xd3   :  { %v172_v59 = vpop.f32.mrf.mxu1  ;;  %v170_v4 = vadd.f32 %v169_v56, %v119_v58 }
  0xd4   :  { %v689_v60 = vpop.f32.mrf.mxu0 }
  0xd5   :  { %v696_v61 = vpop.f32.mrf.mxu1 }
  0xd6   :  { %v122_v62 = vpop.f32.mrf.mxu0 }
  0xd8   :  { %v690_v63 = vpop.f32.mrf.mxu0 }
  0xef   :  { %v675_v0 = vpop.f32.mrf.mxu1 }
  0xf1   :  { %v676_v1 = vpop.f32.mrf.mxu1 }
  0xf2   :  { %v677_v2 = vadd.f32 %v676_v1, %v675_v0 }
  0xf3   :  { %v678_v3 = vpop.f32.mrf.mxu1 }
  0xf4   :  { %v347_v6 = vadd.f32 %v677_v2, %v170_v4 }
  0xf5   :  { %v679_v5 = vpop.f32.mrf.mxu1 }
  0xf7   :  { %v395_v7 = vpop.f32.mrf.mxu1 }
  0xf8   :  { %v401_v9 = vadd.f32 %v395_v7, %v347_v6 }
  0xf9   :  { %v701_v10 = vpop.f32.mrf.mxu1 }
  0xfa   :  { %v409_v11 = vadd.f32 %v637_v8, %v401_v9 }
  0xfb   :  { %v398_v12 = vpop.f32.mrf.mxu1 }
  0xfc   :  { %vm410_vm3 = vcmp.gt.f32.partialorder %v409_v11, 0.0  ;;  %v411_v13 = vmul.f32 0.2, %v409_v11 }
  0xfd   :  { %v702_v14 = vpop.f32.mrf.mxu1 }
  0xfe   :  { %v412_v15 = vsel %vm410_vm3, %v409_v11, %v411_v13 }
  0xff   :  { %v413_v16 = vpack.c.bf16 %v412_v15, %v412_v15 }
 0x101   :  { %555 = vmatmul.mubr.bf16.vlgmr.msra.gmra.mxu0 %v413_v16 }
 0x1c1   :  { %v556_v25 = vpop.f32.mrf.mxu0 }
 0x1c2   :  { %v557_v26 = vadd.f32 %v556_v25, %v435_v23 }
 0x1c3   :  { %v558_v28 = vpop.f32.mrf.mxu0 }
 0x1c4   :  { %v563_v32 = vmax.f32 %v557_v26, 0.0  ;;  %v559_v33 = vadd.f32 %v558_v28, %v439_v24 }
 0x1c5   :  { %v560_v35 = vpop.f32.mrf.mxu0 }
 0x1c6   :  { %565 = vst [vmem:[%s1046_s17] sm:$0xff] %v563_v32  ;;  %v573_v37 = vmul.f32 %v571_v21, %v563_v32  ;;  %v564_v38 = vmax.f32 %v559_v33, 0.0 }
 0x1c7   :  { %v561_v41 = vpop.f32.mrf.mxu0 }
 0x1c8   :  { %566 = vst [vmem:[%s1046_s17 + $0x8] sm:$0xff] %v564_v38  ;;  %v574_v42 = vmul.f32 %v571_v21, %v564_v38  ;;  %v585_v44 = vadd.f32 %v583_v39, %v573_v37 }
 0x1ca   :  { %v586_v46 = vadd.f32 %v584_v43, %v574_v42  ;;  %v602_v47 = vadd.f32 %v600_v40, %v585_v44 }
 0x1cc   :  { %v603_v48 = vadd.f32 %v601_v45, %v586_v46  ;;  %604 = vst [vmem:[%s1047_s18] sm:$0xff] %v602_v47 }
 0x1ce   :  { %605 = vst [vmem:[%s1047_s18 + $0x8] sm:$0xff] %v603_v48 }

// kernel: closed_call.36
= control target key start
LH: loop header
LB: loop body
LE: loop exit
PB: predicated region body
PF: predicated region fallthrough
CT: control target
= control target key end

     0   :  { %v757_v39 = vmov 0.0   ;;  %vm758_vm0 = vmmov 0   ;;  %vm410_vm1 = vcmask 261120   ;;  %vm468_vm2 = vcmask 130048   ;;  %s972_s5 = inlined_call_operand.vmem [shape: bf16[256,128], index: 5, kind: input, shape index: {}]   ;;  %s973_s4 = inlined_call_operand.vmem [shape: bf16[256,128], index: 4, kind: input, shape index: {}]   ;;  %s974_s1 = inlined_call_operand.vmem [shape: f32[16,256], index: 1, kind: input, shape index: {}]   ;;  %s975_s0 = inlined_call_operand.vmem [shape: f32[16,256], index: 0, kind: input, shape index: {}]   ;;  %s976_s6 = inlined_call_operand.vmem [shape: bf16[32,128], index: 6, kind: input, shape index: {}]   ;;  %s977_s7 = inlined_call_operand.vmem [shape: bf16[16,128], index: 7, kind: input, shape index: {}]   ;;  %s978_s2 = inlined_call_operand.vmem [shape: f32[16,32], index: 2, kind: input, shape index: {}]   ;;  %s979_s3 = inlined_call_operand.vmem [shape: f32[16,16], index: 3, kind: input, shape index: {}]   ;;  %s980_s10 = inlined_call_operand.<no memory space> [shape: f32[1,1], index: 10, kind: input, shape index: {}]   ;;  %s981_s8 = inlined_call_operand.vmem [shape: f32[1,128], index: 8, kind: input, shape index: {}]   ;;  %s982_s9 = inlined_call_operand.vmem [shape: f32[1,128], index: 9, kind: input, shape index: {}]   ;;  %s983_s11 = inlined_call_operand.vmem [shape: f32[2,128], index: 11, kind: output, shape index: {}]  }
   0x1   :  { %v722_v0 = vld [vmem:[%s972_s5 + $0x78] sm:$0xff]   ;;  %v726_v4 = vld [vmem:[%s972_s5 + $0x70] sm:$0xff]   ;;  %v730_v8 = vld [vmem:[%s972_s5 + $0x68] sm:$0xff]   ;;  %v16_v54 = vstv %s980_s10  ;;  %vm563_vm5 = vcmask 7168  }
   0x2   :  { %v723_v1 = vld [vmem:[%s973_s4 + $0x78] sm:$0xff]   ;;  %653 = vmatprep.subr.bf16.mxu0 %v722_v0  ;;  %v727_v5 = vld [vmem:[%s973_s4 + $0x70] sm:$0xff]   ;;  %v731_v9 = vld [vmem:[%s973_s4 + $0x68] sm:$0xff]   ;;  %17 = vst [vmem:[#allocation2] sm:$0x1] %v16_v54 }
   0x3   :  { %v724_v2 = vld [vmem:[%s972_s5 + $0x38] sm:$0xff]   ;;  %675 = vmatprep.subr.bf16.mxu1 %v723_v1  ;;  %v728_v6 = vld [vmem:[%s972_s5 + $0x30] sm:$0xff]   ;;  %v732_v10 = vld [vmem:[%s972_s5 + $0x28] sm:$0xff]  }
   0x4   :  { %v725_v3 = vld [vmem:[%s973_s4 + $0x38] sm:$0xff]   ;;  %654 = vmatpush3.bf16.msra.mxu0 %v724_v2  ;;  %v729_v7 = vld [vmem:[%s973_s4 + $0x30] sm:$0xff]   ;;  %v733_v11 = vld [vmem:[%s973_s4 + $0x28] sm:$0xff]  }
   0x5   :  { %676 = vmatpush3.bf16.msra.mxu1 %v725_v3  ;;  %655 = vmatprep.subr.bf16.mxu0 %v726_v4  ;;  %v734_v12 = vld [vmem:[%s972_s5 + $0x60] sm:$0xff]   ;;  %v738_v16 = vld [vmem:[%s972_s5 + $0x58] sm:$0xff]   ;;  %v742_v20 = vld [vmem:[%s972_s5 + $0x50] sm:$0xff]  }
   0x6   :  { %677 = vmatprep.subr.bf16.mxu1 %v727_v5  ;;  %v735_v13 = vld [vmem:[%s973_s4 + $0x60] sm:$0xff]   ;;  %v739_v17 = vld [vmem:[%s973_s4 + $0x58] sm:$0xff]   ;;  %v743_v21 = vld [vmem:[%s973_s4 + $0x50] sm:$0xff]  }
   0x7   :  { %v736_v14 = vld [vmem:[%s972_s5 + $0x20] sm:$0xff]   ;;  %v740_v18 = vld [vmem:[%s972_s5 + $0x18] sm:$0xff]   ;;  %v744_v22 = vld [vmem:[%s972_s5 + $0x10] sm:$0xff]  }
   0x8   :  { %656 = vmatpush3.bf16.msra.mxu0 %v728_v6  ;;  %v737_v15 = vld [vmem:[%s973_s4 + $0x20] sm:$0xff]   ;;  %v741_v19 = vld [vmem:[%s973_s4 + $0x18] sm:$0xff]   ;;  %v745_v23 = vld [vmem:[%s973_s4 + $0x10] sm:$0xff]  }
   0x9   :  { %678 = vmatpush3.bf16.msra.mxu1 %v729_v7  ;;  %657 = vmatprep.subr.bf16.mxu0 %v730_v8  ;;  %v746_v24 = vld [vmem:[%s972_s5 + $0x48] sm:$0xff]   ;;  %v750_v28 = vld [vmem:[%s972_s5 + $0x40] sm:$0xff]   ;;  %v82_v33 = vld [vmem:[%s974_s1 + $0x18] sm:$0xff] }
   0xa   :  { %679 = vmatprep.subr.bf16.mxu1 %v731_v9  ;;  %v747_v25 = vld [vmem:[%s973_s4 + $0x48] sm:$0xff]   ;;  %v751_v29 = vld [vmem:[%s973_s4 + $0x40] sm:$0xff]   ;;  %v44_v36 = vld [vmem:[%s975_s0 + $0x18] sm:$0xff] }
   0xb   :  { %v748_v26 = vld [vmem:[%s972_s5 + $0x8] sm:$0xff]   ;;  %v752_v30 = vld [vmem:[%s972_s5] sm:$0xff]   ;;  %v81_v38 = vld [vmem:[%s974_s1 + $0x10] sm:$0xff] }
   0xc   :  { %658 = vmatpush3.bf16.msra.mxu0 %v732_v10  ;;  %v749_v27 = vld [vmem:[%s973_s4 + $0x8] sm:$0xff]   ;;  %v753_v31 = vld [vmem:[%s973_s4] sm:$0xff]   ;;  %v43_v43 = vld [vmem:[%s975_s0 + $0x10] sm:$0xff] }
   0xd   :  { %680 = vmatpush3.bf16.msra.mxu1 %v733_v11  ;;  %659 = vmatprep.subr.bf16.mxu0 %v734_v12  ;;  %v80_v32 = vld [vmem:[%s974_s1 + $0x8] sm:$0xff]  ;;  %v79_v37 = vld [vmem:[%s974_s1] sm:$0xff] }
   0xe   :  { %681 = vmatprep.subr.bf16.mxu1 %v735_v13  ;;  %v42_v34 = vld [vmem:[%s975_s0 + $0x8] sm:$0xff]  ;;  %v84_v35 = vpack.c.bf16 %v82_v33, %v80_v32  ;;  %v83_v41 = vpack.c.bf16 %v81_v38, %v79_v37  ;;  %v41_v42 = vld [vmem:[%s975_s0] sm:$0xff] }
   0xf   :  { %v46_v40 = vpack.c.bf16 %v44_v36, %v42_v34  ;;  %v45_v44 = vpack.c.bf16 %v43_v43, %v41_v42  ;;  %v754_v45 = vld [vmem:[%s976_s6 + $0x8] sm:$0xff]   ;;  %v755_v46 = vld [vmem:[%s977_s7] sm:$0xff]  }
  0x10   :  { %660 = vmatpush3.bf16.msra.mxu0 %v736_v14  ;;  %245 = vmatprep.mubr.bf16.mxu0 %v84_v35  ;;  %v756_v47 = vld [vmem:[%s976_s6] sm:$0xff]   ;;  %v392_v49 = vld [vmem:[%s978_s2 + $0x8] sm:$0xff] }
  0x11   :  { %682 = vmatpush3.bf16.msra.mxu1 %v737_v15  ;;  %661 = vmatprep.subr.bf16.mxu0 %v738_v16  ;;  %v391_v48 = vld [vmem:[%s978_s2] sm:$0xff]  ;;  %v458_v51 = vld [vmem:[%s979_s3 + $0x8] sm:$0xff] }
  0x12   :  { %683 = vmatprep.subr.bf16.mxu1 %v739_v17  ;;  %382 = vmatprep.mubr.bf16.mxu1 %v46_v40  ;;  %v457_v50 = vld [vmem:[%s979_s3] sm:$0xff]  ;;  %v393_v52 = vpack.c.bf16 %v392_v49, %v391_v48  ;;  %v552_v48 = vlaneseq }
  0x13   :  { %v459_v53 = vpack.c.bf16 %v458_v51, %v457_v50  ;;  %v650_v7 = vld [vmem:[%s981_s8] ss:$0 sm:$0xff] }
  0x14   :  { %662 = vmatpush3.bf16.msra.mxu0 %v740_v18  ;;  %v553_v49 = vshrl.u32 %v552_v48, 7 }
  0x15   :  { %684 = vmatpush3.bf16.msra.mxu1 %v741_v19  ;;  %663 = vmatprep.subr.bf16.mxu0 %v742_v20  ;;  %v651_v20 = vld [vmem:[%s982_s9] ss:$0 sm:$0xff] }
  0x16   :  { %685 = vmatprep.subr.bf16.mxu1 %v743_v21  ;;  %vm579_vm6 = vcmp.eq.s32.totalorder %v553_v49, 0  ;;  %vm605_vm7 = vcmp.eq.s32.totalorder %v553_v49, 1 }
  0x18   :  { %664 = vmatpush3.bf16.msra.mxu0 %v744_v22 }
  0x19   :  { %686 = vmatpush3.bf16.msra.mxu1 %v745_v23  ;;  %665 = vmatprep.subr.bf16.mxu0 %v746_v24 }
  0x1a   :  { %687 = vmatprep.subr.bf16.mxu1 %v747_v25 }
  0x1c   :  { %666 = vmatpush3.bf16.msra.mxu0 %v748_v26 }
  0x1d   :  { %688 = vmatpush3.bf16.msra.mxu1 %v749_v27  ;;  %667 = vmatprep.subr.bf16.mxu0 %v750_v28  ;;  %v652_v27 = vld [vmem:[#allocation2] ss:$0 sm:$0xff] }
  0x1e   :  { %689 = vmatprep.subr.bf16.mxu1 %v751_v29 }
  0x20   :  { %668 = vmatpush3.bf16.msra.mxu0 %v752_v30 }
  0x21   :  { %690 = vmatpush3.bf16.msra.mxu1 %v753_v31  ;;  %702 = vmatprep.subr.bf16.mxu0 %v757_v39 }
  0x22   :  { %710 = vmatprep.subr.bf16.mxu1 %v757_v39 }
  0x23   :  { %246 = vmatmul.mubr.bf16.vlgmr.msra.gmra.mxu0 %v83_v41 }
  0x24   :  { %383 = vmatmul.mubr.bf16.vlgmr.msra.gmra.mxu1 %v45_v44  ;;  %703 = vmatpush3.bf16.msra.mxu0 %v754_v45 }
  0x25   :  { %711 = vmatpush3.bf16.msra.mxu1 %v755_v46  ;;  %704 = vmatprep.subr.bf16.mxu0 %v757_v39 }
  0x26   :  { %706 = vmatprep.mubr.msk.bf16.mxu0 %vm758_vm0, %v757_v39  ;;  %712 = vmatprep.mubr.msk.bf16.mxu1 %vm758_vm0, %v757_v39 }
  0x28   :  { %705 = vmatpush3.bf16.msra.mxu0 %v756_v47 }
  0x2b   :  { %707 = vmatmul.mubr.msk.bf16.vlgmr.msra.gmra.mxu0 %vm410_vm1, %v393_v52 }
  0x2c   :  { %713 = vmatmul.mubr.msk.bf16.vlgmr.msra.gmra.mxu1 %vm468_vm2, %v459_v53 }
  0xe3   :  { %v669_v55 = vpop.f32.mrf.mxu0 }
  0xe4   :  { %v691_v56 = vpop.f32.mrf.mxu1 }
  0xe5   :  { %v670_v57 = vpop.f32.mrf.mxu0 }
  0xe6   :  { %v671_v58 = vadd.f32 %v670_v57, %v669_v55  ;;  %v692_v59 = vpop.f32.mrf.mxu1 }
  0xe7   :  { %v693_v60 = vadd.f32 %v692_v59, %v691_v56  ;;  %v672_v61 = vpop.f32.mrf.mxu0 }
  0xe8   :  { %v694_v62 = vpop.f32.mrf.mxu1 }
  0xe9   :  { %v673_v63 = vpop.f32.mrf.mxu0  ;;  %v385_v2 = vadd.f32 %v693_v60, %v671_v58 }
  0xea   :  { %v674_v0 = vadd.f32 %v673_v63, %v672_v61  ;;  %v695_v1 = vpop.f32.mrf.mxu1 }
  0xeb   :  { %v696_v3 = vadd.f32 %v695_v1, %v694_v62  ;;  %v448_v4 = vpop.f32.mrf.mxu0 }
  0xec   :  { %v455_v5 = vadd.f32 %v448_v4, %v385_v2  ;;  %v506_v6 = vpop.f32.mrf.mxu1 }
  0xed   :  { %v708_v8 = vpop.f32.mrf.mxu0  ;;  %v388_v11 = vadd.f32 %v696_v3, %v674_v0 }
  0xee   :  { %v513_v9 = vadd.f32 %v506_v6, %v455_v5  ;;  %v714_v10 = vpop.f32.mrf.mxu1 }
  0xef   :  { %v451_v12 = vpop.f32.mrf.mxu0 }
  0xf0   :  { %v522_v13 = vadd.f32 %v650_v7, %v513_v9  ;;  %v456_v14 = vadd.f32 %v451_v12, %v388_v11  ;;  %v509_v15 = vpop.f32.mrf.mxu1 }
  0xf1   :  { %v709_v16 = vpop.f32.mrf.mxu0 }
  0xf2   :  { %v514_v17 = vadd.f32 %v509_v15, %v456_v14  ;;  %v715_v18 = vpop.f32.mrf.mxu1  ;;  %vm524_vm3 = vcmp.gt.f32.partialorder %v522_v13, 0.0  ;;  %v526_v19 = vmul.f32 0.2, %v522_v13 }
  0xf4   :  { %v523_v21 = vadd.f32 %v650_v7, %v514_v17  ;;  %v528_v22 = vsel %vm524_vm3, %v522_v13, %v526_v19 }
  0xf5   :  { %v537_v23 = vmul.f32 %v651_v20, %v528_v22 }
  0xf6   :  { %vm525_vm4 = vcmp.gt.f32.partialorder %v523_v21, 0.0  ;;  %v527_v24 = vmul.f32 0.2, %v523_v21 }
  0xf7   :  { %539 = vadd.xlane.f32.xlu0 %v537_v23 }
  0xf8   :  { %v529_v25 = vsel %vm525_vm4, %v523_v21, %v527_v24 }
  0xf9   :  { %v538_v26 = vmul.f32 %v651_v20, %v529_v25 }
  0xfb   :  { %541 = vadd.xlane.f32.xlu0 %v538_v26 }
 0x180   :  { %v540_v28 = vpop.xlane.xlu0 %539 }
 0x181   :  { %v550_v29 = vadd.f32 %v652_v27, %v540_v28 }
 0x183   :  { %v564_v30 = vsel %vm563_vm5, %v550_v29, 0.0 }
 0x184   :  { %567 = vadd.xlane.f32.xlu1 %v564_v30  ;;  %v542_v31 = vpop.xlane.xlu0 %541 }
 0x185   :  { %v551_v32 = vadd.f32 %v652_v27, %v542_v31 }
 0x187   :  { %v591_v33 = vsel %vm563_vm5, %v551_v32, 0.0 }
 0x188   :  { %593 = vadd.xlane.f32.xlu1 %v591_v33 }
 0x20d   :  { %v568_v34 = vpop.xlane.xlu1 %567 }
 0x20e   :  { %v569_v35 = vrot.slane %v568_v34, 4 }
 0x210   :  { %v570_v36 = vadd.f32 %v569_v35, %v568_v34 }
 0x211   :  { %v594_v37 = vpop.xlane.xlu1 %593 }
 0x212   :  { %v571_v38 = vrot.slane %v570_v36, 2  ;;  %v595_v39 = vrot.slane %v594_v37, 4 }
 0x214   :  { %v596_v40 = vadd.f32 %v595_v39, %v594_v37  ;;  %v572_v41 = vadd.f32 %v571_v38, %v570_v36 }
 0x216   :  { %v597_v42 = vrot.slane %v596_v40, 2  ;;  %v573_v43 = vrot.slane %v572_v41, 1 }
 0x218   :  { %v598_v44 = vadd.f32 %v597_v42, %v596_v40  ;;  %v574_v45 = vadd.f32 %v573_v43, %v572_v41 }
 0x21a   :  { %716 = vpush %v574_v45  ;;  %v599_v46 = vrot.slane %v598_v44, 1 }
 0x21c   :  { %v600_v47 = vadd.f32 %v599_v46, %v598_v44 }
 0x21e   :  { %718 = vpush %v600_v47 }
 0x24b   :  { %s717_s8 = spop %716 }
 0x24c   :  { %s578_s9 = smul.f32 0.125, %s717_s8 }
 0x24e   :  { %v580_v50 = vstv %s578_s9 }
 0x24f   :  { %s719_s4 = spop %718  ;;  %v581_v51 = vsel %vm579_vm6, %v580_v50, 0.0 }
 0x250   :  { %s604_s12 = smul.f32 0.125, %s719_s4 }
 0x252   :  { %v606_v52 = vstv %s604_s12 }
 0x253   :  { %v607_v53 = vsel %vm605_vm7, %v606_v52, %v581_v51 }
 0x254   :  { %608 = vst [vmem:[%s983_s11] sm:$0x3] %v607_v53 }

// kernel: forward.7
= control target key start
LH: loop header
LB: loop body
LE: loop exit
PB: predicated region body
PF: predicated region fallthrough
CT: control target
= control target key end

     0   :  { %v397_v1 = vmov 0.0   ;;  %vm398_vm0 = vmmov 0   ;;  %vm83_vm1 = vcmask 261120   ;;  %vm298_vm3 = vcmask 7168   ;;  %s514_s2 = inlined_call_operand.vmem [shape: bf16[256,128], index: 2, kind: input, shape index: {}]   ;;  %s515_s3 = inlined_call_operand.vmem [shape: bf16[32,128], index: 3, kind: input, shape index: {}]   ;;  %s516_s1 = inlined_call_operand.vmem [shape: f32[8,32], index: 1, kind: input, shape index: {}]   ;;  %s517_s0 = inlined_call_operand.vmem [shape: f32[8,256], index: 0, kind: input, shape index: {}]   ;;  %s518_s6 = inlined_call_operand.<no memory space> [shape: f32[1,1], index: 6, kind: input, shape index: {}]   ;;  %s519_s4 = inlined_call_operand.vmem [shape: f32[1,128], index: 4, kind: input, shape index: {}]   ;;  %s520_s5 = inlined_call_operand.vmem [shape: f32[1,128], index: 5, kind: input, shape index: {}]   ;;  %s521_s7 = inlined_call_operand.vmem [shape: f32[1,128], index: 7, kind: output, shape index: {}]  }
   0x1   :  { %v379_v0 = vld [vmem:[%s514_s2 + $0x78] sm:$0xff]   ;;  %367 = vmatprep.subr.bf16.mxu0 %v397_v1  ;;  %371 = vmatprep.mubr.msk.bf16.mxu0 %vm398_vm0, %v397_v1  ;;  %v381_v3 = vld [vmem:[%s514_s2 + $0x70] sm:$0xff]   ;;  %v383_v5 = vld [vmem:[%s514_s2 + $0x68] sm:$0xff]   ;;  %v12_v25 = vstv %s518_s6  ;;  %v292_v53 = vlaneseq }
   0x2   :  { %v380_v2 = vld [vmem:[%s514_s2 + $0x38] sm:$0xff]   ;;  %345 = vmatprep.subr.bf16.mxu1 %v379_v0  ;;  %v382_v4 = vld [vmem:[%s514_s2 + $0x30] sm:$0xff]   ;;  %v384_v6 = vld [vmem:[%s514_s2 + $0x28] sm:$0xff]   ;;  %13 = vst [vmem:[#allocation2] sm:$0x1] %v12_v25 }
   0x3   :  { %346 = vmatpush3.bf16.msra.mxu1 %v380_v2  ;;  %v385_v7 = vld [vmem:[%s514_s2 + $0x60] sm:$0xff]   ;;  %v387_v9 = vld [vmem:[%s514_s2 + $0x58] sm:$0xff]   ;;  %v391_v10 = vld [vmem:[%s515_s3 + $0x8] sm:$0xff]   ;;  %v293_v54 = vshrl.u32 %v292_v53, 7 }
   0x4   :  { %347 = vmatprep.subr.bf16.mxu1 %v381_v3  ;;  %v386_v8 = vld [vmem:[%s514_s2 + $0x20] sm:$0xff]   ;;  %v388_v11 = vld [vmem:[%s514_s2 + $0x18] sm:$0xff]   ;;  %368 = vmatpush3.bf16.msra.mxu0 %v391_v10  ;;  %v389_v13 = vld [vmem:[%s514_s2 + $0x50] sm:$0xff]  }
   0x5   :  { %369 = vmatprep.subr.bf16.mxu0 %v397_v1  ;;  %v394_v12 = vld [vmem:[%s515_s3] sm:$0xff]   ;;  %v30_v15 = vld [vmem:[%s517_s0 + $0x8] sm:$0xff]  ;;  %v390_v16 = vld [vmem:[%s514_s2 + $0x10] sm:$0xff]   ;;  %vm312_vm4 = vcmp.eq.s32.totalorder %v293_v54, 0 }
   0x6   :  { %v65_v14 = vld [vmem:[%s516_s1] sm:$0xff]  ;;  %v32_v18 = vpack.c.bf16 %v30_v15, %v30_v15  ;;  %v392_v19 = vld [vmem:[%s514_s2 + $0x48] sm:$0xff]  }
   0x7   :  { %348 = vmatpush3.bf16.msra.mxu1 %v382_v4  ;;  %v66_v17 = vpack.c.bf16 %v65_v14, %v65_v14  ;;  %v393_v20 = vld [vmem:[%s514_s2 + $0x8] sm:$0xff]   ;;  %v395_v21 = vld [vmem:[%s514_s2 + $0x40] sm:$0xff]  }
   0x8   :  { %349 = vmatprep.subr.bf16.mxu1 %v383_v5  ;;  %370 = vmatpush3.bf16.msra.mxu0 %v394_v12  ;;  %v396_v22 = vld [vmem:[%s514_s2] sm:$0xff]  }
   0x9   :  { %255 = vmatprep.mubr.bf16.mxu1 %v32_v18  ;;  %v29_v23 = vld [vmem:[%s517_s0] sm:$0xff] }
   0xa   :  { %v31_v24 = vpack.c.bf16 %v29_v23, %v29_v23  ;;  %v339_v33 = vld [vmem:[%s519_s4] ss:$0 sm:$0xff] }
   0xb   :  { %350 = vmatpush3.bf16.msra.mxu1 %v384_v6  ;;  %372 = vmatmul.mubr.msk.bf16.vlgmr.msra.gmra.mxu0 %vm83_vm1, %v66_v17  ;;  %v340_v39 = vld [vmem:[%s520_s5] ss:$0 sm:$0xff] }
   0xc   :  { %351 = vmatprep.subr.bf16.mxu1 %v385_v7  ;;  %v341_v42 = vld [vmem:[#allocation2] ss:$0 sm:$0xff] }
   0xf   :  { %352 = vmatpush3.bf16.msra.mxu1 %v386_v8 }
  0x10   :  { %353 = vmatprep.subr.bf16.mxu1 %v387_v9 }
  0x13   :  { %354 = vmatpush3.bf16.msra.mxu1 %v388_v11 }
  0x14   :  { %355 = vmatprep.subr.bf16.mxu1 %v389_v13 }
  0x17   :  { %356 = vmatpush3.bf16.msra.mxu1 %v390_v16 }
  0x18   :  { %357 = vmatprep.subr.bf16.mxu1 %v392_v19 }
  0x1b   :  { %358 = vmatpush3.bf16.msra.mxu1 %v393_v20 }
  0x1c   :  { %359 = vmatprep.subr.bf16.mxu1 %v395_v21 }
  0x1f   :  { %360 = vmatpush3.bf16.msra.mxu1 %v396_v22 }
  0x22   :  { %256 = vmatmul.mubr.bf16.vlgmr.msra.gmra.mxu1 %v31_v24 }
  0xcb   :  { %v121_v26 = vpop.f32.mrf.mxu0 }
  0xcd   :  { %v373_v27 = vpop.f32.mrf.mxu0 }
  0xcf   :  { %v124_v28 = vpop.f32.mrf.mxu0 }
  0xd1   :  { %v374_v29 = vpop.f32.mrf.mxu0 }
  0xe2   :  { %v361_v30 = vpop.f32.mrf.mxu1 }
  0xe4   :  { %v362_v31 = vpop.f32.mrf.mxu1 }
  0xe5   :  { %v363_v32 = vadd.f32 %v362_v31, %v361_v30 }
  0xe6   :  { %v364_v34 = vpop.f32.mrf.mxu1 }
  0xe7   :  { %v258_v35 = vadd.f32 %v363_v32, %v121_v26 }
  0xe8   :  { %v365_v36 = vpop.f32.mrf.mxu1 }
  0xe9   :  { %v270_v37 = vadd.f32 %v339_v33, %v258_v35 }
  0xeb   :  { %vm271_vm2 = vcmp.gt.f32.partialorder %v270_v37, 0.0  ;;  %v272_v38 = vmul.f32 0.2, %v270_v37 }
  0xed   :  { %v273_v40 = vsel %vm271_vm2, %v270_v37, %v272_v38 }
  0xee   :  { %v281_v41 = vmul.f32 %v340_v39, %v273_v40 }
  0xf0   :  { %282 = vadd.xlane.f32.xlu0 %v281_v41 }
 0x179   :  { %v283_v43 = vpop.xlane.xlu0 %282 }
 0x17a   :  { %v291_v44 = vadd.f32 %v341_v42, %v283_v43 }
 0x17c   :  { %v299_v45 = vsel %vm298_vm3, %v291_v44, 0.0 }
 0x17d   :  { %300 = vadd.xlane.f32.xlu0 %v299_v45 }
 0x206   :  { %v301_v46 = vpop.xlane.xlu0 %300 }
 0x207   :  { %v302_v47 = vrot.slane %v301_v46, 4 }
 0x209   :  { %v303_v48 = vadd.f32 %v302_v47, %v301_v46 }
 0x20b   :  { %v304_v49 = vrot.slane %v303_v48, 2 }
 0x20d   :  { %v305_v50 = vadd.f32 %v304_v49, %v303_v48 }
 0x20f   :  { %v306_v51 = vrot.slane %v305_v50, 1 }
 0x211   :  { %v307_v52 = vadd.f32 %v306_v51, %v305_v50 }
 0x213   :  { %375 = vpush %v307_v52 }
 0x244   :  { %s376_s4 = spop %375 }
 0x245   :  { %s311_s5 = smul.f32 0.125, %s376_s4 }
 0x247   :  { %v313_v55 = vstv %s311_s5 }
 0x248   :  { %v314_v56 = vsel %vm312_vm4, %v313_v55, 0.0 }
 0x249   :  { %315 = vst [vmem:[%s521_s7] sm:$0x1] %v314_v56 }

// kernel: forward.9
= control target key start
LH: loop header
LB: loop body
LE: loop exit
PB: predicated region body
PF: predicated region fallthrough
CT: control target
= control target key end

     0   :  { %v481_v2 = vmov 0.0   ;;  %s609_s0 = inlined_call_operand.vmem [shape: f32[8,256], index: 0, kind: input, shape index: {}]   ;;  %s610_s1 = inlined_call_operand.vmem [shape: f32[8,32], index: 1, kind: input, shape index: {}]   ;;  %s611_s2 = inlined_call_operand.vmem [shape: bf16[256,128], index: 2, kind: input, shape index: {}]   ;;  %s612_s3 = inlined_call_operand.vmem [shape: f32[1,128], index: 3, kind: input, shape index: {}]   ;;  %s613_s4 = inlined_call_operand.vmem [shape: bf16[128,32], index: 4, kind: input, shape index: {}]   ;;  %s614_s5 = inlined_call_operand.vmem [shape: f32[1,32], index: 5, kind: input, shape index: {}]   ;;  %s615_s6 = inlined_call_operand.hbm [shape: f32[1,128], index: 6, kind: output, shape index: {}]  }
   0x1   :  { %v435_v0 = vld [vmem:[%s611_s2 + $0x78] sm:$0xff]   ;;  %410 = vmatprep.subr.bf16.mxu1 %v481_v2  ;;  %v437_v3 = vld [vmem:[%s611_s2 + $0x70] sm:$0xff]   ;;  %v439_v5 = vld [vmem:[%s611_s2 + $0x68] sm:$0xff]  }
   0x2   :  { %v436_v1 = vld [vmem:[%s611_s2 + $0x38] sm:$0xff]   ;;  %379 = vmatprep.subr.bf16.mxu0 %v435_v0  ;;  %v438_v4 = vld [vmem:[%s611_s2 + $0x30] sm:$0xff]   ;;  %v440_v6 = vld [vmem:[%s611_s2 + $0x28] sm:$0xff]  }
   0x3   :  { %380 = vmatpush3.bf16.msra.mxu0 %v436_v1  ;;  %v441_v7 = vld [vmem:[%s611_s2 + $0x60] sm:$0xff]   ;;  %v443_v9 = vld [vmem:[%s611_s2 + $0x58] sm:$0xff]   ;;  %v445_v11 = vld [vmem:[%s611_s2 + $0x50] sm:$0xff]  }
   0x4   :  { %381 = vmatprep.subr.bf16.mxu0 %v437_v3  ;;  %v442_v8 = vld [vmem:[%s611_s2 + $0x20] sm:$0xff]   ;;  %v444_v10 = vld [vmem:[%s611_s2 + $0x18] sm:$0xff]   ;;  %v26_v12 = vld [vmem:[%s609_s0 + $0x8] sm:$0xff] }
   0x5   :  { %v28_v13 = vpack.c.bf16 %v26_v12, %v26_v12  ;;  %v451_v14 = vld [vmem:[%s613_s4 + $0x38] sm:$0xff]   ;;  %v446_v15 = vld [vmem:[%s611_s2 + $0x10] sm:$0xff]   ;;  %v447_v16 = vld [vmem:[%s611_s2 + $0x48] sm:$0xff]  }
   0x6   :  { %411 = vmatpush3.bf16.msra.mxu1 %v451_v14  ;;  %v452_v17 = vld [vmem:[%s613_s4 + $0x30] sm:$0xff]   ;;  %v448_v18 = vld [vmem:[%s611_s2 + $0x8] sm:$0xff]  }
   0x7   :  { %382 = vmatpush3.bf16.msra.mxu0 %v438_v4  ;;  %196 = vmatprep.mubr.bf16.mxu0 %v28_v13 }
   0x8   :  { %383 = vmatprep.subr.bf16.mxu0 %v439_v5  ;;  %412 = vmatprep.subr.bf16.mxu1 %v481_v2 }
   0xb   :  { %384 = vmatpush3.bf16.msra.mxu0 %v440_v6 }
   0xc   :  { %385 = vmatprep.subr.bf16.mxu0 %v441_v7 }
   0xf   :  { %386 = vmatpush3.bf16.msra.mxu0 %v442_v8 }
  0x10   :  { %387 = vmatprep.subr.bf16.mxu0 %v443_v9 }
  0x13   :  { %388 = vmatpush3.bf16.msra.mxu0 %v444_v10 }
  0x14   :  { %389 = vmatprep.subr.bf16.mxu0 %v445_v11 }
  0x17   :  { %390 = vmatpush3.bf16.msra.mxu0 %v446_v15 }
  0x18   :  { %11 = vsyncpa [#allocation3], 0  ;;  %391 = vmatprep.subr.bf16.mxu0 %v447_v16  ;;  %v449_v19 = vld [vmem:[%s611_s2 + $0x40] sm:$0xff]   ;;  %413 = vmatpush3.bf16.msra.mxu1 %v452_v17  ;;  %v453_v20 = vld [vmem:[%s613_s4 + $0x28] sm:$0xff]   ;;  %vm482_vm0 = vmmov 0   ;;  %vm322_vm2 = vcmask 261120  }
  0x19   :  { %414 = vmatprep.subr.bf16.mxu1 %v481_v2  ;;  %v450_v21 = vld [vmem:[%s611_s2] sm:$0xff]   ;;  %v455_v25 = vld [vmem:[%s613_s4 + $0x18] sm:$0xff]   ;;  %v456_v26 = vld [vmem:[%s613_s4 + $0x10] sm:$0xff]   ;;  %426 = vmatprep.mubr.msk.bf16.mxu1 %vm482_vm0, %v481_v2 }
  0x1a   :  { %v25_v22 = vld [vmem:[%s609_s0] sm:$0xff]  ;;  %v457_v27 = vld [vmem:[%s613_s4 + $0x8] sm:$0xff]  }
  0x1b   :  { %392 = vmatpush3.bf16.msra.mxu0 %v448_v18  ;;  %v454_v23 = vld [vmem:[%s613_s4 + $0x20] sm:$0xff]   ;;  %v27_v24 = vpack.c.bf16 %v25_v22, %v25_v22 }
  0x1c   :  { %393 = vmatprep.subr.bf16.mxu0 %v449_v19  ;;  %415 = vmatpush3.bf16.msra.mxu1 %v453_v20  ;;  %v458_v28 = vld [vmem:[%s613_s4] sm:$0xff]  }
  0x1d   :  { %416 = vmatprep.subr.bf16.mxu1 %v481_v2  ;;  %v353_v30 = vld [vmem:[%s612_s3] ss:$0 sm:$0xff]  ;;  %s483_s3 = smov [#allocation2]  }
  0x1e   :  { %v370_v39 = vld [vmem:[%s614_s5] ss:$0 sm:$0xff]  ;;  %s345_s5 = sshll.u32 %s483_s3, 4  ;;  %s346_s5 = int_to_ptr.vmem [resolvable:$true] %s345_s5 }
  0x1f   :  { %394 = vmatpush3.bf16.msra.mxu0 %v450_v21  ;;  %v319_v41 = vld [vmem:[%s610_s1] sm:$0xff]  ;;  %s459_s29 = scalar_lea.vmem %s346_s5, 16  ;;  %s463_s30 = scalar_lea.vmem %s346_s5, 32 }
  0x20   :  { %417 = vmatpush3.bf16.msra.mxu1 %v454_v23  ;;  %p460_p0 = scmp.ne.s32.totalorder %s346_s5, %s459_s29  ;;  %p464_p1 = scmp.lt.s32.totalorder %s346_s5, %s346_s5 }
  0x21   :  { %418 = vmatprep.subr.bf16.mxu1 %v481_v2  ;;  %p465_p2 = scmp.lt.s32.totalorder %s463_s30, %s459_s29 }
  0x22   :  { %197 = vmatmul.mubr.bf16.vlgmr.msra.gmra.mxu0 %v27_v24 }
  0x23   :  { %p466_p3 = por %p465_p2, %p464_p1 }
  0x24   :  { %419 = vmatpush3.bf16.msra.mxu1 %v455_v25 }
  0x25   :  { %420 = vmatprep.subr.bf16.mxu1 %v481_v2  ;;  %p467_p4 = pnand %p466_p3, %p460_p0 }
  0x28   :  { %421 = vmatpush3.bf16.msra.mxu1 %v456_v26 }
  0x29   :  { %422 = vmatprep.subr.bf16.mxu1 %v481_v2 }
  0x2c   :  { %423 = vmatpush3.bf16.msra.mxu1 %v457_v27 }
  0x2d   :  { %424 = vmatprep.subr.bf16.mxu1 %v481_v2 }
  0x30   :  { %425 = vmatpush3.bf16.msra.mxu1 %v458_v28 }
  0xe2   :  { %v395_v29 = vpop.f32.mrf.mxu0 }
  0xe4   :  { %v396_v31 = vpop.f32.mrf.mxu0 }
  0xe5   :  { %v397_v32 = vadd.f32 %v396_v31, %v395_v29 }
  0xe6   :  { %v398_v33 = vpop.f32.mrf.mxu0 }
  0xe7   :  { %v199_v34 = vadd.f32 %v397_v32, %v353_v30 }
  0xe8   :  { %v399_v35 = vpop.f32.mrf.mxu0 }
  0xe9   :  { %v205_v36 = vmul.f32 0.2, %v199_v34  ;;  %vm204_vm1 = vcmp.gt.f32.partialorder %v199_v34, 0.0 }
  0xeb   :  { %v206_v37 = vsel %vm204_vm1, %v199_v34, %v205_v36 }
  0xec   :  { %v207_v38 = vpack.c.bf16 %v206_v37, %v206_v37 }
  0xee   :  { %427 = vmatmul.mubr.bf16.vlgmr.msra.gmra.mxu1 %v207_v38 }
 0x1ae   :  { %v313_v40 = vpop.f32.mrf.mxu1 }
 0x1af   :  { %v314_v42 = vadd.f32 %v370_v39, %v313_v40 }
 0x1b0   :  { %v428_v43 = vpop.f32.mrf.mxu1 }
 0x1b1   :  { %v320_v44 = vsub.f32 %v314_v42, %v319_v41 }
 0x1b2   :  { %v316_v45 = vpop.f32.mrf.mxu1 }
 0x1b3   :  { %v321_v46 = vmul.f32 %v320_v44, %v320_v44 }
 0x1b4   :  { %v429_v47 = vpop.f32.mrf.mxu1 }
 0x1b5   :  { %v323_v48 = vsel %vm322_vm2, %v321_v46, 0.0 }
 0x1b6   :  { %324 = vadd.xlane.f32.xlu0 %v323_v48 }
 0x23f   :  { %v325_v49 = vpop.xlane.xlu0 %324 }
 0x240   :  { %v326_v50 = vrot.slane %v325_v49, 4 }
 0x242   :  { %v327_v51 = vadd.f32 %v326_v50, %v325_v49 }
 0x244   :  { %v328_v52 = vrot.slane %v327_v51, 2 }
 0x246   :  { %v329_v53 = vadd.f32 %v328_v52, %v327_v51 }
 0x248   :  { %v330_v54 = vrot.slane %v329_v53, 1 }
 0x24a   :  { %v331_v55 = vadd.f32 %v330_v54, %v329_v53 }
 0x24c   :  { %430 = vpush %v331_v55 }
 0x27d   :  { %s431_s1 = spop %430 }
 0x27e   :  { %s335_s28 = smul.f32 0.00390625, %s431_s1 }
 0x280   :  { %v336_v56 = vstv %s335_s28 }
 0x281   :  { %338 = vst [vmem:[#allocation2] sm:$0x1] %v336_v56 }
 0x282   :  { %470 = shalt.err (!%p467_p4)
}
 0x283   :  { %348 = dma.vmem_to_hbm [thread:$0]  %s346_s5, 16, %s615_s6, [#allocation3]  }
 0x284   :  { %479 = dma.done.wait [#allocation3], 16  }
 0x285   :  { %480 = vsyncadd [#allocation3], 4294967280 }
 0x286   :  { %352 = vsyncpa [#allocation3], 1 }

// kernel: forward.8
= control target key start
LH: loop header
LB: loop body
LE: loop exit
PB: predicated region body
PF: predicated region fallthrough
CT: control target
= control target key end

     0   :  { %v702_v39 = vmov 0.0   ;;  %vm703_vm0 = vmmov 0   ;;  %vm403_vm1 = vcmask 261120   ;;  %vm458_vm2 = vcmask 130048   ;;  %s899_s5 = inlined_call_operand.vmem [shape: bf16[256,128], index: 5, kind: input, shape index: {}]   ;;  %s900_s4 = inlined_call_operand.vmem [shape: bf16[256,128], index: 4, kind: input, shape index: {}]   ;;  %s901_s1 = inlined_call_operand.vmem [shape: f32[8,256], index: 1, kind: input, shape index: {}]   ;;  %s902_s0 = inlined_call_operand.vmem [shape: f32[8,256], index: 0, kind: input, shape index: {}]   ;;  %s903_s6 = inlined_call_operand.vmem [shape: bf16[32,128], index: 6, kind: input, shape index: {}]   ;;  %s904_s7 = inlined_call_operand.vmem [shape: bf16[16,128], index: 7, kind: input, shape index: {}]   ;;  %s905_s2 = inlined_call_operand.vmem [shape: f32[8,32], index: 2, kind: input, shape index: {}]   ;;  %s906_s3 = inlined_call_operand.vmem [shape: f32[8,16], index: 3, kind: input, shape index: {}]   ;;  %s907_s10 = inlined_call_operand.<no memory space> [shape: f32[1,1], index: 10, kind: input, shape index: {}]   ;;  %s908_s8 = inlined_call_operand.vmem [shape: f32[1,128], index: 8, kind: input, shape index: {}]   ;;  %s909_s9 = inlined_call_operand.vmem [shape: f32[1,128], index: 9, kind: input, shape index: {}]   ;;  %s910_s11 = inlined_call_operand.vmem [shape: f32[1,128], index: 11, kind: output, shape index: {}]  }
   0x1   :  { %v667_v0 = vld [vmem:[%s899_s5 + $0x78] sm:$0xff]   ;;  %v671_v4 = vld [vmem:[%s899_s5 + $0x70] sm:$0xff]   ;;  %v675_v8 = vld [vmem:[%s899_s5 + $0x68] sm:$0xff]   ;;  %v16_v48 = vstv %s907_s10  ;;  %vm538_vm4 = vcmask 7168  }
   0x2   :  { %v668_v1 = vld [vmem:[%s900_s4 + $0x78] sm:$0xff]   ;;  %600 = vmatprep.subr.bf16.mxu0 %v667_v0  ;;  %v672_v5 = vld [vmem:[%s900_s4 + $0x70] sm:$0xff]   ;;  %v676_v9 = vld [vmem:[%s900_s4 + $0x68] sm:$0xff]   ;;  %17 = vst [vmem:[#allocation2] sm:$0x1] %v16_v48 }
   0x3   :  { %v669_v2 = vld [vmem:[%s899_s5 + $0x38] sm:$0xff]   ;;  %622 = vmatprep.subr.bf16.mxu1 %v668_v1  ;;  %v673_v6 = vld [vmem:[%s899_s5 + $0x30] sm:$0xff]   ;;  %v677_v10 = vld [vmem:[%s899_s5 + $0x28] sm:$0xff]  }
   0x4   :  { %v670_v3 = vld [vmem:[%s900_s4 + $0x38] sm:$0xff]   ;;  %601 = vmatpush3.bf16.msra.mxu0 %v669_v2  ;;  %v674_v7 = vld [vmem:[%s900_s4 + $0x30] sm:$0xff]   ;;  %v678_v11 = vld [vmem:[%s900_s4 + $0x28] sm:$0xff]  }
   0x5   :  { %623 = vmatpush3.bf16.msra.mxu1 %v670_v3  ;;  %602 = vmatprep.subr.bf16.mxu0 %v671_v4  ;;  %v679_v12 = vld [vmem:[%s899_s5 + $0x60] sm:$0xff]   ;;  %v683_v16 = vld [vmem:[%s899_s5 + $0x58] sm:$0xff]   ;;  %v687_v20 = vld [vmem:[%s899_s5 + $0x50] sm:$0xff]  }
   0x6   :  { %624 = vmatprep.subr.bf16.mxu1 %v672_v5  ;;  %v680_v13 = vld [vmem:[%s900_s4 + $0x60] sm:$0xff]   ;;  %v684_v17 = vld [vmem:[%s900_s4 + $0x58] sm:$0xff]   ;;  %v688_v21 = vld [vmem:[%s900_s4 + $0x50] sm:$0xff]  }
   0x7   :  { %v681_v14 = vld [vmem:[%s899_s5 + $0x20] sm:$0xff]   ;;  %v685_v18 = vld [vmem:[%s899_s5 + $0x18] sm:$0xff]   ;;  %v689_v22 = vld [vmem:[%s899_s5 + $0x10] sm:$0xff]  }
   0x8   :  { %603 = vmatpush3.bf16.msra.mxu0 %v673_v6  ;;  %v682_v15 = vld [vmem:[%s900_s4 + $0x20] sm:$0xff]   ;;  %v686_v19 = vld [vmem:[%s900_s4 + $0x18] sm:$0xff]   ;;  %v690_v23 = vld [vmem:[%s900_s4 + $0x10] sm:$0xff]  }
   0x9   :  { %625 = vmatpush3.bf16.msra.mxu1 %v674_v7  ;;  %604 = vmatprep.subr.bf16.mxu0 %v675_v8  ;;  %v691_v24 = vld [vmem:[%s899_s5 + $0x48] sm:$0xff]   ;;  %v695_v28 = vld [vmem:[%s899_s5 + $0x40] sm:$0xff]  }
   0xa   :  { %626 = vmatprep.subr.bf16.mxu1 %v676_v9  ;;  %v692_v25 = vld [vmem:[%s900_s4 + $0x48] sm:$0xff]   ;;  %v696_v29 = vld [vmem:[%s900_s4 + $0x40] sm:$0xff]  }
   0xb   :  { %v693_v26 = vld [vmem:[%s899_s5 + $0x8] sm:$0xff]   ;;  %v697_v30 = vld [vmem:[%s899_s5] sm:$0xff]  }
   0xc   :  { %605 = vmatpush3.bf16.msra.mxu0 %v677_v10  ;;  %v694_v27 = vld [vmem:[%s900_s4 + $0x8] sm:$0xff]   ;;  %v698_v31 = vld [vmem:[%s900_s4] sm:$0xff]  }
   0xd   :  { %627 = vmatpush3.bf16.msra.mxu1 %v678_v11  ;;  %606 = vmatprep.subr.bf16.mxu0 %v679_v12  ;;  %v77_v32 = vld [vmem:[%s901_s1] sm:$0xff]  ;;  %v78_v33 = vld [vmem:[%s901_s1 + $0x8] sm:$0xff] }
   0xe   :  { %628 = vmatprep.subr.bf16.mxu1 %v680_v13  ;;  %v41_v34 = vld [vmem:[%s902_s0] sm:$0xff]  ;;  %v79_v35 = vpack.c.bf16 %v77_v32, %v77_v32  ;;  %v80_v36 = vpack.c.bf16 %v78_v33, %v78_v33  ;;  %v42_v37 = vld [vmem:[%s902_s0 + $0x8] sm:$0xff] }
   0xf   :  { %v43_v38 = vpack.c.bf16 %v41_v34, %v41_v34  ;;  %v44_v40 = vpack.c.bf16 %v42_v37, %v42_v37  ;;  %v699_v41 = vld [vmem:[%s903_s6 + $0x8] sm:$0xff]   ;;  %v700_v42 = vld [vmem:[%s904_s7] sm:$0xff]  }
  0x10   :  { %607 = vmatpush3.bf16.msra.mxu0 %v681_v14  ;;  %241 = vmatprep.mubr.bf16.mxu0 %v80_v36  ;;  %v701_v43 = vld [vmem:[%s903_s6] sm:$0xff]  }
  0x11   :  { %629 = vmatpush3.bf16.msra.mxu1 %v682_v15  ;;  %608 = vmatprep.subr.bf16.mxu0 %v683_v16  ;;  %v385_v44 = vld [vmem:[%s905_s2] sm:$0xff] }
  0x12   :  { %630 = vmatprep.subr.bf16.mxu1 %v684_v17  ;;  %377 = vmatprep.mubr.bf16.mxu1 %v44_v40  ;;  %v448_v45 = vld [vmem:[%s906_s3] sm:$0xff]  ;;  %v386_v46 = vpack.c.bf16 %v385_v44, %v385_v44 }
  0x13   :  { %v449_v47 = vpack.c.bf16 %v448_v45, %v448_v45  ;;  %v597_v63 = vld [vmem:[%s908_s8] ss:$0 sm:$0xff] }
  0x14   :  { %609 = vmatpush3.bf16.msra.mxu0 %v685_v18  ;;  %v598_v9 = vld [vmem:[%s909_s9] ss:$0 sm:$0xff] }
  0x15   :  { %631 = vmatpush3.bf16.msra.mxu1 %v686_v19  ;;  %610 = vmatprep.subr.bf16.mxu0 %v687_v20  ;;  %v599_v12 = vld [vmem:[#allocation2] ss:$0 sm:$0xff] }
  0x16   :  { %632 = vmatprep.subr.bf16.mxu1 %v688_v21 }
  0x18   :  { %611 = vmatpush3.bf16.msra.mxu0 %v689_v22 }
  0x19   :  { %633 = vmatpush3.bf16.msra.mxu1 %v690_v23  ;;  %612 = vmatprep.subr.bf16.mxu0 %v691_v24  ;;  %v532_v23 = vlaneseq }
  0x1a   :  { %634 = vmatprep.subr.bf16.mxu1 %v692_v25 }
  0x1b   :  { %v533_v24 = vshrl.u32 %v532_v23, 7 }
  0x1c   :  { %613 = vmatpush3.bf16.msra.mxu0 %v693_v26 }
  0x1d   :  { %635 = vmatpush3.bf16.msra.mxu1 %v694_v27  ;;  %614 = vmatprep.subr.bf16.mxu0 %v695_v28  ;;  %vm552_vm5 = vcmp.eq.s32.totalorder %v533_v24, 0 }
  0x1e   :  { %636 = vmatprep.subr.bf16.mxu1 %v696_v29 }
  0x20   :  { %615 = vmatpush3.bf16.msra.mxu0 %v697_v30 }
  0x21   :  { %637 = vmatpush3.bf16.msra.mxu1 %v698_v31  ;;  %649 = vmatprep.subr.bf16.mxu0 %v702_v39 }
  0x22   :  { %657 = vmatprep.subr.bf16.mxu1 %v702_v39 }
  0x23   :  { %242 = vmatmul.mubr.bf16.vlgmr.msra.gmra.mxu0 %v79_v35 }
  0x24   :  { %378 = vmatmul.mubr.bf16.vlgmr.msra.gmra.mxu1 %v43_v38  ;;  %650 = vmatpush3.bf16.msra.mxu0 %v699_v41 }
  0x25   :  { %658 = vmatpush3.bf16.msra.mxu1 %v700_v42  ;;  %651 = vmatprep.subr.bf16.mxu0 %v702_v39 }
  0x26   :  { %653 = vmatprep.mubr.msk.bf16.mxu0 %vm703_vm0, %v702_v39  ;;  %659 = vmatprep.mubr.msk.bf16.mxu1 %vm703_vm0, %v702_v39 }
  0x28   :  { %652 = vmatpush3.bf16.msra.mxu0 %v701_v43 }
  0x2b   :  { %654 = vmatmul.mubr.msk.bf16.vlgmr.msra.gmra.mxu0 %vm403_vm1, %v386_v46 }
  0x2c   :  { %660 = vmatmul.mubr.msk.bf16.vlgmr.msra.gmra.mxu1 %vm458_vm2, %v449_v47 }
  0xe3   :  { %v616_v49 = vpop.f32.mrf.mxu0 }
  0xe4   :  { %v638_v50 = vpop.f32.mrf.mxu1 }
  0xe5   :  { %v617_v51 = vpop.f32.mrf.mxu0 }
  0xe6   :  { %v618_v52 = vadd.f32 %v617_v51, %v616_v49  ;;  %v639_v53 = vpop.f32.mrf.mxu1 }
  0xe7   :  { %v640_v54 = vadd.f32 %v639_v53, %v638_v50  ;;  %v619_v55 = vpop.f32.mrf.mxu0 }
  0xe8   :  { %v641_v56 = vpop.f32.mrf.mxu1 }
  0xe9   :  { %v620_v57 = vpop.f32.mrf.mxu0  ;;  %v380_v59 = vadd.f32 %v640_v54, %v618_v52 }
  0xea   :  { %v642_v58 = vpop.f32.mrf.mxu1 }
  0xeb   :  { %v441_v60 = vpop.f32.mrf.mxu0 }
  0xec   :  { %v447_v61 = vadd.f32 %v441_v60, %v380_v59  ;;  %v496_v62 = vpop.f32.mrf.mxu1 }
  0xed   :  { %v655_v0 = vpop.f32.mrf.mxu0 }
  0xee   :  { %v502_v1 = vadd.f32 %v496_v62, %v447_v61  ;;  %v661_v2 = vpop.f32.mrf.mxu1 }
  0xef   :  { %v444_v3 = vpop.f32.mrf.mxu0 }
  0xf0   :  { %v510_v4 = vadd.f32 %v597_v63, %v502_v1  ;;  %v499_v5 = vpop.f32.mrf.mxu1 }
  0xf1   :  { %v656_v6 = vpop.f32.mrf.mxu0 }
  0xf2   :  { %v662_v7 = vpop.f32.mrf.mxu1  ;;  %vm511_vm3 = vcmp.gt.f32.partialorder %v510_v4, 0.0  ;;  %v512_v8 = vmul.f32 0.2, %v510_v4 }
  0xf4   :  { %v513_v10 = vsel %vm511_vm3, %v510_v4, %v512_v8 }
  0xf5   :  { %v521_v11 = vmul.f32 %v598_v9, %v513_v10 }
  0xf7   :  { %522 = vadd.xlane.f32.xlu0 %v521_v11 }
 0x180   :  { %v523_v13 = vpop.xlane.xlu0 %522 }
 0x181   :  { %v531_v14 = vadd.f32 %v599_v12, %v523_v13 }
 0x183   :  { %v539_v15 = vsel %vm538_vm4, %v531_v14, 0.0 }
 0x184   :  { %540 = vadd.xlane.f32.xlu0 %v539_v15 }
 0x20d   :  { %v541_v16 = vpop.xlane.xlu0 %540 }
 0x20e   :  { %v542_v17 = vrot.slane %v541_v16, 4 }
 0x210   :  { %v543_v18 = vadd.f32 %v542_v17, %v541_v16 }
 0x212   :  { %v544_v19 = vrot.slane %v543_v18, 2 }
 0x214   :  { %v545_v20 = vadd.f32 %v544_v19, %v543_v18 }
 0x216   :  { %v546_v21 = vrot.slane %v545_v20, 1 }
 0x218   :  { %v547_v22 = vadd.f32 %v546_v21, %v545_v20 }
 0x21a   :  { %663 = vpush %v547_v22 }
 0x24b   :  { %s664_s8 = spop %663 }
 0x24c   :  { %s551_s9 = smul.f32 0.125, %s664_s8 }
 0x24e   :  { %v553_v25 = vstv %s551_s9 }
 0x24f   :  { %v554_v26 = vsel %vm552_vm5, %v553_v25, 0.0 }
 0x250   :  { %555 = vst [vmem:[%s910_s11] sm:$0x1] %v554_v26 }

</bundles_post_ra>
